<compile_context>
chip_gen: v7x
topology: tpu7x:2x2x1
jax: 0.10.0
libtpu: 0.0.40
codegen_flags: <defaults>
</compile_context>

<pallas_src>
import numpy as np
import jax
import jax.numpy as jnp
from jax.experimental import pallas as pl
from jax.experimental.pallas import tpu as pltpu

# ----------------------------------------------------------------------------
# Configuration (stand-in for `N_Qubits = int(sys.argv[1])` in the original).
# ----------------------------------------------------------------------------
N_QUBITS = 3
N_PARAMS = 3 * N_QUBITS - 1          # = 8
DIM = 2 ** N_QUBITS                  # = 8
LANE = 128

# MLP logical sizes and lane/sublane-friendly padded sizes (zero padding is exact).
MLP_SIZES = [(300, 200), (200, 100), (100, 50), (50, N_PARAMS)]
MLP_PAD   = [(384, 256), (256, 128), (128, 128), (128, 128)]
D_IN_PAD  = MLP_PAD[0][0]            # 384
OUT_PAD   = MLP_PAD[-1][1]           # 128 (lane-dense logits slab)


# ----------------------------------------------------------------------------
# Pallas kernel 1: fused MLP over both halves (2B rows), bf16 MXU, f32 accum.
# ----------------------------------------------------------------------------
def _mlp_kernel(x_ref, w1, b1, w2, b2, w3, b3, w4, b4, out_ref):
    h = jnp.dot(x_ref[...], w1[...], preferred_element_type=jnp.float32) + b1[...]
    h = jnp.maximum(h, 0.0).astype(jnp.bfloat16)
    h = jnp.dot(h, w2[...], preferred_element_type=jnp.float32) + b2[...]
    h = jnp.maximum(h, 0.0).astype(jnp.bfloat16)
    h = jnp.dot(h, w3[...], preferred_element_type=jnp.float32) + b3[...]
    h = jnp.maximum(h, 0.0).astype(jnp.bfloat16)
    out_ref[...] = jnp.dot(h, w4[...], preferred_element_type=jnp.float32) + b4[...]


def mlp_pallas(x2, padded):
    """x2: (rows, D_IN_PAD) bf16 with rows % 8 == 0.  Returns (rows, OUT_PAD) f32."""
    rows = x2.shape[0]
    tile = min(rows, 256)
    grid = (pl.cdiv(rows, tile),)
    names = ("w1", "b1", "w2", "b2", "w3", "b3", "w4", "b4")
    weight_args = [padded[n] for n in names]
    # Constant block index -> weights fetched once and stay VMEM-resident.
    weight_specs = [pl.BlockSpec(a.shape, lambda i: (0, 0)) for a in weight_args]
    return pl.pallas_call(
        _mlp_kernel,
        out_shape=jax.ShapeDtypeStruct((rows, OUT_PAD), jnp.float32),
        grid=grid,
        in_specs=[pl.BlockSpec((tile, D_IN_PAD), lambda i: (i, 0))] + weight_specs,
        out_specs=pl.BlockSpec((tile, OUT_PAD), lambda i: (i, 0)),
        compiler_params=pltpu.CompilerParams(dimension_semantics=("parallel",)),
    )(x2, *weight_args)


# ----------------------------------------------------------------------------
# Pallas kernel 2: fused gate construction + state-vector circuit + fidelity.
# Batch is on the lane axis; every amplitude (re/im) is a (1, LANE) f32 plane.
# ----------------------------------------------------------------------------
def _qbit(k, q):
    # qubit q = q-th kron factor from the left = bit (N_QUBITS-1-q) of basis index k
    return (k >> (N_QUBITS - 1 - q)) & 1


def _apply_circuit_to_zero(lg_ref):
    """Apply U(angles) to |0...0>; lg_ref is (N_PARAMS, LANE) with batch on lanes.

    U = RZ_layer @ RY_layer @ CRX_0 @ ... @ CRX_{N-2}.  The module's "Rx" is
    exp(-i*theta*Z/2) (diagonal), so every layer except the Ry layer is diagonal
    and is applied as an elementwise complex scale.  Returns lists (vr, vi) of
    DIM (1, LANE) f32 amplitude planes.
    """
    lane = lg_ref.shape[1]

    def half_cs(col):
        th = lg_ref[col:col + 1, :] * 0.5
        return jnp.cos(th), jnp.sin(th)

    vr = [jnp.zeros((1, lane), jnp.float32) for _ in range(DIM)]
    vi = [jnp.zeros((1, lane), jnp.float32) for _ in range(DIM)]
    vr[0] = jnp.ones((1, lane), jnp.float32)          # |0...0>

    def scale(k, c, s, sign):
        # amplitude k *= (c + i*sign*s)
        ar, ai = vr[k], vi[k]
        vr[k] = ar * c - ai * (sign * s)
        vi[k] = ar * (sign * s) + ai * c

    # Controlled-phase layers (diagonal), applied right-to-left.
    for i in reversed(range(N_QUBITS - 1)):
        c, s = half_cs(2 * N_QUBITS + i)
        for k in range(DIM):
            if _qbit(k, i + 1) == 1:                  # control qubit = i+1, target = i
                scale(k, c, s, 1.0 if _qbit(k, i) else -1.0)

    # Ry layer (the only non-diagonal layer): per-qubit 2x2 real rotations.
    for q in range(N_QUBITS):
        c, s = half_cs(N_QUBITS + q)
        for k0 in range(DIM):
            if _qbit(k0, q) == 0:
                k1 = k0 | (1 << (N_QUBITS - 1 - q))
                a0r, a0i, a1r, a1i = vr[k0], vi[k0], vr[k1], vi[k1]
                vr[k0] = c * a0r - s * a1r
                vi[k0] = c * a0i - s * a1i
                vr[k1] = s * a0r + c * a1r
                vi[k1] = s * a0i + c * a1i

    # First layer: kron of diagonal exp(-i*theta*Z/2) gates.  The original module
    # reuses parameter column 1 for the first two qubits (column 0 is never used).
    rz_cols = [1, 1] + list(range(2, N_QUBITS))
    for q in range(N_QUBITS):
        c, s = half_cs(rz_cols[q])
        for k in range(DIM):
            scale(k, c, s, 1.0 if _qbit(k, q) else -1.0)

    return vr, vi


def _fidelity_kernel(lg1_ref, lg2_ref, out_ref):
    v1r, v1i = _apply_circuit_to_zero(lg1_ref)        # v1 = U(logits1)|0>
    v2r, v2i = _apply_circuit_to_zero(lg2_ref)        # v2 = U(logits2)|0>
    re = jnp.zeros_like(v1r[0])
    im = jnp.zeros_like(v1r[0])
    for k in range(DIM):                              # inner = <0|U2^H U1|0>
        re = re + v2r[k] * v1r[k] + v2i[k] * v1i[k]
        im = im + v2r[k] * v1i[k] - v2i[k] * v1r[k]
    out_ref[...] = re * re + im * im                  # lane-dense (1, LANE) store


def fidelity_pallas(lg1_t, lg2_t):
    """lg*_t: (N_PARAMS, B_pad) f32, batch on lanes, B_pad % 128 == 0."""
    bpad = lg1_t.shape[1]
    grid = (bpad // LANE,)
    in_spec = pl.BlockSpec((N_PARAMS, LANE), lambda i: (0, i))
    return pl.pallas_call(
        _fidelity_kernel,
        out_shape=jax.ShapeDtypeStruct((1, bpad), jnp.float32),
        grid=grid,
        in_specs=[in_spec, in_spec],
        out_specs=pl.BlockSpec((1, LANE), lambda i: (0, i)),
        compiler_params=pltpu.CompilerParams(dimension_semantics=("parallel",)),
    )(lg1_t, lg2_t)


# ----------------------------------------------------------------------------
# Forward pass (jit'ed so the small re-layout glue fuses into one dispatch).
# ----------------------------------------------------------------------------
@jax.jit
def preq_forward(x, padded_params):
    B = x.shape[0]
    rows = 2 * B
    rows_pad = -(-rows // 8) * 8
    # Fuse the two MLP halves into one (2B, 300) batch -> weights DMA'd once.
    x2 = jnp.concatenate([x[:, :300], x[:, 300:600]], axis=0)
    x2 = jnp.pad(x2, ((0, rows_pad - rows), (0, D_IN_PAD - 300))).astype(jnp.bfloat16)
    slab = mlp_pallas(x2, padded_params)              # (rows_pad, OUT_PAD) f32
    logits = slab[:rows, :N_PARAMS]
    logits1, logits2 = logits[:B], logits[B:]

    # Re-layout for the fidelity kernel: batch on the lane axis, zero-padded to 128.
    bpad = -(-B // LANE) * LANE
    lg1_t = jnp.zeros((N_PARAMS, bpad), jnp.float32).at[:, :B].set(logits1.T)
    lg2_t = jnp.zeros((N_PARAMS, bpad), jnp.float32).at[:, :B].set(logits2.T)
    fid = fidelity_pallas(lg1_t, lg2_t)[0, :B]
    return fid, logits1, logits2


# ----------------------------------------------------------------------------
# Parameter init (PyTorch Linear-style uniform) and padded bf16 copies for kernels.
# ----------------------------------------------------------------------------
def init_mlp_params(key):
    params = {}
    for idx, (fi, fo) in enumerate(MLP_SIZES, start=1):
        key, kw, kb = jax.random.split(key, 3)
        bound = 1.0 / np.sqrt(fi)
        params[f"w{idx}"] = jax.random.uniform(kw, (fi, fo), jnp.float32, -bound, bound)
        params[f"b{idx}"] = jax.random.uniform(kb, (fo,), jnp.float32, -bound, bound)
    return params


def pad_params_bf16(params):
    padded = {}
    for idx, (fi_p, fo_p) in enumerate(MLP_PAD, start=1):
        w, b = params[f"w{idx}"], params[f"b{idx}"]
        wp = jnp.zeros((fi_p, fo_p), jnp.float32).at[:w.shape[0], :w.shape[1]].set(w)
        bp = jnp.zeros((1, fo_p), jnp.float32).at[0, :b.shape[0]].set(b)
        padded[f"w{idx}"] = wp.astype(jnp.bfloat16)
        padded[f"b{idx}"] = bp.astype(jnp.bfloat16)
    return padded


# ----------------------------------------------------------------------------
# Pure-JAX reference (mirrors the PyTorch module in complex64), used only for
# checking the kernels in __main__.
# ----------------------------------------------------------------------------
def mlp_ref(xh, params):
    # Emulates the kernel numerics: bf16 operands, f32 accumulation.
    def dense(h, w, b):
        hb = h.astype(jnp.bfloat16).astype(jnp.float32)
        wb = w.astype(jnp.bfloat16).astype(jnp.float32)
        bb = b.astype(jnp.bfloat16).astype(jnp.float32)
        return jnp.dot(hb, wb, precision=jax.lax.Precision.HIGHEST) + bb
    h = jnp.maximum(dense(xh, params["w1"], params["b1"]), 0.0)
    h = jnp.maximum(dense(h, params["w2"], params["b2"]), 0.0)
    h = jnp.maximum(dense(h, params["w3"], params["b3"]), 0.0)
    return dense(h, params["w4"], params["b4"])


def rx_mat(theta):
    # The original Rx() is matrix_exp(-0.5j*theta*Z) = diag(e^{-i t/2}, e^{+i t/2})  (an RZ).
    t = theta.astype(jnp.complex64)
    a = jnp.exp(-0.5j * t)
    d = jnp.exp(0.5j * t)
    z = jnp.zeros_like(a)
    return jnp.stack([jnp.stack([a, z], axis=-1),
                      jnp.stack([z, d], axis=-1)], axis=-2)


def ry_mat(theta):
    c = jnp.cos(0.5 * theta).astype(jnp.complex64)
    s = jnp.sin(0.5 * theta).astype(jnp.complex64)
    return jnp.stack([jnp.stack([c, -s], axis=-1),
                      jnp.stack([s, c], axis=-1)], axis=-2)


def bkron(a, b):
    bs, m, _ = a.shape
    _, n, _ = b.shape
    return jnp.einsum('bij,bkl->bikjl', a, b).reshape(bs, m * n, m * n)


def build_layers(logits):
    """Mirror PreQ.get_quantum_state (including reuse of parameter index 1)."""
    bs = logits.shape[0]
    p = logits

    rx_factors = [rx_mat(p[:, 1]), rx_mat(p[:, 1])]
    rx_factors += [rx_mat(p[:, c]) for c in range(2, N_QUBITS)]
    first = rx_factors[0]
    for f in rx_factors[1:]:
        first = bkron(first, f)

    ry_factors = [ry_mat(p[:, c]) for c in range(N_QUBITS, 2 * N_QUBITS)]
    second = ry_factors[0]
    for f in ry_factors[1:]:
        second = bkron(second, f)

    eye2 = jnp.eye(2, dtype=jnp.complex64)
    p0 = jnp.array([[1.0, 0.0], [0.0, 0.0]], jnp.complex64)
    p1 = jnp.array([[0.0, 0.0], [0.0, 1.0]], jnp.complex64)

    layers = [first, second]
    for i in range(N_QUBITS - 1):
        theta = p[:, 2 * N_QUBITS + i]
        crx = (bkron(jnp.broadcast_to(eye2, (bs, 2, 2)),
                     jnp.broadcast_to(p0, (bs, 2, 2)))
               + bkron(rx_mat(theta), jnp.broadcast_to(p1, (bs, 2, 2))))
        left = jnp.eye(2 ** i, dtype=jnp.complex64)
        right = jnp.eye(2 ** (N_QUBITS - i - 2), dtype=jnp.complex64)
        m = bkron(jnp.broadcast_to(left, (bs,) + left.shape), crx)
        m = bkron(m, jnp.broadcast_to(right, (bs,) + right.shape))
        layers.append(m)

    return jnp.stack(layers, axis=0)


def fidelity_ref(layers1, layers2):
    def compose(ls):
        u = ls[0]
        for l in range(1, ls.shape[0]):
            u = jnp.einsum('bij,bjk->bik', u, ls[l])
        return u
    u1 = compose(layers1)
    u2 = compose(layers2)
    v1 = u1[:, :, 0]
    v2 = u2[:, :, 0]
    inner = jnp.sum(jnp.conj(v2) * v1, axis=-1)
    return jnp.square(jnp.abs(inner))


if __name__ == "__main__":
    key = jax.random.PRNGKey(0)
    kx, kp = jax.random.split(key)
    B = 2
    x = jax.random.normal(kx, (B, 600), jnp.float32)
    params = init_mlp_params(kp)
    padded = pad_params_bf16(params)

    fid, logits1, logits2 = preq_forward(x, padded)
    fid = jax.block_until_ready(fid)

    # Reference: same bf16-in / f32-accumulate MLP numerics + complex64 circuit.
    ref_l1 = mlp_ref(x[:, :300], params)
    ref_l2 = mlp_ref(x[:, 300:600], params)
    ref_fid = fidelity_ref(build_layers(ref_l1), build_layers(ref_l2))

    fid_np = np.asarray(fid)
    assert fid_np.shape == (B,)
    assert np.all(np.isfinite(fid_np))
    assert np.all(fid_np >= -1e-3) and np.all(fid_np <= 1.0 + 1e-3)
    assert np.allclose(np.asarray(logits1), np.asarray(ref_l1), atol=2e-2, rtol=2e-2)
    assert np.allclose(np.asarray(logits2), np.asarray(ref_l2), atol=2e-2, rtol=2e-2)
    assert np.allclose(fid_np, np.asarray(ref_fid), atol=2e-2, rtol=2e-2), (fid_np, ref_fid)

    print("KERNEL_OK")
</pallas_src>

<mosaic_0001>
module attributes {stable_mosaic.version = 11 : i64} {
  func.func @_mlp_kernel(%arg0: i32, %arg1: memref<8x384xbf16, #tpu.memory_space<vmem>>, %arg2: memref<384x256xbf16, #tpu.memory_space<vmem>>, %arg3: memref<1x256xbf16, #tpu.memory_space<vmem>>, %arg4: memref<256x128xbf16, #tpu.memory_space<vmem>>, %arg5: memref<1x128xbf16, #tpu.memory_space<vmem>>, %arg6: memref<128x128xbf16, #tpu.memory_space<vmem>>, %arg7: memref<1x128xbf16, #tpu.memory_space<vmem>>, %arg8: memref<128x128xbf16, #tpu.memory_space<vmem>>, %arg9: memref<1x128xbf16, #tpu.memory_space<vmem>>, %arg10: memref<8x128xf32, #tpu.memory_space<vmem>>) attributes {dimension_semantics = [#tpu.dimension_semantics<parallel>], iteration_bounds = array<i64: 1>, scalar_prefetch = 0 : i64, scratch_operands = 0 : i64, tpu.core_type = #tpu.core_type<tc>, window_params = [{transform_indices = @transform_0, window_bounds = array<i64: 8, 384>}, {pipeline_mode = #tpu.pipeline_mode<synchronous>, transform_indices = @transform_1, window_bounds = array<i64: 384, 256>}, {pipeline_mode = #tpu.pipeline_mode<synchronous>, transform_indices = @transform_2, window_bounds = array<i64: 1, 256>}, {pipeline_mode = #tpu.pipeline_mode<synchronous>, transform_indices = @transform_3, window_bounds = array<i64: 256, 128>}, {pipeline_mode = #tpu.pipeline_mode<synchronous>, transform_indices = @transform_4, window_bounds = array<i64: 1, 128>}, {pipeline_mode = #tpu.pipeline_mode<synchronous>, transform_indices = @transform_5, window_bounds = array<i64: 128, 128>}, {pipeline_mode = #tpu.pipeline_mode<synchronous>, transform_indices = @transform_6, window_bounds = array<i64: 1, 128>}, {pipeline_mode = #tpu.pipeline_mode<synchronous>, transform_indices = @transform_7, window_bounds = array<i64: 128, 128>}, {pipeline_mode = #tpu.pipeline_mode<synchronous>, transform_indices = @transform_8, window_bounds = array<i64: 1, 128>}, {transform_indices = @transform_9, window_bounds = array<i64: 8, 128>}]} {
    %c0 = arith.constant 0 : index
    %c0_0 = arith.constant 0 : index
    %0 = vector.load %arg1[%c0, %c0_0] : memref<8x384xbf16, #tpu.memory_space<vmem>>, vector<8x384xbf16>
    %c0_1 = arith.constant 0 : index
    %c0_2 = arith.constant 0 : index
    %1 = vector.load %arg2[%c0_1, %c0_2] : memref<384x256xbf16, #tpu.memory_space<vmem>>, vector<384x256xbf16>
    %cst = arith.constant dense<0.000000e+00> : vector<8x256xf32>
    %2 = tpu.matmul %0, %1, %cst {dimension_numbers = #tpu.dot_dimension_numbers<[1], [0], [0], [1], [0, 0, 1, 1], [], []>} : vector<8x384xbf16>, vector<384x256xbf16>, vector<8x256xf32> -> vector<8x256xf32>
    %c0_3 = arith.constant 0 : index
    %c0_4 = arith.constant 0 : index
    %3 = vector.load %arg3[%c0_3, %c0_4] : memref<1x256xbf16, #tpu.memory_space<vmem>>, vector<1x256xbf16>
    %4 = arith.extf %3 : vector<1x256xbf16> to vector<1x256xf32>
    %5 = vector.broadcast %4 : vector<1x256xf32> to vector<8x256xf32>
    %6 = arith.addf %2, %5 : vector<8x256xf32>
    %cst_5 = arith.constant 0.000000e+00 : f32
    %7 = vector.broadcast %cst_5 : f32 to vector<8x256xf32>
    %8 = arith.maximumf %6, %7 : vector<8x256xf32>
    %9 = arith.truncf %8 : vector<8x256xf32> to vector<8x256xbf16>
    %c0_6 = arith.constant 0 : index
    %c0_7 = arith.constant 0 : index
    %10 = vector.load %arg4[%c0_6, %c0_7] : memref<256x128xbf16, #tpu.memory_space<vmem>>, vector<256x128xbf16>
    %cst_8 = arith.constant dense<0.000000e+00> : vector<8x128xf32>
    %11 = tpu.matmul %9, %10, %cst_8 {dimension_numbers = #tpu.dot_dimension_numbers<[1], [0], [0], [1], [0, 0, 1, 1], [], []>} : vector<8x256xbf16>, vector<256x128xbf16>, vector<8x128xf32> -> vector<8x128xf32>
    %c0_9 = arith.constant 0 : index
    %c0_10 = arith.constant 0 : index
    %12 = vector.load %arg5[%c0_9, %c0_10] : memref<1x128xbf16, #tpu.memory_space<vmem>>, vector<1x128xbf16>
    %13 = arith.extf %12 : vector<1x128xbf16> to vector<1x128xf32>
    %14 = vector.broadcast %13 : vector<1x128xf32> to vector<8x128xf32>
    %15 = arith.addf %11, %14 : vector<8x128xf32>
    %cst_11 = arith.constant 0.000000e+00 : f32
    %16 = vector.broadcast %cst_11 : f32 to vector<8x128xf32>
    %17 = arith.maximumf %15, %16 : vector<8x128xf32>
    %18 = arith.truncf %17 : vector<8x128xf32> to vector<8x128xbf16>
    %c0_12 = arith.constant 0 : index
    %c0_13 = arith.constant 0 : index
    %19 = vector.load %arg6[%c0_12, %c0_13] : memref<128x128xbf16, #tpu.memory_space<vmem>>, vector<128x128xbf16>
    %cst_14 = arith.constant dense<0.000000e+00> : vector<8x128xf32>
    %20 = tpu.matmul %18, %19, %cst_14 {dimension_numbers = #tpu.dot_dimension_numbers<[1], [0], [0], [1], [0, 0, 1, 1], [], []>} : vector<8x128xbf16>, vector<128x128xbf16>, vector<8x128xf32> -> vector<8x128xf32>
    %c0_15 = arith.constant 0 : index
    %c0_16 = arith.constant 0 : index
    %21 = vector.load %arg7[%c0_15, %c0_16] : memref<1x128xbf16, #tpu.memory_space<vmem>>, vector<1x128xbf16>
    %22 = arith.extf %21 : vector<1x128xbf16> to vector<1x128xf32>
    %23 = vector.broadcast %22 : vector<1x128xf32> to vector<8x128xf32>
    %24 = arith.addf %20, %23 : vector<8x128xf32>
    %cst_17 = arith.constant 0.000000e+00 : f32
    %25 = vector.broadcast %cst_17 : f32 to vector<8x128xf32>
    %26 = arith.maximumf %24, %25 : vector<8x128xf32>
    %27 = arith.truncf %26 : vector<8x128xf32> to vector<8x128xbf16>
    %c0_18 = arith.constant 0 : index
    %c0_19 = arith.constant 0 : index
    %28 = vector.load %arg8[%c0_18, %c0_19] : memref<128x128xbf16, #tpu.memory_space<vmem>>, vector<128x128xbf16>
    %cst_20 = arith.constant dense<0.000000e+00> : vector<8x128xf32>
    %29 = tpu.matmul %27, %28, %cst_20 {dimension_numbers = #tpu.dot_dimension_numbers<[1], [0], [0], [1], [0, 0, 1, 1], [], []>} : vector<8x128xbf16>, vector<128x128xbf16>, vector<8x128xf32> -> vector<8x128xf32>
    %c0_21 = arith.constant 0 : index
    %c0_22 = arith.constant 0 : index
    %30 = vector.load %arg9[%c0_21, %c0_22] : memref<1x128xbf16, #tpu.memory_space<vmem>>, vector<1x128xbf16>
    %31 = arith.extf %30 : vector<1x128xbf16> to vector<1x128xf32>
    %32 = vector.broadcast %31 : vector<1x128xf32> to vector<8x128xf32>
    %33 = arith.addf %29, %32 : vector<8x128xf32>
    %c0_23 = arith.constant 0 : index
    %c0_24 = arith.constant 0 : index
    %34 = vector.load %arg10[%c0_23, %c0_24] : memref<8x128xf32, #tpu.memory_space<vmem>>, vector<8x128xf32>
    tpu.vector_store %arg10[%c0_23, %c0_24], %33 {strides = array<i32>} : memref<8x128xf32, #tpu.memory_space<vmem>>, vector<8x128xf32>,
    return
  }
  func.func @transform_0(%arg0: i32) -> (i32, i32) {
    %c0_i32 = arith.constant 0 : i32
    %c0_i32_0 = arith.constant 0 : i32
    return %arg0, %c0_i32 : i32, i32
  }
  func.func @transform_1(%arg0: i32) -> (i32, i32) {
    %c0_i32 = arith.constant 0 : i32
    %c0_i32_0 = arith.constant 0 : i32
    %c0_i32_1 = arith.constant 0 : i32
    return %c0_i32, %c0_i32_0 : i32, i32
  }
  func.func @transform_2(%arg0: i32) -> (i32, i32) {
    %c0_i32 = arith.constant 0 : i32
    %c0_i32_0 = arith.constant 0 : i32
    %c0_i32_1 = arith.constant 0 : i32
    return %c0_i32, %c0_i32_0 : i32, i32
  }
  func.func @transform_3(%arg0: i32) -> (i32, i32) {
    %c0_i32 = arith.constant 0 : i32
    %c0_i32_0 = arith.constant 0 : i32
    %c0_i32_1 = arith.constant 0 : i32
    return %c0_i32, %c0_i32_0 : i32, i32
  }
  func.func @transform_4(%arg0: i32) -> (i32, i32) {
    %c0_i32 = arith.constant 0 : i32
    %c0_i32_0 = arith.constant 0 : i32
    %c0_i32_1 = arith.constant 0 : i32
    return %c0_i32, %c0_i32_0 : i32, i32
  }
  func.func @transform_5(%arg0: i32) -> (i32, i32) {
    %c0_i32 = arith.constant 0 : i32
    %c0_i32_0 = arith.constant 0 : i32
    %c0_i32_1 = arith.constant 0 : i32
    return %c0_i32, %c0_i32_0 : i32, i32
  }
  func.func @transform_6(%arg0: i32) -> (i32, i32) {
    %c0_i32 = arith.constant 0 : i32
    %c0_i32_0 = arith.constant 0 : i32
    %c0_i32_1 = arith.constant 0 : i32
    return %c0_i32, %c0_i32_0 : i32, i32
  }
  func.func @transform_7(%arg0: i32) -> (i32, i32) {
    %c0_i32 = arith.constant 0 : i32
    %c0_i32_0 = arith.constant 0 : i32
    %c0_i32_1 = arith.constant 0 : i32
    return %c0_i32, %c0_i32_0 : i32, i32
  }
  func.func @transform_8(%arg0: i32) -> (i32, i32) {
    %c0_i32 = arith.constant 0 : i32
    %c0_i32_0 = arith.constant 0 : i32
    %c0_i32_1 = arith.constant 0 : i32
    return %c0_i32, %c0_i32_0 : i32, i32
  }
  func.func @transform_9(%arg0: i32) -> (i32, i32) {
    %c0_i32 = arith.constant 0 : i32
    %c0_i32_0 = arith.constant 0 : i32
    return %arg0, %c0_i32 : i32, i32
  }
}

module attributes {stable_mosaic.version = 11 : i64} {
  func.func @_fidelity_kernel(%arg0: i32, %arg1: memref<8x128xf32, #tpu.memory_space<vmem>>, %arg2: memref<8x128xf32, #tpu.memory_space<vmem>>, %arg3: memref<1x128xf32, #tpu.memory_space<vmem>>) attributes {dimension_semantics = [#tpu.dimension_semantics<parallel>], iteration_bounds = array<i64: 1>, scalar_prefetch = 0 : i64, scratch_operands = 0 : i64, tpu.core_type = #tpu.core_type<tc>, window_params = [{transform_indices = @transform_0, window_bounds = array<i64: 8, 128>}, {transform_indices = @transform_1, window_bounds = array<i64: 8, 128>}, {transform_indices = @transform_2, window_bounds = array<i64: 1, 128>}]} {
    %cst = arith.constant 0.000000e+00 : f32
    %0 = vector.broadcast %cst : f32 to vector<1x128xf32>
    %cst_0 = arith.constant 0.000000e+00 : f32
    %1 = vector.broadcast %cst_0 : f32 to vector<1x128xf32>
    %cst_1 = arith.constant 0.000000e+00 : f32
    %2 = vector.broadcast %cst_1 : f32 to vector<1x128xf32>
    %cst_2 = arith.constant 0.000000e+00 : f32
    %3 = vector.broadcast %cst_2 : f32 to vector<1x128xf32>
    %cst_3 = arith.constant 0.000000e+00 : f32
    %4 = vector.broadcast %cst_3 : f32 to vector<1x128xf32>
    %cst_4 = arith.constant 0.000000e+00 : f32
    %5 = vector.broadcast %cst_4 : f32 to vector<1x128xf32>
    %cst_5 = arith.constant 0.000000e+00 : f32
    %6 = vector.broadcast %cst_5 : f32 to vector<1x128xf32>
    %cst_6 = arith.constant 0.000000e+00 : f32
    %7 = vector.broadcast %cst_6 : f32 to vector<1x128xf32>
    %cst_7 = arith.constant 0.000000e+00 : f32
    %8 = vector.broadcast %cst_7 : f32 to vector<1x128xf32>
    %cst_8 = arith.constant 0.000000e+00 : f32
    %9 = vector.broadcast %cst_8 : f32 to vector<1x128xf32>
    %cst_9 = arith.constant 0.000000e+00 : f32
    %10 = vector.broadcast %cst_9 : f32 to vector<1x128xf32>
    %cst_10 = arith.constant 0.000000e+00 : f32
    %11 = vector.broadcast %cst_10 : f32 to vector<1x128xf32>
    %cst_11 = arith.constant 0.000000e+00 : f32
    %12 = vector.broadcast %cst_11 : f32 to vector<1x128xf32>
    %cst_12 = arith.constant 0.000000e+00 : f32
    %13 = vector.broadcast %cst_12 : f32 to vector<1x128xf32>
    %cst_13 = arith.constant 0.000000e+00 : f32
    %14 = vector.broadcast %cst_13 : f32 to vector<1x128xf32>
    %cst_14 = arith.constant 1.000000e+00 : f32
    %15 = vector.broadcast %cst_14 : f32 to vector<1x128xf32>
    %c7 = arith.constant 7 : index
    %c0 = arith.constant 0 : index
    %16 = vector.load %arg1[%c7, %c0] : memref<8x128xf32, #tpu.memory_space<vmem>>, vector<1x128xf32>
    %cst_15 = arith.constant 5.000000e-01 : f32
    %17 = vector.broadcast %cst_15 : f32 to vector<1x128xf32>
    %18 = arith.mulf %16, %17 : vector<1x128xf32>
    %19 = math.cos %18 : vector<1x128xf32>
    %20 = math.sin %18 : vector<1x128xf32>
    %21 = arith.mulf %0, %19 : vector<1x128xf32>
    %cst_16 = arith.constant -1.000000e+00 : f32
    %22 = vector.broadcast %cst_16 : f32 to vector<1x128xf32>
    %23 = arith.mulf %22, %20 : vector<1x128xf32>
    %24 = arith.mulf %8, %23 : vector<1x128xf32>
    %25 = arith.subf %21, %24 : vector<1x128xf32>
    %cst_17 = arith.constant -1.000000e+00 : f32
    %26 = vector.broadcast %cst_17 : f32 to vector<1x128xf32>
    %27 = arith.mulf %26, %20 : vector<1x128xf32>
    %28 = arith.mulf %0, %27 : vector<1x128xf32>
    %29 = arith.mulf %8, %19 : vector<1x128xf32>
    %30 = arith.addf %28, %29 : vector<1x128xf32>
    %31 = arith.mulf %2, %19 : vector<1x128xf32>
    %cst_18 = arith.constant 1.000000e+00 : f32
    %32 = vector.broadcast %cst_18 : f32 to vector<1x128xf32>
    %33 = arith.mulf %32, %20 : vector<1x128xf32>
    %34 = arith.mulf %10, %33 : vector<1x128xf32>
    %35 = arith.subf %31, %34 : vector<1x128xf32>
    %cst_19 = arith.constant 1.000000e+00 : f32
    %36 = vector.broadcast %cst_19 : f32 to vector<1x128xf32>
    %37 = arith.mulf %36, %20 : vector<1x128xf32>
    %38 = arith.mulf %2, %37 : vector<1x128xf32>
    %39 = arith.mulf %10, %19 : vector<1x128xf32>
    %40 = arith.addf %38, %39 : vector<1x128xf32>
    %41 = arith.mulf %4, %19 : vector<1x128xf32>
    %cst_20 = arith.constant -1.000000e+00 : f32
    %42 = vector.broadcast %cst_20 : f32 to vector<1x128xf32>
    %43 = arith.mulf %42, %20 : vector<1x128xf32>
    %44 = arith.mulf %12, %43 : vector<1x128xf32>
    %45 = arith.subf %41, %44 : vector<1x128xf32>
    %cst_21 = arith.constant -1.000000e+00 : f32
    %46 = vector.broadcast %cst_21 : f32 to vector<1x128xf32>
    %47 = arith.mulf %46, %20 : vector<1x128xf32>
    %48 = arith.mulf %4, %47 : vector<1x128xf32>
    %49 = arith.mulf %12, %19 : vector<1x128xf32>
    %50 = arith.addf %48, %49 : vector<1x128xf32>
    %51 = arith.mulf %6, %19 : vector<1x128xf32>
    %cst_22 = arith.constant 1.000000e+00 : f32
    %52 = vector.broadcast %cst_22 : f32 to vector<1x128xf32>
    %53 = arith.mulf %52, %20 : vector<1x128xf32>
    %54 = arith.mulf %14, %53 : vector<1x128xf32>
    %55 = arith.subf %51, %54 : vector<1x128xf32>
    %cst_23 = arith.constant 1.000000e+00 : f32
    %56 = vector.broadcast %cst_23 : f32 to vector<1x128xf32>
    %57 = arith.mulf %56, %20 : vector<1x128xf32>
    %58 = arith.mulf %6, %57 : vector<1x128xf32>
    %59 = arith.mulf %14, %19 : vector<1x128xf32>
    %60 = arith.addf %58, %59 : vector<1x128xf32>
    %c6 = arith.constant 6 : index
    %c0_24 = arith.constant 0 : index
    %61 = vector.load %arg1[%c6, %c0_24] : memref<8x128xf32, #tpu.memory_space<vmem>>, vector<1x128xf32>
    %cst_25 = arith.constant 5.000000e-01 : f32
    %62 = vector.broadcast %cst_25 : f32 to vector<1x128xf32>
    %63 = arith.mulf %61, %62 : vector<1x128xf32>
    %64 = math.cos %63 : vector<1x128xf32>
    %65 = math.sin %63 : vector<1x128xf32>
    %66 = arith.mulf %1, %64 : vector<1x128xf32>
    %cst_26 = arith.constant -1.000000e+00 : f32
    %67 = vector.broadcast %cst_26 : f32 to vector<1x128xf32>
    %68 = arith.mulf %67, %65 : vector<1x128xf32>
    %69 = arith.mulf %9, %68 : vector<1x128xf32>
    %70 = arith.subf %66, %69 : vector<1x128xf32>
    %cst_27 = arith.constant -1.000000e+00 : f32
    %71 = vector.broadcast %cst_27 : f32 to vector<1x128xf32>
    %72 = arith.mulf %71, %65 : vector<1x128xf32>
    %73 = arith.mulf %1, %72 : vector<1x128xf32>
    %74 = arith.mulf %9, %64 : vector<1x128xf32>
    %75 = arith.addf %73, %74 : vector<1x128xf32>
    %76 = arith.mulf %35, %64 : vector<1x128xf32>
    %cst_28 = arith.constant -1.000000e+00 : f32
    %77 = vector.broadcast %cst_28 : f32 to vector<1x128xf32>
    %78 = arith.mulf %77, %65 : vector<1x128xf32>
    %79 = arith.mulf %40, %78 : vector<1x128xf32>
    %80 = arith.subf %76, %79 : vector<1x128xf32>
    %cst_29 = arith.constant -1.000000e+00 : f32
    %81 = vector.broadcast %cst_29 : f32 to vector<1x128xf32>
    %82 = arith.mulf %81, %65 : vector<1x128xf32>
    %83 = arith.mulf %35, %82 : vector<1x128xf32>
    %84 = arith.mulf %40, %64 : vector<1x128xf32>
    %85 = arith.addf %83, %84 : vector<1x128xf32>
    %86 = arith.mulf %5, %64 : vector<1x128xf32>
    %cst_30 = arith.constant 1.000000e+00 : f32
    %87 = vector.broadcast %cst_30 : f32 to vector<1x128xf32>
    %88 = arith.mulf %87, %65 : vector<1x128xf32>
    %89 = arith.mulf %13, %88 : vector<1x128xf32>
    %90 = arith.subf %86, %89 : vector<1x128xf32>
    %cst_31 = arith.constant 1.000000e+00 : f32
    %91 = vector.broadcast %cst_31 : f32 to vector<1x128xf32>
    %92 = arith.mulf %91, %65 : vector<1x128xf32>
    %93 = arith.mulf %5, %92 : vector<1x128xf32>
    %94 = arith.mulf %13, %64 : vector<1x128xf32>
    %95 = arith.addf %93, %94 : vector<1x128xf32>
    %96 = arith.mulf %55, %64 : vector<1x128xf32>
    %cst_32 = arith.constant 1.000000e+00 : f32
    %97 = vector.broadcast %cst_32 : f32 to vector<1x128xf32>
    %98 = arith.mulf %97, %65 : vector<1x128xf32>
    %99 = arith.mulf %60, %98 : vector<1x128xf32>
    %100 = arith.subf %96, %99 : vector<1x128xf32>
    %cst_33 = arith.constant 1.000000e+00 : f32
    %101 = vector.broadcast %cst_33 : f32 to vector<1x128xf32>
    %102 = arith.mulf %101, %65 : vector<1x128xf32>
    %103 = arith.mulf %55, %102 : vector<1x128xf32>
    %104 = arith.mulf %60, %64 : vector<1x128xf32>
    %105 = arith.addf %103, %104 : vector<1x128xf32>
    %c3 = arith.constant 3 : index
    %c0_34 = arith.constant 0 : index
    %106 = vector.load %arg1[%c3, %c0_34] : memref<8x128xf32, #tpu.memory_space<vmem>>, vector<1x128xf32>
    %cst_35 = arith.constant 5.000000e-01 : f32
    %107 = vector.broadcast %cst_35 : f32 to vector<1x128xf32>
    %108 = arith.mulf %106, %107 : vector<1x128xf32>
    %109 = math.cos %108 : vector<1x128xf32>
    %110 = math.sin %108 : vector<1x128xf32>
    %111 = arith.mulf %109, %15 : vector<1x128xf32>
    %112 = arith.mulf %110, %3 : vector<1x128xf32>
    %113 = arith.subf %111, %112 : vector<1x128xf32>
    %114 = arith.mulf %109, %7 : vector<1x128xf32>
    %115 = arith.mulf %110, %11 : vector<1x128xf32>
    %116 = arith.subf %114, %115 : vector<1x128xf32>
    %117 = arith.mulf %110, %15 : vector<1x128xf32>
    %118 = arith.mulf %109, %3 : vector<1x128xf32>
    %119 = arith.addf %117, %118 : vector<1x128xf32>
    %120 = arith.mulf %110, %7 : vector<1x128xf32>
    %121 = arith.mulf %109, %11 : vector<1x128xf32>
    %122 = arith.addf %120, %121 : vector<1x128xf32>
    %123 = arith.mulf %109, %25 : vector<1x128xf32>
    %124 = arith.mulf %110, %45 : vector<1x128xf32>
    %125 = arith.subf %123, %124 : vector<1x128xf32>
    %126 = arith.mulf %109, %30 : vector<1x128xf32>
    %127 = arith.mulf %110, %50 : vector<1x128xf32>
    %128 = arith.subf %126, %127 : vector<1x128xf32>
    %129 = arith.mulf %110, %25 : vector<1x128xf32>
    %130 = arith.mulf %109, %45 : vector<1x128xf32>
    %131 = arith.addf %129, %130 : vector<1x128xf32>
    %132 = arith.mulf %110, %30 : vector<1x128xf32>
    %133 = arith.mulf %109, %50 : vector<1x128xf32>
    %134 = arith.addf %132, %133 : vector<1x128xf32>
    %135 = arith.mulf %109, %70 : vector<1x128xf32>
    %136 = arith.mulf %110, %90 : vector<1x128xf32>
    %137 = arith.subf %135, %136 : vector<1x128xf32>
    %138 = arith.mulf %109, %75 : vector<1x128xf32>
    %139 = arith.mulf %110, %95 : vector<1x128xf32>
    %140 = arith.subf %138, %139 : vector<1x128xf32>
    %141 = arith.mulf %110, %70 : vector<1x128xf32>
    %142 = arith.mulf %109, %90 : vector<1x128xf32>
    %143 = arith.addf %141, %142 : vector<1x128xf32>
    %144 = arith.mulf %110, %75 : vector<1x128xf32>
    %145 = arith.mulf %109, %95 : vector<1x128xf32>
    %146 = arith.addf %144, %145 : vector<1x128xf32>
    %147 = arith.mulf %109, %80 : vector<1x128xf32>
    %148 = arith.mulf %110, %100 : vector<1x128xf32>
    %149 = arith.subf %147, %148 : vector<1x128xf32>
    %150 = arith.mulf %109, %85 : vector<1x128xf32>
    %151 = arith.mulf %110, %105 : vector<1x128xf32>
    %152 = arith.subf %150, %151 : vector<1x128xf32>
    %153 = arith.mulf %110, %80 : vector<1x128xf32>
    %154 = arith.mulf %109, %100 : vector<1x128xf32>
    %155 = arith.addf %153, %154 : vector<1x128xf32>
    %156 = arith.mulf %110, %85 : vector<1x128xf32>
    %157 = arith.mulf %109, %105 : vector<1x128xf32>
    %158 = arith.addf %156, %157 : vector<1x128xf32>
    %c4 = arith.constant 4 : index
    %c0_36 = arith.constant 0 : index
    %159 = vector.load %arg1[%c4, %c0_36] : memref<8x128xf32, #tpu.memory_space<vmem>>, vector<1x128xf32>
    %cst_37 = arith.constant 5.000000e-01 : f32
    %160 = vector.broadcast %cst_37 : f32 to vector<1x128xf32>
    %161 = arith.mulf %159, %160 : vector<1x128xf32>
    %162 = math.cos %161 : vector<1x128xf32>
    %163 = math.sin %161 : vector<1x128xf32>
    %164 = arith.mulf %162, %113 : vector<1x128xf32>
    %165 = arith.mulf %163, %137 : vector<1x128xf32>
    %166 = arith.subf %164, %165 : vector<1x128xf32>
    %167 = arith.mulf %162, %116 : vector<1x128xf32>
    %168 = arith.mulf %163, %140 : vector<1x128xf32>
    %169 = arith.subf %167, %168 : vector<1x128xf32>
    %170 = arith.mulf %163, %113 : vector<1x128xf32>
    %171 = arith.mulf %162, %137 : vector<1x128xf32>
    %172 = arith.addf %170, %171 : vector<1x128xf32>
    %173 = arith.mulf %163, %116 : vector<1x128xf32>
    %174 = arith.mulf %162, %140 : vector<1x128xf32>
    %175 = arith.addf %173, %174 : vector<1x128xf32>
    %176 = arith.mulf %162, %125 : vector<1x128xf32>
    %177 = arith.mulf %163, %149 : vector<1x128xf32>
    %178 = arith.subf %176, %177 : vector<1x128xf32>
    %179 = arith.mulf %162, %128 : vector<1x128xf32>
    %180 = arith.mulf %163, %152 : vector<1x128xf32>
    %181 = arith.subf %179, %180 : vector<1x128xf32>
    %182 = arith.mulf %163, %125 : vector<1x128xf32>
    %183 = arith.mulf %162, %149 : vector<1x128xf32>
    %184 = arith.addf %182, %183 : vector<1x128xf32>
    %185 = arith.mulf %163, %128 : vector<1x128xf32>
    %186 = arith.mulf %162, %152 : vector<1x128xf32>
    %187 = arith.addf %185, %186 : vector<1x128xf32>
    %188 = arith.mulf %162, %119 : vector<1x128xf32>
    %189 = arith.mulf %163, %143 : vector<1x128xf32>
    %190 = arith.subf %188, %189 : vector<1x128xf32>
    %191 = arith.mulf %162, %122 : vector<1x128xf32>
    %192 = arith.mulf %163, %146 : vector<1x128xf32>
    %193 = arith.subf %191, %192 : vector<1x128xf32>
    %194 = arith.mulf %163, %119 : vector<1x128xf32>
    %195 = arith.mulf %162, %143 : vector<1x128xf32>
    %196 = arith.addf %194, %195 : vector<1x128xf32>
    %197 = arith.mulf %163, %122 : vector<1x128xf32>
    %198 = arith.mulf %162, %146 : vector<1x128xf32>
    %199 = arith.addf %197, %198 : vector<1x128xf32>
    %200 = arith.mulf %162, %131 : vector<1x128xf32>
    %201 = arith.mulf %163, %155 : vector<1x128xf32>
    %202 = arith.subf %200, %201 : vector<1x128xf32>
    %203 = arith.mulf %162, %134 : vector<1x128xf32>
    %204 = arith.mulf %163, %158 : vector<1x128xf32>
    %205 = arith.subf %203, %204 : vector<1x128xf32>
    %206 = arith.mulf %163, %131 : vector<1x128xf32>
    %207 = arith.mulf %162, %155 : vector<1x128xf32>
    %208 = arith.addf %206, %207 : vector<1x128xf32>
    %209 = arith.mulf %163, %134 : vector<1x128xf32>
    %210 = arith.mulf %162, %158 : vector<1x128xf32>
    %211 = arith.addf %209, %210 : vector<1x128xf32>
    %c5 = arith.constant 5 : index
    %c0_38 = arith.constant 0 : index
    %212 = vector.load %arg1[%c5, %c0_38] : memref<8x128xf32, #tpu.memory_space<vmem>>, vector<1x128xf32>
    %cst_39 = arith.constant 5.000000e-01 : f32
    %213 = vector.broadcast %cst_39 : f32 to vector<1x128xf32>
    %214 = arith.mulf %212, %213 : vector<1x128xf32>
    %215 = math.cos %214 : vector<1x128xf32>
    %216 = math.sin %214 : vector<1x128xf32>
    %217 = arith.mulf %215, %166 : vector<1x128xf32>
    %218 = arith.mulf %216, %178 : vector<1x128xf32>
    %219 = arith.subf %217, %218 : vector<1x128xf32>
    %220 = arith.mulf %215, %169 : vector<1x128xf32>
    %221 = arith.mulf %216, %181 : vector<1x128xf32>
    %222 = arith.subf %220, %221 : vector<1x128xf32>
    %223 = arith.mulf %216, %166 : vector<1x128xf32>
    %224 = arith.mulf %215, %178 : vector<1x128xf32>
    %225 = arith.addf %223, %224 : vector<1x128xf32>
    %226 = arith.mulf %216, %169 : vector<1x128xf32>
    %227 = arith.mulf %215, %181 : vector<1x128xf32>
    %228 = arith.addf %226, %227 : vector<1x128xf32>
    %229 = arith.mulf %215, %172 : vector<1x128xf32>
    %230 = arith.mulf %216, %184 : vector<1x128xf32>
    %231 = arith.subf %229, %230 : vector<1x128xf32>
    %232 = arith.mulf %215, %175 : vector<1x128xf32>
    %233 = arith.mulf %216, %187 : vector<1x128xf32>
    %234 = arith.subf %232, %233 : vector<1x128xf32>
    %235 = arith.mulf %216, %172 : vector<1x128xf32>
    %236 = arith.mulf %215, %184 : vector<1x128xf32>
    %237 = arith.addf %235, %236 : vector<1x128xf32>
    %238 = arith.mulf %216, %175 : vector<1x128xf32>
    %239 = arith.mulf %215, %187 : vector<1x128xf32>
    %240 = arith.addf %238, %239 : vector<1x128xf32>
    %241 = arith.mulf %215, %190 : vector<1x128xf32>
    %242 = arith.mulf %216, %202 : vector<1x128xf32>
    %243 = arith.subf %241, %242 : vector<1x128xf32>
    %244 = arith.mulf %215, %193 : vector<1x128xf32>
    %245 = arith.mulf %216, %205 : vector<1x128xf32>
    %246 = arith.subf %244, %245 : vector<1x128xf32>
    %247 = arith.mulf %216, %190 : vector<1x128xf32>
    %248 = arith.mulf %215, %202 : vector<1x128xf32>
    %249 = arith.addf %247, %248 : vector<1x128xf32>
    %250 = arith.mulf %216, %193 : vector<1x128xf32>
    %251 = arith.mulf %215, %205 : vector<1x128xf32>
    %252 = arith.addf %250, %251 : vector<1x128xf32>
    %253 = arith.mulf %215, %196 : vector<1x128xf32>
    %254 = arith.mulf %216, %208 : vector<1x128xf32>
    %255 = arith.subf %253, %254 : vector<1x128xf32>
    %256 = arith.mulf %215, %199 : vector<1x128xf32>
    %257 = arith.mulf %216, %211 : vector<1x128xf32>
    %258 = arith.subf %256, %257 : vector<1x128xf32>
    %259 = arith.mulf %216, %196 : vector<1x128xf32>
    %260 = arith.mulf %215, %208 : vector<1x128xf32>
    %261 = arith.addf %259, %260 : vector<1x128xf32>
    %262 = arith.mulf %216, %199 : vector<1x128xf32>
    %263 = arith.mulf %215, %211 : vector<1x128xf32>
    %264 = arith.addf %262, %263 : vector<1x128xf32>
    %c1 = arith.constant 1 : index
    %c0_40 = arith.constant 0 : index
    %265 = vector.load %arg1[%c1, %c0_40] : memref<8x128xf32, #tpu.memory_space<vmem>>, vector<1x128xf32>
    %cst_41 = arith.constant 5.000000e-01 : f32
    %266 = vector.broadcast %cst_41 : f32 to vector<1x128xf32>
    %267 = arith.mulf %265, %266 : vector<1x128xf32>
    %268 = math.cos %267 : vector<1x128xf32>
    %269 = math.sin %267 : vector<1x128xf32>
    %270 = arith.mulf %219, %268 : vector<1x128xf32>
    %cst_42 = arith.constant -1.000000e+00 : f32
    %271 = vector.broadcast %cst_42 : f32 to vector<1x128xf32>
    %272 = arith.mulf %271, %269 : vector<1x128xf32>
    %273 = arith.mulf %222, %272 : vector<1x128xf32>
    %274 = arith.subf %270, %273 : vector<1x128xf32>
    %cst_43 = arith.constant -1.000000e+00 : f32
    %275 = vector.broadcast %cst_43 : f32 to vector<1x128xf32>
    %276 = arith.mulf %275, %269 : vector<1x128xf32>
    %277 = arith.mulf %219, %276 : vector<1x128xf32>
    %278 = arith.mulf %222, %268 : vector<1x128xf32>
    %279 = arith.addf %277, %278 : vector<1x128xf32>
    %280 = arith.mulf %225, %268 : vector<1x128xf32>
    %cst_44 = arith.constant -1.000000e+00 : f32
    %281 = vector.broadcast %cst_44 : f32 to vector<1x128xf32>
    %282 = arith.mulf %281, %269 : vector<1x128xf32>
    %283 = arith.mulf %228, %282 : vector<1x128xf32>
    %284 = arith.subf %280, %283 : vector<1x128xf32>
    %cst_45 = arith.constant -1.000000e+00 : f32
    %285 = vector.broadcast %cst_45 : f32 to vector<1x128xf32>
    %286 = arith.mulf %285, %269 : vector<1x128xf32>
    %287 = arith.mulf %225, %286 : vector<1x128xf32>
    %288 = arith.mulf %228, %268 : vector<1x128xf32>
    %289 = arith.addf %287, %288 : vector<1x128xf32>
    %290 = arith.mulf %231, %268 : vector<1x128xf32>
    %cst_46 = arith.constant -1.000000e+00 : f32
    %291 = vector.broadcast %cst_46 : f32 to vector<1x128xf32>
    %292 = arith.mulf %291, %269 : vector<1x128xf32>
    %293 = arith.mulf %234, %292 : vector<1x128xf32>
    %294 = arith.subf %290, %293 : vector<1x128xf32>
    %cst_47 = arith.constant -1.000000e+00 : f32
    %295 = vector.broadcast %cst_47 : f32 to vector<1x128xf32>
    %296 = arith.mulf %295, %269 : vector<1x128xf32>
    %297 = arith.mulf %231, %296 : vector<1x128xf32>
    %298 = arith.mulf %234, %268 : vector<1x128xf32>
    %299 = arith.addf %297, %298 : vector<1x128xf32>
    %300 = arith.mulf %237, %268 : vector<1x128xf32>
    %cst_48 = arith.constant -1.000000e+00 : f32
    %301 = vector.broadcast %cst_48 : f32 to vector<1x128xf32>
    %302 = arith.mulf %301, %269 : vector<1x128xf32>
    %303 = arith.mulf %240, %302 : vector<1x128xf32>
    %304 = arith.subf %300, %303 : vector<1x128xf32>
    %cst_49 = arith.constant -1.000000e+00 : f32
    %305 = vector.broadcast %cst_49 : f32 to vector<1x128xf32>
    %306 = arith.mulf %305, %269 : vector<1x128xf32>
    %307 = arith.mulf %237, %306 : vector<1x128xf32>
    %308 = arith.mulf %240, %268 : vector<1x128xf32>
    %309 = arith.addf %307, %308 : vector<1x128xf32>
    %310 = arith.mulf %243, %268 : vector<1x128xf32>
    %cst_50 = arith.constant 1.000000e+00 : f32
    %311 = vector.broadcast %cst_50 : f32 to vector<1x128xf32>
    %312 = arith.mulf %311, %269 : vector<1x128xf32>
    %313 = arith.mulf %246, %312 : vector<1x128xf32>
    %314 = arith.subf %310, %313 : vector<1x128xf32>
    %cst_51 = arith.constant 1.000000e+00 : f32
    %315 = vector.broadcast %cst_51 : f32 to vector<1x128xf32>
    %316 = arith.mulf %315, %269 : vector<1x128xf32>
    %317 = arith.mulf %243, %316 : vector<1x128xf32>
    %318 = arith.mulf %246, %268 : vector<1x128xf32>
    %319 = arith.addf %317, %318 : vector<1x128xf32>
    %320 = arith.mulf %249, %268 : vector<1x128xf32>
    %cst_52 = arith.constant 1.000000e+00 : f32
    %321 = vector.broadcast %cst_52 : f32 to vector<1x128xf32>
    %322 = arith.mulf %321, %269 : vector<1x128xf32>
    %323 = arith.mulf %252, %322 : vector<1x128xf32>
    %324 = arith.subf %320, %323 : vector<1x128xf32>
    %cst_53 = arith.constant 1.000000e+00 : f32
    %325 = vector.broadcast %cst_53 : f32 to vector<1x128xf32>
    %326 = arith.mulf %325, %269 : vector<1x128xf32>
    %327 = arith.mulf %249, %326 : vector<1x128xf32>
    %328 = arith.mulf %252, %268 : vector<1x128xf32>
    %329 = arith.addf %327, %328 : vector<1x128xf32>
    %330 = arith.mulf %255, %268 : vector<1x128xf32>
    %cst_54 = arith.constant 1.000000e+00 : f32
    %331 = vector.broadcast %cst_54 : f32 to vector<1x128xf32>
    %332 = arith.mulf %331, %269 : vector<1x128xf32>
    %333 = arith.mulf %258, %332 : vector<1x128xf32>
    %334 = arith.subf %330, %333 : vector<1x128xf32>
    %cst_55 = arith.constant 1.000000e+00 : f32
    %335 = vector.broadcast %cst_55 : f32 to vector<1x128xf32>
    %336 = arith.mulf %335, %269 : vector<1x128xf32>
    %337 = arith.mulf %255, %336 : vector<1x128xf32>
    %338 = arith.mulf %258, %268 : vector<1x128xf32>
    %339 = arith.addf %337, %338 : vector<1x128xf32>
    %340 = arith.mulf %261, %268 : vector<1x128xf32>
    %cst_56 = arith.constant 1.000000e+00 : f32
    %341 = vector.broadcast %cst_56 : f32 to vector<1x128xf32>
    %342 = arith.mulf %341, %269 : vector<1x128xf32>
    %343 = arith.mulf %264, %342 : vector<1x128xf32>
    %344 = arith.subf %340, %343 : vector<1x128xf32>
    %cst_57 = arith.constant 1.000000e+00 : f32
    %345 = vector.broadcast %cst_57 : f32 to vector<1x128xf32>
    %346 = arith.mulf %345, %269 : vector<1x128xf32>
    %347 = arith.mulf %261, %346 : vector<1x128xf32>
    %348 = arith.mulf %264, %268 : vector<1x128xf32>
    %349 = arith.addf %347, %348 : vector<1x128xf32>
    %c1_58 = arith.constant 1 : index
    %c0_59 = arith.constant 0 : index
    %350 = vector.load %arg1[%c1_58, %c0_59] : memref<8x128xf32, #tpu.memory_space<vmem>>, vector<1x128xf32>
    %cst_60 = arith.constant 5.000000e-01 : f32
    %351 = vector.broadcast %cst_60 : f32 to vector<1x128xf32>
    %352 = arith.mulf %350, %351 : vector<1x128xf32>
    %353 = math.cos %352 : vector<1x128xf32>
    %354 = math.sin %352 : vector<1x128xf32>
    %355 = arith.mulf %274, %353 : vector<1x128xf32>
    %cst_61 = arith.constant -1.000000e+00 : f32
    %356 = vector.broadcast %cst_61 : f32 to vector<1x128xf32>
    %357 = arith.mulf %356, %354 : vector<1x128xf32>
    %358 = arith.mulf %279, %357 : vector<1x128xf32>
    %359 = arith.subf %355, %358 : vector<1x128xf32>
    %cst_62 = arith.constant -1.000000e+00 : f32
    %360 = vector.broadcast %cst_62 : f32 to vector<1x128xf32>
    %361 = arith.mulf %360, %354 : vector<1x128xf32>
    %362 = arith.mulf %274, %361 : vector<1x128xf32>
    %363 = arith.mulf %279, %353 : vector<1x128xf32>
    %364 = arith.addf %362, %363 : vector<1x128xf32>
    %365 = arith.mulf %284, %353 : vector<1x128xf32>
    %cst_63 = arith.constant -1.000000e+00 : f32
    %366 = vector.broadcast %cst_63 : f32 to vector<1x128xf32>
    %367 = arith.mulf %366, %354 : vector<1x128xf32>
    %368 = arith.mulf %289, %367 : vector<1x128xf32>
    %369 = arith.subf %365, %368 : vector<1x128xf32>
    %cst_64 = arith.constant -1.000000e+00 : f32
    %370 = vector.broadcast %cst_64 : f32 to vector<1x128xf32>
    %371 = arith.mulf %370, %354 : vector<1x128xf32>
    %372 = arith.mulf %284, %371 : vector<1x128xf32>
    %373 = arith.mulf %289, %353 : vector<1x128xf32>
    %374 = arith.addf %372, %373 : vector<1x128xf32>
    %375 = arith.mulf %294, %353 : vector<1x128xf32>
    %cst_65 = arith.constant 1.000000e+00 : f32
    %376 = vector.broadcast %cst_65 : f32 to vector<1x128xf32>
    %377 = arith.mulf %376, %354 : vector<1x128xf32>
    %378 = arith.mulf %299, %377 : vector<1x128xf32>
    %379 = arith.subf %375, %378 : vector<1x128xf32>
    %cst_66 = arith.constant 1.000000e+00 : f32
    %380 = vector.broadcast %cst_66 : f32 to vector<1x128xf32>
    %381 = arith.mulf %380, %354 : vector<1x128xf32>
    %382 = arith.mulf %294, %381 : vector<1x128xf32>
    %383 = arith.mulf %299, %353 : vector<1x128xf32>
    %384 = arith.addf %382, %383 : vector<1x128xf32>
    %385 = arith.mulf %304, %353 : vector<1x128xf32>
    %cst_67 = arith.constant 1.000000e+00 : f32
    %386 = vector.broadcast %cst_67 : f32 to vector<1x128xf32>
    %387 = arith.mulf %386, %354 : vector<1x128xf32>
    %388 = arith.mulf %309, %387 : vector<1x128xf32>
    %389 = arith.subf %385, %388 : vector<1x128xf32>
    %cst_68 = arith.constant 1.000000e+00 : f32
    %390 = vector.broadcast %cst_68 : f32 to vector<1x128xf32>
    %391 = arith.mulf %390, %354 : vector<1x128xf32>
    %392 = arith.mulf %304, %391 : vector<1x128xf32>
    %393 = arith.mulf %309, %353 : vector<1x128xf32>
    %394 = arith.addf %392, %393 : vector<1x128xf32>
    %395 = arith.mulf %314, %353 : vector<1x128xf32>
    %cst_69 = arith.constant -1.000000e+00 : f32
    %396 = vector.broadcast %cst_69 : f32 to vector<1x128xf32>
    %397 = arith.mulf %396, %354 : vector<1x128xf32>
    %398 = arith.mulf %319, %397 : vector<1x128xf32>
    %399 = arith.subf %395, %398 : vector<1x128xf32>
    %cst_70 = arith.constant -1.000000e+00 : f32
    %400 = vector.broadcast %cst_70 : f32 to vector<1x128xf32>
    %401 = arith.mulf %400, %354 : vector<1x128xf32>
    %402 = arith.mulf %314, %401 : vector<1x128xf32>
    %403 = arith.mulf %319, %353 : vector<1x128xf32>
    %404 = arith.addf %402, %403 : vector<1x128xf32>
    %405 = arith.mulf %324, %353 : vector<1x128xf32>
    %cst_71 = arith.constant -1.000000e+00 : f32
    %406 = vector.broadcast %cst_71 : f32 to vector<1x128xf32>
    %407 = arith.mulf %406, %354 : vector<1x128xf32>
    %408 = arith.mulf %329, %407 : vector<1x128xf32>
    %409 = arith.subf %405, %408 : vector<1x128xf32>
    %cst_72 = arith.constant -1.000000e+00 : f32
    %410 = vector.broadcast %cst_72 : f32 to vector<1x128xf32>
    %411 = arith.mulf %410, %354 : vector<1x128xf32>
    %412 = arith.mulf %324, %411 : vector<1x128xf32>
    %413 = arith.mulf %329, %353 : vector<1x128xf32>
    %414 = arith.addf %412, %413 : vector<1x128xf32>
    %415 = arith.mulf %334, %353 : vector<1x128xf32>
    %cst_73 = arith.constant 1.000000e+00 : f32
    %416 = vector.broadcast %cst_73 : f32 to vector<1x128xf32>
    %417 = arith.mulf %416, %354 : vector<1x128xf32>
    %418 = arith.mulf %339, %417 : vector<1x128xf32>
    %419 = arith.subf %415, %418 : vector<1x128xf32>
    %cst_74 = arith.constant 1.000000e+00 : f32
    %420 = vector.broadcast %cst_74 : f32 to vector<1x128xf32>
    %421 = arith.mulf %420, %354 : vector<1x128xf32>
    %422 = arith.mulf %334, %421 : vector<1x128xf32>
    %423 = arith.mulf %339, %353 : vector<1x128xf32>
    %424 = arith.addf %422, %423 : vector<1x128xf32>
    %425 = arith.mulf %344, %353 : vector<1x128xf32>
    %cst_75 = arith.constant 1.000000e+00 : f32
    %426 = vector.broadcast %cst_75 : f32 to vector<1x128xf32>
    %427 = arith.mulf %426, %354 : vector<1x128xf32>
    %428 = arith.mulf %349, %427 : vector<1x128xf32>
    %429 = arith.subf %425, %428 : vector<1x128xf32>
    %cst_76 = arith.constant 1.000000e+00 : f32
    %430 = vector.broadcast %cst_76 : f32 to vector<1x128xf32>
    %431 = arith.mulf %430, %354 : vector<1x128xf32>
    %432 = arith.mulf %344, %431 : vector<1x128xf32>
    %433 = arith.mulf %349, %353 : vector<1x128xf32>
    %434 = arith.addf %432, %433 : vector<1x128xf32>
    %c2 = arith.constant 2 : index
    %c0_77 = arith.constant 0 : index
    %435 = vector.load %arg1[%c2, %c0_77] : memref<8x128xf32, #tpu.memory_space<vmem>>, vector<1x128xf32>
    %cst_78 = arith.constant 5.000000e-01 : f32
    %436 = vector.broadcast %cst_78 : f32 to vector<1x128xf32>
    %437 = arith.mulf %435, %436 : vector<1x128xf32>
    %438 = math.cos %437 : vector<1x128xf32>
    %439 = math.sin %437 : vector<1x128xf32>
    %440 = arith.mulf %359, %438 : vector<1x128xf32>
    %cst_79 = arith.constant -1.000000e+00 : f32
    %441 = vector.broadcast %cst_79 : f32 to vector<1x128xf32>
    %442 = arith.mulf %441, %439 : vector<1x128xf32>
    %443 = arith.mulf %364, %442 : vector<1x128xf32>
    %444 = arith.subf %440, %443 : vector<1x128xf32>
    %cst_80 = arith.constant -1.000000e+00 : f32
    %445 = vector.broadcast %cst_80 : f32 to vector<1x128xf32>
    %446 = arith.mulf %445, %439 : vector<1x128xf32>
    %447 = arith.mulf %359, %446 : vector<1x128xf32>
    %448 = arith.mulf %364, %438 : vector<1x128xf32>
    %449 = arith.addf %447, %448 : vector<1x128xf32>
    %450 = arith.mulf %369, %438 : vector<1x128xf32>
    %cst_81 = arith.constant 1.000000e+00 : f32
    %451 = vector.broadcast %cst_81 : f32 to vector<1x128xf32>
    %452 = arith.mulf %451, %439 : vector<1x128xf32>
    %453 = arith.mulf %374, %452 : vector<1x128xf32>
    %454 = arith.subf %450, %453 : vector<1x128xf32>
    %cst_82 = arith.constant 1.000000e+00 : f32
    %455 = vector.broadcast %cst_82 : f32 to vector<1x128xf32>
    %456 = arith.mulf %455, %439 : vector<1x128xf32>
    %457 = arith.mulf %369, %456 : vector<1x128xf32>
    %458 = arith.mulf %374, %438 : vector<1x128xf32>
    %459 = arith.addf %457, %458 : vector<1x128xf32>
    %460 = arith.mulf %379, %438 : vector<1x128xf32>
    %cst_83 = arith.constant -1.000000e+00 : f32
    %461 = vector.broadcast %cst_83 : f32 to vector<1x128xf32>
    %462 = arith.mulf %461, %439 : vector<1x128xf32>
    %463 = arith.mulf %384, %462 : vector<1x128xf32>
    %464 = arith.subf %460, %463 : vector<1x128xf32>
    %cst_84 = arith.constant -1.000000e+00 : f32
    %465 = vector.broadcast %cst_84 : f32 to vector<1x128xf32>
    %466 = arith.mulf %465, %439 : vector<1x128xf32>
    %467 = arith.mulf %379, %466 : vector<1x128xf32>
    %468 = arith.mulf %384, %438 : vector<1x128xf32>
    %469 = arith.addf %467, %468 : vector<1x128xf32>
    %470 = arith.mulf %389, %438 : vector<1x128xf32>
    %cst_85 = arith.constant 1.000000e+00 : f32
    %471 = vector.broadcast %cst_85 : f32 to vector<1x128xf32>
    %472 = arith.mulf %471, %439 : vector<1x128xf32>
    %473 = arith.mulf %394, %472 : vector<1x128xf32>
    %474 = arith.subf %470, %473 : vector<1x128xf32>
    %cst_86 = arith.constant 1.000000e+00 : f32
    %475 = vector.broadcast %cst_86 : f32 to vector<1x128xf32>
    %476 = arith.mulf %475, %439 : vector<1x128xf32>
    %477 = arith.mulf %389, %476 : vector<1x128xf32>
    %478 = arith.mulf %394, %438 : vector<1x128xf32>
    %479 = arith.addf %477, %478 : vector<1x128xf32>
    %480 = arith.mulf %399, %438 : vector<1x128xf32>
    %cst_87 = arith.constant -1.000000e+00 : f32
    %481 = vector.broadcast %cst_87 : f32 to vector<1x128xf32>
    %482 = arith.mulf %481, %439 : vector<1x128xf32>
    %483 = arith.mulf %404, %482 : vector<1x128xf32>
    %484 = arith.subf %480, %483 : vector<1x128xf32>
    %cst_88 = arith.constant -1.000000e+00 : f32
    %485 = vector.broadcast %cst_88 : f32 to vector<1x128xf32>
    %486 = arith.mulf %485, %439 : vector<1x128xf32>
    %487 = arith.mulf %399, %486 : vector<1x128xf32>
    %488 = arith.mulf %404, %438 : vector<1x128xf32>
    %489 = arith.addf %487, %488 : vector<1x128xf32>
    %490 = arith.mulf %409, %438 : vector<1x128xf32>
    %cst_89 = arith.constant 1.000000e+00 : f32
    %491 = vector.broadcast %cst_89 : f32 to vector<1x128xf32>
    %492 = arith.mulf %491, %439 : vector<1x128xf32>
    %493 = arith.mulf %414, %492 : vector<1x128xf32>
    %494 = arith.subf %490, %493 : vector<1x128xf32>
    %cst_90 = arith.constant 1.000000e+00 : f32
    %495 = vector.broadcast %cst_90 : f32 to vector<1x128xf32>
    %496 = arith.mulf %495, %439 : vector<1x128xf32>
    %497 = arith.mulf %409, %496 : vector<1x128xf32>
    %498 = arith.mulf %414, %438 : vector<1x128xf32>
    %499 = arith.addf %497, %498 : vector<1x128xf32>
    %500 = arith.mulf %419, %438 : vector<1x128xf32>
    %cst_91 = arith.constant -1.000000e+00 : f32
    %501 = vector.broadcast %cst_91 : f32 to vector<1x128xf32>
    %502 = arith.mulf %501, %439 : vector<1x128xf32>
    %503 = arith.mulf %424, %502 : vector<1x128xf32>
    %504 = arith.subf %500, %503 : vector<1x128xf32>
    %cst_92 = arith.constant -1.000000e+00 : f32
    %505 = vector.broadcast %cst_92 : f32 to vector<1x128xf32>
    %506 = arith.mulf %505, %439 : vector<1x128xf32>
    %507 = arith.mulf %419, %506 : vector<1x128xf32>
    %508 = arith.mulf %424, %438 : vector<1x128xf32>
    %509 = arith.addf %507, %508 : vector<1x128xf32>
    %510 = arith.mulf %429, %438 : vector<1x128xf32>
    %cst_93 = arith.constant 1.000000e+00 : f32
    %511 = vector.broadcast %cst_93 : f32 to vector<1x128xf32>
    %512 = arith.mulf %511, %439 : vector<1x128xf32>
    %513 = arith.mulf %434, %512 : vector<1x128xf32>
    %514 = arith.subf %510, %513 : vector<1x128xf32>
    %cst_94 = arith.constant 1.000000e+00 : f32
    %515 = vector.broadcast %cst_94 : f32 to vector<1x128xf32>
    %516 = arith.mulf %515, %439 : vector<1x128xf32>
    %517 = arith.mulf %429, %516 : vector<1x128xf32>
    %518 = arith.mulf %434, %438 : vector<1x128xf32>
    %519 = arith.addf %517, %518 : vector<1x128xf32>
    %cst_95 = arith.constant 0.000000e+00 : f32
    %520 = vector.broadcast %cst_95 : f32 to vector<1x128xf32>
    %cst_96 = arith.constant 0.000000e+00 : f32
    %521 = vector.broadcast %cst_96 : f32 to vector<1x128xf32>
    %cst_97 = arith.constant 0.000000e+00 : f32
    %522 = vector.broadcast %cst_97 : f32 to vector<1x128xf32>
    %cst_98 = arith.constant 0.000000e+00 : f32
    %523 = vector.broadcast %cst_98 : f32 to vector<1x128xf32>
    %cst_99 = arith.constant 0.000000e+00 : f32
    %524 = vector.broadcast %cst_99 : f32 to vector<1x128xf32>
    %cst_100 = arith.constant 0.000000e+00 : f32
    %525 = vector.broadcast %cst_100 : f32 to vector<1x128xf32>
    %cst_101 = arith.constant 0.000000e+00 : f32
    %526 = vector.broadcast %cst_101 : f32 to vector<1x128xf32>
    %cst_102 = arith.constant 0.000000e+00 : f32
    %527 = vector.broadcast %cst_102 : f32 to vector<1x128xf32>
    %cst_103 = arith.constant 0.000000e+00 : f32
    %528 = vector.broadcast %cst_103 : f32 to vector<1x128xf32>
    %cst_104 = arith.constant 0.000000e+00 : f32
    %529 = vector.broadcast %cst_104 : f32 to vector<1x128xf32>
    %cst_105 = arith.constant 0.000000e+00 : f32
    %530 = vector.broadcast %cst_105 : f32 to vector<1x128xf32>
    %cst_106 = arith.constant 0.000000e+00 : f32
    %531 = vector.broadcast %cst_106 : f32 to vector<1x128xf32>
    %cst_107 = arith.constant 0.000000e+00 : f32
    %532 = vector.broadcast %cst_107 : f32 to vector<1x128xf32>
    %cst_108 = arith.constant 0.000000e+00 : f32
    %533 = vector.broadcast %cst_108 : f32 to vector<1x128xf32>
    %cst_109 = arith.constant 0.000000e+00 : f32
    %534 = vector.broadcast %cst_109 : f32 to vector<1x128xf32>
    %cst_110 = arith.constant 1.000000e+00 : f32
    %535 = vector.broadcast %cst_110 : f32 to vector<1x128xf32>
    %c7_111 = arith.constant 7 : index
    %c0_112 = arith.constant 0 : index
    %536 = vector.load %arg2[%c7_111, %c0_112] : memref<8x128xf32, #tpu.memory_space<vmem>>, vector<1x128xf32>
    %cst_113 = arith.constant 5.000000e-01 : f32
    %537 = vector.broadcast %cst_113 : f32 to vector<1x128xf32>
    %538 = arith.mulf %536, %537 : vector<1x128xf32>
    %539 = math.cos %538 : vector<1x128xf32>
    %540 = math.sin %538 : vector<1x128xf32>
    %541 = arith.mulf %520, %539 : vector<1x128xf32>
    %cst_114 = arith.constant -1.000000e+00 : f32
    %542 = vector.broadcast %cst_114 : f32 to vector<1x128xf32>
    %543 = arith.mulf %542, %540 : vector<1x128xf32>
    %544 = arith.mulf %528, %543 : vector<1x128xf32>
    %545 = arith.subf %541, %544 : vector<1x128xf32>
    %cst_115 = arith.constant -1.000000e+00 : f32
    %546 = vector.broadcast %cst_115 : f32 to vector<1x128xf32>
    %547 = arith.mulf %546, %540 : vector<1x128xf32>
    %548 = arith.mulf %520, %547 : vector<1x128xf32>
    %549 = arith.mulf %528, %539 : vector<1x128xf32>
    %550 = arith.addf %548, %549 : vector<1x128xf32>
    %551 = arith.mulf %522, %539 : vector<1x128xf32>
    %cst_116 = arith.constant 1.000000e+00 : f32
    %552 = vector.broadcast %cst_116 : f32 to vector<1x128xf32>
    %553 = arith.mulf %552, %540 : vector<1x128xf32>
    %554 = arith.mulf %530, %553 : vector<1x128xf32>
    %555 = arith.subf %551, %554 : vector<1x128xf32>
    %cst_117 = arith.constant 1.000000e+00 : f32
    %556 = vector.broadcast %cst_117 : f32 to vector<1x128xf32>
    %557 = arith.mulf %556, %540 : vector<1x128xf32>
    %558 = arith.mulf %522, %557 : vector<1x128xf32>
    %559 = arith.mulf %530, %539 : vector<1x128xf32>
    %560 = arith.addf %558, %559 : vector<1x128xf32>
    %561 = arith.mulf %524, %539 : vector<1x128xf32>
    %cst_118 = arith.constant -1.000000e+00 : f32
    %562 = vector.broadcast %cst_118 : f32 to vector<1x128xf32>
    %563 = arith.mulf %562, %540 : vector<1x128xf32>
    %564 = arith.mulf %532, %563 : vector<1x128xf32>
    %565 = arith.subf %561, %564 : vector<1x128xf32>
    %cst_119 = arith.constant -1.000000e+00 : f32
    %566 = vector.broadcast %cst_119 : f32 to vector<1x128xf32>
    %567 = arith.mulf %566, %540 : vector<1x128xf32>
    %568 = arith.mulf %524, %567 : vector<1x128xf32>
    %569 = arith.mulf %532, %539 : vector<1x128xf32>
    %570 = arith.addf %568, %569 : vector<1x128xf32>
    %571 = arith.mulf %526, %539 : vector<1x128xf32>
    %cst_120 = arith.constant 1.000000e+00 : f32
    %572 = vector.broadcast %cst_120 : f32 to vector<1x128xf32>
    %573 = arith.mulf %572, %540 : vector<1x128xf32>
    %574 = arith.mulf %534, %573 : vector<1x128xf32>
    %575 = arith.subf %571, %574 : vector<1x128xf32>
    %cst_121 = arith.constant 1.000000e+00 : f32
    %576 = vector.broadcast %cst_121 : f32 to vector<1x128xf32>
    %577 = arith.mulf %576, %540 : vector<1x128xf32>
    %578 = arith.mulf %526, %577 : vector<1x128xf32>
    %579 = arith.mulf %534, %539 : vector<1x128xf32>
    %580 = arith.addf %578, %579 : vector<1x128xf32>
    %c6_122 = arith.constant 6 : index
    %c0_123 = arith.constant 0 : index
    %581 = vector.load %arg2[%c6_122, %c0_123] : memref<8x128xf32, #tpu.memory_space<vmem>>, vector<1x128xf32>
    %cst_124 = arith.constant 5.000000e-01 : f32
    %582 = vector.broadcast %cst_124 : f32 to vector<1x128xf32>
    %583 = arith.mulf %581, %582 : vector<1x128xf32>
    %584 = math.cos %583 : vector<1x128xf32>
    %585 = math.sin %583 : vector<1x128xf32>
    %586 = arith.mulf %521, %584 : vector<1x128xf32>
    %cst_125 = arith.constant -1.000000e+00 : f32
    %587 = vector.broadcast %cst_125 : f32 to vector<1x128xf32>
    %588 = arith.mulf %587, %585 : vector<1x128xf32>
    %589 = arith.mulf %529, %588 : vector<1x128xf32>
    %590 = arith.subf %586, %589 : vector<1x128xf32>
    %cst_126 = arith.constant -1.000000e+00 : f32
    %591 = vector.broadcast %cst_126 : f32 to vector<1x128xf32>
    %592 = arith.mulf %591, %585 : vector<1x128xf32>
    %593 = arith.mulf %521, %592 : vector<1x128xf32>
    %594 = arith.mulf %529, %584 : vector<1x128xf32>
    %595 = arith.addf %593, %594 : vector<1x128xf32>
    %596 = arith.mulf %555, %584 : vector<1x128xf32>
    %cst_127 = arith.constant -1.000000e+00 : f32
    %597 = vector.broadcast %cst_127 : f32 to vector<1x128xf32>
    %598 = arith.mulf %597, %585 : vector<1x128xf32>
    %599 = arith.mulf %560, %598 : vector<1x128xf32>
    %600 = arith.subf %596, %599 : vector<1x128xf32>
    %cst_128 = arith.constant -1.000000e+00 : f32
    %601 = vector.broadcast %cst_128 : f32 to vector<1x128xf32>
    %602 = arith.mulf %601, %585 : vector<1x128xf32>
    %603 = arith.mulf %555, %602 : vector<1x128xf32>
    %604 = arith.mulf %560, %584 : vector<1x128xf32>
    %605 = arith.addf %603, %604 : vector<1x128xf32>
    %606 = arith.mulf %525, %584 : vector<1x128xf32>
    %cst_129 = arith.constant 1.000000e+00 : f32
    %607 = vector.broadcast %cst_129 : f32 to vector<1x128xf32>
    %608 = arith.mulf %607, %585 : vector<1x128xf32>
    %609 = arith.mulf %533, %608 : vector<1x128xf32>
    %610 = arith.subf %606, %609 : vector<1x128xf32>
    %cst_130 = arith.constant 1.000000e+00 : f32
    %611 = vector.broadcast %cst_130 : f32 to vector<1x128xf32>
    %612 = arith.mulf %611, %585 : vector<1x128xf32>
    %613 = arith.mulf %525, %612 : vector<1x128xf32>
    %614 = arith.mulf %533, %584 : vector<1x128xf32>
    %615 = arith.addf %613, %614 : vector<1x128xf32>
    %616 = arith.mulf %575, %584 : vector<1x128xf32>
    %cst_131 = arith.constant 1.000000e+00 : f32
    %617 = vector.broadcast %cst_131 : f32 to vector<1x128xf32>
    %618 = arith.mulf %617, %585 : vector<1x128xf32>
    %619 = arith.mulf %580, %618 : vector<1x128xf32>
    %620 = arith.subf %616, %619 : vector<1x128xf32>
    %cst_132 = arith.constant 1.000000e+00 : f32
    %621 = vector.broadcast %cst_132 : f32 to vector<1x128xf32>
    %622 = arith.mulf %621, %585 : vector<1x128xf32>
    %623 = arith.mulf %575, %622 : vector<1x128xf32>
    %624 = arith.mulf %580, %584 : vector<1x128xf32>
    %625 = arith.addf %623, %624 : vector<1x128xf32>
    %c3_133 = arith.constant 3 : index
    %c0_134 = arith.constant 0 : index
    %626 = vector.load %arg2[%c3_133, %c0_134] : memref<8x128xf32, #tpu.memory_space<vmem>>, vector<1x128xf32>
    %cst_135 = arith.constant 5.000000e-01 : f32
    %627 = vector.broadcast %cst_135 : f32 to vector<1x128xf32>
    %628 = arith.mulf %626, %627 : vector<1x128xf32>
    %629 = math.cos %628 : vector<1x128xf32>
    %630 = math.sin %628 : vector<1x128xf32>
    %631 = arith.mulf %629, %535 : vector<1x128xf32>
    %632 = arith.mulf %630, %523 : vector<1x128xf32>
    %633 = arith.subf %631, %632 : vector<1x128xf32>
    %634 = arith.mulf %629, %527 : vector<1x128xf32>
    %635 = arith.mulf %630, %531 : vector<1x128xf32>
    %636 = arith.subf %634, %635 : vector<1x128xf32>
    %637 = arith.mulf %630, %535 : vector<1x128xf32>
    %638 = arith.mulf %629, %523 : vector<1x128xf32>
    %639 = arith.addf %637, %638 : vector<1x128xf32>
    %640 = arith.mulf %630, %527 : vector<1x128xf32>
    %641 = arith.mulf %629, %531 : vector<1x128xf32>
    %642 = arith.addf %640, %641 : vector<1x128xf32>
    %643 = arith.mulf %629, %545 : vector<1x128xf32>
    %644 = arith.mulf %630, %565 : vector<1x128xf32>
    %645 = arith.subf %643, %644 : vector<1x128xf32>
    %646 = arith.mulf %629, %550 : vector<1x128xf32>
    %647 = arith.mulf %630, %570 : vector<1x128xf32>
    %648 = arith.subf %646, %647 : vector<1x128xf32>
    %649 = arith.mulf %630, %545 : vector<1x128xf32>
    %650 = arith.mulf %629, %565 : vector<1x128xf32>
    %651 = arith.addf %649, %650 : vector<1x128xf32>
    %652 = arith.mulf %630, %550 : vector<1x128xf32>
    %653 = arith.mulf %629, %570 : vector<1x128xf32>
    %654 = arith.addf %652, %653 : vector<1x128xf32>
    %655 = arith.mulf %629, %590 : vector<1x128xf32>
    %656 = arith.mulf %630, %610 : vector<1x128xf32>
    %657 = arith.subf %655, %656 : vector<1x128xf32>
    %658 = arith.mulf %629, %595 : vector<1x128xf32>
    %659 = arith.mulf %630, %615 : vector<1x128xf32>
    %660 = arith.subf %658, %659 : vector<1x128xf32>
    %661 = arith.mulf %630, %590 : vector<1x128xf32>
    %662 = arith.mulf %629, %610 : vector<1x128xf32>
    %663 = arith.addf %661, %662 : vector<1x128xf32>
    %664 = arith.mulf %630, %595 : vector<1x128xf32>
    %665 = arith.mulf %629, %615 : vector<1x128xf32>
    %666 = arith.addf %664, %665 : vector<1x128xf32>
    %667 = arith.mulf %629, %600 : vector<1x128xf32>
    %668 = arith.mulf %630, %620 : vector<1x128xf32>
    %669 = arith.subf %667, %668 : vector<1x128xf32>
    %670 = arith.mulf %629, %605 : vector<1x128xf32>
    %671 = arith.mulf %630, %625 : vector<1x128xf32>
    %672 = arith.subf %670, %671 : vector<1x128xf32>
    %673 = arith.mulf %630, %600 : vector<1x128xf32>
    %674 = arith.mulf %629, %620 : vector<1x128xf32>
    %675 = arith.addf %673, %674 : vector<1x128xf32>
    %676 = arith.mulf %630, %605 : vector<1x128xf32>
    %677 = arith.mulf %629, %625 : vector<1x128xf32>
    %678 = arith.addf %676, %677 : vector<1x128xf32>
    %c4_136 = arith.constant 4 : index
    %c0_137 = arith.constant 0 : index
    %679 = vector.load %arg2[%c4_136, %c0_137] : memref<8x128xf32, #tpu.memory_space<vmem>>, vector<1x128xf32>
    %cst_138 = arith.constant 5.000000e-01 : f32
    %680 = vector.broadcast %cst_138 : f32 to vector<1x128xf32>
    %681 = arith.mulf %679, %680 : vector<1x128xf32>
    %682 = math.cos %681 : vector<1x128xf32>
    %683 = math.sin %681 : vector<1x128xf32>
    %684 = arith.mulf %682, %633 : vector<1x128xf32>
    %685 = arith.mulf %683, %657 : vector<1x128xf32>
    %686 = arith.subf %684, %685 : vector<1x128xf32>
    %687 = arith.mulf %682, %636 : vector<1x128xf32>
    %688 = arith.mulf %683, %660 : vector<1x128xf32>
    %689 = arith.subf %687, %688 : vector<1x128xf32>
    %690 = arith.mulf %683, %633 : vector<1x128xf32>
    %691 = arith.mulf %682, %657 : vector<1x128xf32>
    %692 = arith.addf %690, %691 : vector<1x128xf32>
    %693 = arith.mulf %683, %636 : vector<1x128xf32>
    %694 = arith.mulf %682, %660 : vector<1x128xf32>
    %695 = arith.addf %693, %694 : vector<1x128xf32>
    %696 = arith.mulf %682, %645 : vector<1x128xf32>
    %697 = arith.mulf %683, %669 : vector<1x128xf32>
    %698 = arith.subf %696, %697 : vector<1x128xf32>
    %699 = arith.mulf %682, %648 : vector<1x128xf32>
    %700 = arith.mulf %683, %672 : vector<1x128xf32>
    %701 = arith.subf %699, %700 : vector<1x128xf32>
    %702 = arith.mulf %683, %645 : vector<1x128xf32>
    %703 = arith.mulf %682, %669 : vector<1x128xf32>
    %704 = arith.addf %702, %703 : vector<1x128xf32>
    %705 = arith.mulf %683, %648 : vector<1x128xf32>
    %706 = arith.mulf %682, %672 : vector<1x128xf32>
    %707 = arith.addf %705, %706 : vector<1x128xf32>
    %708 = arith.mulf %682, %639 : vector<1x128xf32>
    %709 = arith.mulf %683, %663 : vector<1x128xf32>
    %710 = arith.subf %708, %709 : vector<1x128xf32>
    %711 = arith.mulf %682, %642 : vector<1x128xf32>
    %712 = arith.mulf %683, %666 : vector<1x128xf32>
    %713 = arith.subf %711, %712 : vector<1x128xf32>
    %714 = arith.mulf %683, %639 : vector<1x128xf32>
    %715 = arith.mulf %682, %663 : vector<1x128xf32>
    %716 = arith.addf %714, %715 : vector<1x128xf32>
    %717 = arith.mulf %683, %642 : vector<1x128xf32>
    %718 = arith.mulf %682, %666 : vector<1x128xf32>
    %719 = arith.addf %717, %718 : vector<1x128xf32>
    %720 = arith.mulf %682, %651 : vector<1x128xf32>
    %721 = arith.mulf %683, %675 : vector<1x128xf32>
    %722 = arith.subf %720, %721 : vector<1x128xf32>
    %723 = arith.mulf %682, %654 : vector<1x128xf32>
    %724 = arith.mulf %683, %678 : vector<1x128xf32>
    %725 = arith.subf %723, %724 : vector<1x128xf32>
    %726 = arith.mulf %683, %651 : vector<1x128xf32>
    %727 = arith.mulf %682, %675 : vector<1x128xf32>
    %728 = arith.addf %726, %727 : vector<1x128xf32>
    %729 = arith.mulf %683, %654 : vector<1x128xf32>
    %730 = arith.mulf %682, %678 : vector<1x128xf32>
    %731 = arith.addf %729, %730 : vector<1x128xf32>
    %c5_139 = arith.constant 5 : index
    %c0_140 = arith.constant 0 : index
    %732 = vector.load %arg2[%c5_139, %c0_140] : memref<8x128xf32, #tpu.memory_space<vmem>>, vector<1x128xf32>
    %cst_141 = arith.constant 5.000000e-01 : f32
    %733 = vector.broadcast %cst_141 : f32 to vector<1x128xf32>
    %734 = arith.mulf %732, %733 : vector<1x128xf32>
    %735 = math.cos %734 : vector<1x128xf32>
    %736 = math.sin %734 : vector<1x128xf32>
    %737 = arith.mulf %735, %686 : vector<1x128xf32>
    %738 = arith.mulf %736, %698 : vector<1x128xf32>
    %739 = arith.subf %737, %738 : vector<1x128xf32>
    %740 = arith.mulf %735, %689 : vector<1x128xf32>
    %741 = arith.mulf %736, %701 : vector<1x128xf32>
    %742 = arith.subf %740, %741 : vector<1x128xf32>
    %743 = arith.mulf %736, %686 : vector<1x128xf32>
    %744 = arith.mulf %735, %698 : vector<1x128xf32>
    %745 = arith.addf %743, %744 : vector<1x128xf32>
    %746 = arith.mulf %736, %689 : vector<1x128xf32>
    %747 = arith.mulf %735, %701 : vector<1x128xf32>
    %748 = arith.addf %746, %747 : vector<1x128xf32>
    %749 = arith.mulf %735, %692 : vector<1x128xf32>
    %750 = arith.mulf %736, %704 : vector<1x128xf32>
    %751 = arith.subf %749, %750 : vector<1x128xf32>
    %752 = arith.mulf %735, %695 : vector<1x128xf32>
    %753 = arith.mulf %736, %707 : vector<1x128xf32>
    %754 = arith.subf %752, %753 : vector<1x128xf32>
    %755 = arith.mulf %736, %692 : vector<1x128xf32>
    %756 = arith.mulf %735, %704 : vector<1x128xf32>
    %757 = arith.addf %755, %756 : vector<1x128xf32>
    %758 = arith.mulf %736, %695 : vector<1x128xf32>
    %759 = arith.mulf %735, %707 : vector<1x128xf32>
    %760 = arith.addf %758, %759 : vector<1x128xf32>
    %761 = arith.mulf %735, %710 : vector<1x128xf32>
    %762 = arith.mulf %736, %722 : vector<1x128xf32>
    %763 = arith.subf %761, %762 : vector<1x128xf32>
    %764 = arith.mulf %735, %713 : vector<1x128xf32>
    %765 = arith.mulf %736, %725 : vector<1x128xf32>
    %766 = arith.subf %764, %765 : vector<1x128xf32>
    %767 = arith.mulf %736, %710 : vector<1x128xf32>
    %768 = arith.mulf %735, %722 : vector<1x128xf32>
    %769 = arith.addf %767, %768 : vector<1x128xf32>
    %770 = arith.mulf %736, %713 : vector<1x128xf32>
    %771 = arith.mulf %735, %725 : vector<1x128xf32>
    %772 = arith.addf %770, %771 : vector<1x128xf32>
    %773 = arith.mulf %735, %716 : vector<1x128xf32>
    %774 = arith.mulf %736, %728 : vector<1x128xf32>
    %775 = arith.subf %773, %774 : vector<1x128xf32>
    %776 = arith.mulf %735, %719 : vector<1x128xf32>
    %777 = arith.mulf %736, %731 : vector<1x128xf32>
    %778 = arith.subf %776, %777 : vector<1x128xf32>
    %779 = arith.mulf %736, %716 : vector<1x128xf32>
    %780 = arith.mulf %735, %728 : vector<1x128xf32>
    %781 = arith.addf %779, %780 : vector<1x128xf32>
    %782 = arith.mulf %736, %719 : vector<1x128xf32>
    %783 = arith.mulf %735, %731 : vector<1x128xf32>
    %784 = arith.addf %782, %783 : vector<1x128xf32>
    %c1_142 = arith.constant 1 : index
    %c0_143 = arith.constant 0 : index
    %785 = vector.load %arg2[%c1_142, %c0_143] : memref<8x128xf32, #tpu.memory_space<vmem>>, vector<1x128xf32>
    %cst_144 = arith.constant 5.000000e-01 : f32
    %786 = vector.broadcast %cst_144 : f32 to vector<1x128xf32>
    %787 = arith.mulf %785, %786 : vector<1x128xf32>
    %788 = math.cos %787 : vector<1x128xf32>
    %789 = math.sin %787 : vector<1x128xf32>
    %790 = arith.mulf %739, %788 : vector<1x128xf32>
    %cst_145 = arith.constant -1.000000e+00 : f32
    %791 = vector.broadcast %cst_145 : f32 to vector<1x128xf32>
    %792 = arith.mulf %791, %789 : vector<1x128xf32>
    %793 = arith.mulf %742, %792 : vector<1x128xf32>
    %794 = arith.subf %790, %793 : vector<1x128xf32>
    %cst_146 = arith.constant -1.000000e+00 : f32
    %795 = vector.broadcast %cst_146 : f32 to vector<1x128xf32>
    %796 = arith.mulf %795, %789 : vector<1x128xf32>
    %797 = arith.mulf %739, %796 : vector<1x128xf32>
    %798 = arith.mulf %742, %788 : vector<1x128xf32>
    %799 = arith.addf %797, %798 : vector<1x128xf32>
    %800 = arith.mulf %745, %788 : vector<1x128xf32>
    %cst_147 = arith.constant -1.000000e+00 : f32
    %801 = vector.broadcast %cst_147 : f32 to vector<1x128xf32>
    %802 = arith.mulf %801, %789 : vector<1x128xf32>
    %803 = arith.mulf %748, %802 : vector<1x128xf32>
    %804 = arith.subf %800, %803 : vector<1x128xf32>
    %cst_148 = arith.constant -1.000000e+00 : f32
    %805 = vector.broadcast %cst_148 : f32 to vector<1x128xf32>
    %806 = arith.mulf %805, %789 : vector<1x128xf32>
    %807 = arith.mulf %745, %806 : vector<1x128xf32>
    %808 = arith.mulf %748, %788 : vector<1x128xf32>
    %809 = arith.addf %807, %808 : vector<1x128xf32>
    %810 = arith.mulf %751, %788 : vector<1x128xf32>
    %cst_149 = arith.constant -1.000000e+00 : f32
    %811 = vector.broadcast %cst_149 : f32 to vector<1x128xf32>
    %812 = arith.mulf %811, %789 : vector<1x128xf32>
    %813 = arith.mulf %754, %812 : vector<1x128xf32>
    %814 = arith.subf %810, %813 : vector<1x128xf32>
    %cst_150 = arith.constant -1.000000e+00 : f32
    %815 = vector.broadcast %cst_150 : f32 to vector<1x128xf32>
    %816 = arith.mulf %815, %789 : vector<1x128xf32>
    %817 = arith.mulf %751, %816 : vector<1x128xf32>
    %818 = arith.mulf %754, %788 : vector<1x128xf32>
    %819 = arith.addf %817, %818 : vector<1x128xf32>
    %820 = arith.mulf %757, %788 : vector<1x128xf32>
    %cst_151 = arith.constant -1.000000e+00 : f32
    %821 = vector.broadcast %cst_151 : f32 to vector<1x128xf32>
    %822 = arith.mulf %821, %789 : vector<1x128xf32>
    %823 = arith.mulf %760, %822 : vector<1x128xf32>
    %824 = arith.subf %820, %823 : vector<1x128xf32>
    %cst_152 = arith.constant -1.000000e+00 : f32
    %825 = vector.broadcast %cst_152 : f32 to vector<1x128xf32>
    %826 = arith.mulf %825, %789 : vector<1x128xf32>
    %827 = arith.mulf %757, %826 : vector<1x128xf32>
    %828 = arith.mulf %760, %788 : vector<1x128xf32>
    %829 = arith.addf %827, %828 : vector<1x128xf32>
    %830 = arith.mulf %763, %788 : vector<1x128xf32>
    %cst_153 = arith.constant 1.000000e+00 : f32
    %831 = vector.broadcast %cst_153 : f32 to vector<1x128xf32>
    %832 = arith.mulf %831, %789 : vector<1x128xf32>
    %833 = arith.mulf %766, %832 : vector<1x128xf32>
    %834 = arith.subf %830, %833 : vector<1x128xf32>
    %cst_154 = arith.constant 1.000000e+00 : f32
    %835 = vector.broadcast %cst_154 : f32 to vector<1x128xf32>
    %836 = arith.mulf %835, %789 : vector<1x128xf32>
    %837 = arith.mulf %763, %836 : vector<1x128xf32>
    %838 = arith.mulf %766, %788 : vector<1x128xf32>
    %839 = arith.addf %837, %838 : vector<1x128xf32>
    %840 = arith.mulf %769, %788 : vector<1x128xf32>
    %cst_155 = arith.constant 1.000000e+00 : f32
    %841 = vector.broadcast %cst_155 : f32 to vector<1x128xf32>
    %842 = arith.mulf %841, %789 : vector<1x128xf32>
    %843 = arith.mulf %772, %842 : vector<1x128xf32>
    %844 = arith.subf %840, %843 : vector<1x128xf32>
    %cst_156 = arith.constant 1.000000e+00 : f32
    %845 = vector.broadcast %cst_156 : f32 to vector<1x128xf32>
    %846 = arith.mulf %845, %789 : vector<1x128xf32>
    %847 = arith.mulf %769, %846 : vector<1x128xf32>
    %848 = arith.mulf %772, %788 : vector<1x128xf32>
    %849 = arith.addf %847, %848 : vector<1x128xf32>
    %850 = arith.mulf %775, %788 : vector<1x128xf32>
    %cst_157 = arith.constant 1.000000e+00 : f32
    %851 = vector.broadcast %cst_157 : f32 to vector<1x128xf32>
    %852 = arith.mulf %851, %789 : vector<1x128xf32>
    %853 = arith.mulf %778, %852 : vector<1x128xf32>
    %854 = arith.subf %850, %853 : vector<1x128xf32>
    %cst_158 = arith.constant 1.000000e+00 : f32
    %855 = vector.broadcast %cst_158 : f32 to vector<1x128xf32>
    %856 = arith.mulf %855, %789 : vector<1x128xf32>
    %857 = arith.mulf %775, %856 : vector<1x128xf32>
    %858 = arith.mulf %778, %788 : vector<1x128xf32>
    %859 = arith.addf %857, %858 : vector<1x128xf32>
    %860 = arith.mulf %781, %788 : vector<1x128xf32>
    %cst_159 = arith.constant 1.000000e+00 : f32
    %861 = vector.broadcast %cst_159 : f32 to vector<1x128xf32>
    %862 = arith.mulf %861, %789 : vector<1x128xf32>
    %863 = arith.mulf %784, %862 : vector<1x128xf32>
    %864 = arith.subf %860, %863 : vector<1x128xf32>
    %cst_160 = arith.constant 1.000000e+00 : f32
    %865 = vector.broadcast %cst_160 : f32 to vector<1x128xf32>
    %866 = arith.mulf %865, %789 : vector<1x128xf32>
    %867 = arith.mulf %781, %866 : vector<1x128xf32>
    %868 = arith.mulf %784, %788 : vector<1x128xf32>
    %869 = arith.addf %867, %868 : vector<1x128xf32>
    %c1_161 = arith.constant 1 : index
    %c0_162 = arith.constant 0 : index
    %870 = vector.load %arg2[%c1_161, %c0_162] : memref<8x128xf32, #tpu.memory_space<vmem>>, vector<1x128xf32>
    %cst_163 = arith.constant 5.000000e-01 : f32
    %871 = vector.broadcast %cst_163 : f32 to vector<1x128xf32>
    %872 = arith.mulf %870, %871 : vector<1x128xf32>
    %873 = math.cos %872 : vector<1x128xf32>
    %874 = math.sin %872 : vector<1x128xf32>
    %875 = arith.mulf %794, %873 : vector<1x128xf32>
    %cst_164 = arith.constant -1.000000e+00 : f32
    %876 = vector.broadcast %cst_164 : f32 to vector<1x128xf32>
    %877 = arith.mulf %876, %874 : vector<1x128xf32>
    %878 = arith.mulf %799, %877 : vector<1x128xf32>
    %879 = arith.subf %875, %878 : vector<1x128xf32>
    %cst_165 = arith.constant -1.000000e+00 : f32
    %880 = vector.broadcast %cst_165 : f32 to vector<1x128xf32>
    %881 = arith.mulf %880, %874 : vector<1x128xf32>
    %882 = arith.mulf %794, %881 : vector<1x128xf32>
    %883 = arith.mulf %799, %873 : vector<1x128xf32>
    %884 = arith.addf %882, %883 : vector<1x128xf32>
    %885 = arith.mulf %804, %873 : vector<1x128xf32>
    %cst_166 = arith.constant -1.000000e+00 : f32
    %886 = vector.broadcast %cst_166 : f32 to vector<1x128xf32>
    %887 = arith.mulf %886, %874 : vector<1x128xf32>
    %888 = arith.mulf %809, %887 : vector<1x128xf32>
    %889 = arith.subf %885, %888 : vector<1x128xf32>
    %cst_167 = arith.constant -1.000000e+00 : f32
    %890 = vector.broadcast %cst_167 : f32 to vector<1x128xf32>
    %891 = arith.mulf %890, %874 : vector<1x128xf32>
    %892 = arith.mulf %804, %891 : vector<1x128xf32>
    %893 = arith.mulf %809, %873 : vector<1x128xf32>
    %894 = arith.addf %892, %893 : vector<1x128xf32>
    %895 = arith.mulf %814, %873 : vector<1x128xf32>
    %cst_168 = arith.constant 1.000000e+00 : f32
    %896 = vector.broadcast %cst_168 : f32 to vector<1x128xf32>
    %897 = arith.mulf %896, %874 : vector<1x128xf32>
    %898 = arith.mulf %819, %897 : vector<1x128xf32>
    %899 = arith.subf %895, %898 : vector<1x128xf32>
    %cst_169 = arith.constant 1.000000e+00 : f32
    %900 = vector.broadcast %cst_169 : f32 to vector<1x128xf32>
    %901 = arith.mulf %900, %874 : vector<1x128xf32>
    %902 = arith.mulf %814, %901 : vector<1x128xf32>
    %903 = arith.mulf %819, %873 : vector<1x128xf32>
    %904 = arith.addf %902, %903 : vector<1x128xf32>
    %905 = arith.mulf %824, %873 : vector<1x128xf32>
    %cst_170 = arith.constant 1.000000e+00 : f32
    %906 = vector.broadcast %cst_170 : f32 to vector<1x128xf32>
    %907 = arith.mulf %906, %874 : vector<1x128xf32>
    %908 = arith.mulf %829, %907 : vector<1x128xf32>
    %909 = arith.subf %905, %908 : vector<1x128xf32>
    %cst_171 = arith.constant 1.000000e+00 : f32
    %910 = vector.broadcast %cst_171 : f32 to vector<1x128xf32>
    %911 = arith.mulf %910, %874 : vector<1x128xf32>
    %912 = arith.mulf %824, %911 : vector<1x128xf32>
    %913 = arith.mulf %829, %873 : vector<1x128xf32>
    %914 = arith.addf %912, %913 : vector<1x128xf32>
    %915 = arith.mulf %834, %873 : vector<1x128xf32>
    %cst_172 = arith.constant -1.000000e+00 : f32
    %916 = vector.broadcast %cst_172 : f32 to vector<1x128xf32>
    %917 = arith.mulf %916, %874 : vector<1x128xf32>
    %918 = arith.mulf %839, %917 : vector<1x128xf32>
    %919 = arith.subf %915, %918 : vector<1x128xf32>
    %cst_173 = arith.constant -1.000000e+00 : f32
    %920 = vector.broadcast %cst_173 : f32 to vector<1x128xf32>
    %921 = arith.mulf %920, %874 : vector<1x128xf32>
    %922 = arith.mulf %834, %921 : vector<1x128xf32>
    %923 = arith.mulf %839, %873 : vector<1x128xf32>
    %924 = arith.addf %922, %923 : vector<1x128xf32>
    %925 = arith.mulf %844, %873 : vector<1x128xf32>
    %cst_174 = arith.constant -1.000000e+00 : f32
    %926 = vector.broadcast %cst_174 : f32 to vector<1x128xf32>
    %927 = arith.mulf %926, %874 : vector<1x128xf32>
    %928 = arith.mulf %849, %927 : vector<1x128xf32>
    %929 = arith.subf %925, %928 : vector<1x128xf32>
    %cst_175 = arith.constant -1.000000e+00 : f32
    %930 = vector.broadcast %cst_175 : f32 to vector<1x128xf32>
    %931 = arith.mulf %930, %874 : vector<1x128xf32>
    %932 = arith.mulf %844, %931 : vector<1x128xf32>
    %933 = arith.mulf %849, %873 : vector<1x128xf32>
    %934 = arith.addf %932, %933 : vector<1x128xf32>
    %935 = arith.mulf %854, %873 : vector<1x128xf32>
    %cst_176 = arith.constant 1.000000e+00 : f32
    %936 = vector.broadcast %cst_176 : f32 to vector<1x128xf32>
    %937 = arith.mulf %936, %874 : vector<1x128xf32>
    %938 = arith.mulf %859, %937 : vector<1x128xf32>
    %939 = arith.subf %935, %938 : vector<1x128xf32>
    %cst_177 = arith.constant 1.000000e+00 : f32
    %940 = vector.broadcast %cst_177 : f32 to vector<1x128xf32>
    %941 = arith.mulf %940, %874 : vector<1x128xf32>
    %942 = arith.mulf %854, %941 : vector<1x128xf32>
    %943 = arith.mulf %859, %873 : vector<1x128xf32>
    %944 = arith.addf %942, %943 : vector<1x128xf32>
    %945 = arith.mulf %864, %873 : vector<1x128xf32>
    %cst_178 = arith.constant 1.000000e+00 : f32
    %946 = vector.broadcast %cst_178 : f32 to vector<1x128xf32>
    %947 = arith.mulf %946, %874 : vector<1x128xf32>
    %948 = arith.mulf %869, %947 : vector<1x128xf32>
    %949 = arith.subf %945, %948 : vector<1x128xf32>
    %cst_179 = arith.constant 1.000000e+00 : f32
    %950 = vector.broadcast %cst_179 : f32 to vector<1x128xf32>
    %951 = arith.mulf %950, %874 : vector<1x128xf32>
    %952 = arith.mulf %864, %951 : vector<1x128xf32>
    %953 = arith.mulf %869, %873 : vector<1x128xf32>
    %954 = arith.addf %952, %953 : vector<1x128xf32>
    %c2_180 = arith.constant 2 : index
    %c0_181 = arith.constant 0 : index
    %955 = vector.load %arg2[%c2_180, %c0_181] : memref<8x128xf32, #tpu.memory_space<vmem>>, vector<1x128xf32>
    %cst_182 = arith.constant 5.000000e-01 : f32
    %956 = vector.broadcast %cst_182 : f32 to vector<1x128xf32>
    %957 = arith.mulf %955, %956 : vector<1x128xf32>
    %958 = math.cos %957 : vector<1x128xf32>
    %959 = math.sin %957 : vector<1x128xf32>
    %960 = arith.mulf %879, %958 : vector<1x128xf32>
    %cst_183 = arith.constant -1.000000e+00 : f32
    %961 = vector.broadcast %cst_183 : f32 to vector<1x128xf32>
    %962 = arith.mulf %961, %959 : vector<1x128xf32>
    %963 = arith.mulf %884, %962 : vector<1x128xf32>
    %964 = arith.subf %960, %963 : vector<1x128xf32>
    %cst_184 = arith.constant -1.000000e+00 : f32
    %965 = vector.broadcast %cst_184 : f32 to vector<1x128xf32>
    %966 = arith.mulf %965, %959 : vector<1x128xf32>
    %967 = arith.mulf %879, %966 : vector<1x128xf32>
    %968 = arith.mulf %884, %958 : vector<1x128xf32>
    %969 = arith.addf %967, %968 : vector<1x128xf32>
    %970 = arith.mulf %889, %958 : vector<1x128xf32>
    %cst_185 = arith.constant 1.000000e+00 : f32
    %971 = vector.broadcast %cst_185 : f32 to vector<1x128xf32>
    %972 = arith.mulf %971, %959 : vector<1x128xf32>
    %973 = arith.mulf %894, %972 : vector<1x128xf32>
    %974 = arith.subf %970, %973 : vector<1x128xf32>
    %cst_186 = arith.constant 1.000000e+00 : f32
    %975 = vector.broadcast %cst_186 : f32 to vector<1x128xf32>
    %976 = arith.mulf %975, %959 : vector<1x128xf32>
    %977 = arith.mulf %889, %976 : vector<1x128xf32>
    %978 = arith.mulf %894, %958 : vector<1x128xf32>
    %979 = arith.addf %977, %978 : vector<1x128xf32>
    %980 = arith.mulf %899, %958 : vector<1x128xf32>
    %cst_187 = arith.constant -1.000000e+00 : f32
    %981 = vector.broadcast %cst_187 : f32 to vector<1x128xf32>
    %982 = arith.mulf %981, %959 : vector<1x128xf32>
    %983 = arith.mulf %904, %982 : vector<1x128xf32>
    %984 = arith.subf %980, %983 : vector<1x128xf32>
    %cst_188 = arith.constant -1.000000e+00 : f32
    %985 = vector.broadcast %cst_188 : f32 to vector<1x128xf32>
    %986 = arith.mulf %985, %959 : vector<1x128xf32>
    %987 = arith.mulf %899, %986 : vector<1x128xf32>
    %988 = arith.mulf %904, %958 : vector<1x128xf32>
    %989 = arith.addf %987, %988 : vector<1x128xf32>
    %990 = arith.mulf %909, %958 : vector<1x128xf32>
    %cst_189 = arith.constant 1.000000e+00 : f32
    %991 = vector.broadcast %cst_189 : f32 to vector<1x128xf32>
    %992 = arith.mulf %991, %959 : vector<1x128xf32>
    %993 = arith.mulf %914, %992 : vector<1x128xf32>
    %994 = arith.subf %990, %993 : vector<1x128xf32>
    %cst_190 = arith.constant 1.000000e+00 : f32
    %995 = vector.broadcast %cst_190 : f32 to vector<1x128xf32>
    %996 = arith.mulf %995, %959 : vector<1x128xf32>
    %997 = arith.mulf %909, %996 : vector<1x128xf32>
    %998 = arith.mulf %914, %958 : vector<1x128xf32>
    %999 = arith.addf %997, %998 : vector<1x128xf32>
    %1000 = arith.mulf %919, %958 : vector<1x128xf32>
    %cst_191 = arith.constant -1.000000e+00 : f32
    %1001 = vector.broadcast %cst_191 : f32 to vector<1x128xf32>
    %1002 = arith.mulf %1001, %959 : vector<1x128xf32>
    %1003 = arith.mulf %924, %1002 : vector<1x128xf32>
    %1004 = arith.subf %1000, %1003 : vector<1x128xf32>
    %cst_192 = arith.constant -1.000000e+00 : f32
    %1005 = vector.broadcast %cst_192 : f32 to vector<1x128xf32>
    %1006 = arith.mulf %1005, %959 : vector<1x128xf32>
    %1007 = arith.mulf %919, %1006 : vector<1x128xf32>
    %1008 = arith.mulf %924, %958 : vector<1x128xf32>
    %1009 = arith.addf %1007, %1008 : vector<1x128xf32>
    %1010 = arith.mulf %929, %958 : vector<1x128xf32>
    %cst_193 = arith.constant 1.000000e+00 : f32
    %1011 = vector.broadcast %cst_193 : f32 to vector<1x128xf32>
    %1012 = arith.mulf %1011, %959 : vector<1x128xf32>
    %1013 = arith.mulf %934, %1012 : vector<1x128xf32>
    %1014 = arith.subf %1010, %1013 : vector<1x128xf32>
    %cst_194 = arith.constant 1.000000e+00 : f32
    %1015 = vector.broadcast %cst_194 : f32 to vector<1x128xf32>
    %1016 = arith.mulf %1015, %959 : vector<1x128xf32>
    %1017 = arith.mulf %929, %1016 : vector<1x128xf32>
    %1018 = arith.mulf %934, %958 : vector<1x128xf32>
    %1019 = arith.addf %1017, %1018 : vector<1x128xf32>
    %1020 = arith.mulf %939, %958 : vector<1x128xf32>
    %cst_195 = arith.constant -1.000000e+00 : f32
    %1021 = vector.broadcast %cst_195 : f32 to vector<1x128xf32>
    %1022 = arith.mulf %1021, %959 : vector<1x128xf32>
    %1023 = arith.mulf %944, %1022 : vector<1x128xf32>
    %1024 = arith.subf %1020, %1023 : vector<1x128xf32>
    %cst_196 = arith.constant -1.000000e+00 : f32
    %1025 = vector.broadcast %cst_196 : f32 to vector<1x128xf32>
    %1026 = arith.mulf %1025, %959 : vector<1x128xf32>
    %1027 = arith.mulf %939, %1026 : vector<1x128xf32>
    %1028 = arith.mulf %944, %958 : vector<1x128xf32>
    %1029 = arith.addf %1027, %1028 : vector<1x128xf32>
    %1030 = arith.mulf %949, %958 : vector<1x128xf32>
    %cst_197 = arith.constant 1.000000e+00 : f32
    %1031 = vector.broadcast %cst_197 : f32 to vector<1x128xf32>
    %1032 = arith.mulf %1031, %959 : vector<1x128xf32>
    %1033 = arith.mulf %954, %1032 : vector<1x128xf32>
    %1034 = arith.subf %1030, %1033 : vector<1x128xf32>
    %cst_198 = arith.constant 1.000000e+00 : f32
    %1035 = vector.broadcast %cst_198 : f32 to vector<1x128xf32>
    %1036 = arith.mulf %1035, %959 : vector<1x128xf32>
    %1037 = arith.mulf %949, %1036 : vector<1x128xf32>
    %1038 = arith.mulf %954, %958 : vector<1x128xf32>
    %1039 = arith.addf %1037, %1038 : vector<1x128xf32>
    %cst_199 = arith.constant 0.000000e+00 : f32
    %1040 = vector.broadcast %cst_199 : f32 to vector<1x128xf32>
    %cst_200 = arith.constant 0.000000e+00 : f32
    %1041 = vector.broadcast %cst_200 : f32 to vector<1x128xf32>
    %1042 = arith.mulf %964, %444 : vector<1x128xf32>
    %1043 = arith.addf %1040, %1042 : vector<1x128xf32>
    %1044 = arith.mulf %969, %449 : vector<1x128xf32>
    %1045 = arith.addf %1043, %1044 : vector<1x128xf32>
    %1046 = arith.mulf %964, %449 : vector<1x128xf32>
    %1047 = arith.addf %1041, %1046 : vector<1x128xf32>
    %1048 = arith.mulf %969, %444 : vector<1x128xf32>
    %1049 = arith.subf %1047, %1048 : vector<1x128xf32>
    %1050 = arith.mulf %974, %454 : vector<1x128xf32>
    %1051 = arith.addf %1045, %1050 : vector<1x128xf32>
    %1052 = arith.mulf %979, %459 : vector<1x128xf32>
    %1053 = arith.addf %1051, %1052 : vector<1x128xf32>
    %1054 = arith.mulf %974, %459 : vector<1x128xf32>
    %1055 = arith.addf %1049, %1054 : vector<1x128xf32>
    %1056 = arith.mulf %979, %454 : vector<1x128xf32>
    %1057 = arith.subf %1055, %1056 : vector<1x128xf32>
    %1058 = arith.mulf %984, %464 : vector<1x128xf32>
    %1059 = arith.addf %1053, %1058 : vector<1x128xf32>
    %1060 = arith.mulf %989, %469 : vector<1x128xf32>
    %1061 = arith.addf %1059, %1060 : vector<1x128xf32>
    %1062 = arith.mulf %984, %469 : vector<1x128xf32>
    %1063 = arith.addf %1057, %1062 : vector<1x128xf32>
    %1064 = arith.mulf %989, %464 : vector<1x128xf32>
    %1065 = arith.subf %1063, %1064 : vector<1x128xf32>
    %1066 = arith.mulf %994, %474 : vector<1x128xf32>
    %1067 = arith.addf %1061, %1066 : vector<1x128xf32>
    %1068 = arith.mulf %999, %479 : vector<1x128xf32>
    %1069 = arith.addf %1067, %1068 : vector<1x128xf32>
    %1070 = arith.mulf %994, %479 : vector<1x128xf32>
    %1071 = arith.addf %1065, %1070 : vector<1x128xf32>
    %1072 = arith.mulf %999, %474 : vector<1x128xf32>
    %1073 = arith.subf %1071, %1072 : vector<1x128xf32>
    %1074 = arith.mulf %1004, %484 : vector<1x128xf32>
    %1075 = arith.addf %1069, %1074 : vector<1x128xf32>
    %1076 = arith.mulf %1009, %489 : vector<1x128xf32>
    %1077 = arith.addf %1075, %1076 : vector<1x128xf32>
    %1078 = arith.mulf %1004, %489 : vector<1x128xf32>
    %1079 = arith.addf %1073, %1078 : vector<1x128xf32>
    %1080 = arith.mulf %1009, %484 : vector<1x128xf32>
    %1081 = arith.subf %1079, %1080 : vector<1x128xf32>
    %1082 = arith.mulf %1014, %494 : vector<1x128xf32>
    %1083 = arith.addf %1077, %1082 : vector<1x128xf32>
    %1084 = arith.mulf %1019, %499 : vector<1x128xf32>
    %1085 = arith.addf %1083, %1084 : vector<1x128xf32>
    %1086 = arith.mulf %1014, %499 : vector<1x128xf32>
    %1087 = arith.addf %1081, %1086 : vector<1x128xf32>
    %1088 = arith.mulf %1019, %494 : vector<1x128xf32>
    %1089 = arith.subf %1087, %1088 : vector<1x128xf32>
    %1090 = arith.mulf %1024, %504 : vector<1x128xf32>
    %1091 = arith.addf %1085, %1090 : vector<1x128xf32>
    %1092 = arith.mulf %1029, %509 : vector<1x128xf32>
    %1093 = arith.addf %1091, %1092 : vector<1x128xf32>
    %1094 = arith.mulf %1024, %509 : vector<1x128xf32>
    %1095 = arith.addf %1089, %1094 : vector<1x128xf32>
    %1096 = arith.mulf %1029, %504 : vector<1x128xf32>
    %1097 = arith.subf %1095, %1096 : vector<1x128xf32>
    %1098 = arith.mulf %1034, %514 : vector<1x128xf32>
    %1099 = arith.addf %1093, %1098 : vector<1x128xf32>
    %1100 = arith.mulf %1039, %519 : vector<1x128xf32>
    %1101 = arith.addf %1099, %1100 : vector<1x128xf32>
    %1102 = arith.mulf %1034, %519 : vector<1x128xf32>
    %1103 = arith.addf %1097, %1102 : vector<1x128xf32>
    %1104 = arith.mulf %1039, %514 : vector<1x128xf32>
    %1105 = arith.subf %1103, %1104 : vector<1x128xf32>
    %1106 = arith.mulf %1101, %1101 : vector<1x128xf32>
    %1107 = arith.mulf %1105, %1105 : vector<1x128xf32>
    %1108 = arith.addf %1106, %1107 : vector<1x128xf32>
    %c0_201 = arith.constant 0 : index
    %c0_202 = arith.constant 0 : index
    %1109 = vector.load %arg3[%c0_201, %c0_202] : memref<1x128xf32, #tpu.memory_space<vmem>>, vector<1x128xf32>
    tpu.vector_store %arg3[%c0_201, %c0_202], %1108 {strides = array<i32>} : memref<1x128xf32, #tpu.memory_space<vmem>>, vector<1x128xf32>,
    return
  }
  func.func @transform_0(%arg0: i32) -> (i32, i32) {
    %c0_i32 = arith.constant 0 : i32
    %c0_i32_0 = arith.constant 0 : i32
    return %c0_i32, %arg0 : i32, i32
  }
  func.func @transform_1(%arg0: i32) -> (i32, i32) {
    %c0_i32 = arith.constant 0 : i32
    %c0_i32_0 = arith.constant 0 : i32
    return %c0_i32, %arg0 : i32, i32
  }
  func.func @transform_2(%arg0: i32) -> (i32, i32) {
    %c0_i32 = arith.constant 0 : i32
    %c0_i32_0 = arith.constant 0 : i32
    return %c0_i32, %arg0 : i32, i32
  }
}

</mosaic_0001>

<bundles_post_ra>
// kernel: preq_forward.2
= control target key start
LH: loop header
LB: loop body
LE: loop exit
PB: predicated region body
PF: predicated region fallthrough
CT: control target
= control target key end

     0   :  { %14 = vsyncpa [#allocation3], 0  ;;  %s1424_s0 = inlined_call_operand.vmem [shape: bf16[8,384], index: 0, kind: input, shape index: {}]   ;;  %s1425_s1 = inlined_call_operand.hbm [shape: bf16[384,256], index: 1, kind: input, shape index: {}]   ;;  %s1426_s2 = inlined_call_operand.vmem [shape: bf16[1,256], index: 2, kind: input, shape index: {}]   ;;  %s1427_s3 = inlined_call_operand.hbm [shape: bf16[256,128], index: 3, kind: input, shape index: {}]   ;;  %s1428_s4 = inlined_call_operand.vmem [shape: bf16[1,128], index: 4, kind: input, shape index: {}]   ;;  %s1429_s5 = inlined_call_operand.vmem [shape: bf16[128,128], index: 5, kind: input, shape index: {}]   ;;  %s1430_s6 = inlined_call_operand.vmem [shape: bf16[1,128], index: 6, kind: input, shape index: {}]   ;;  %s1431_s7 = inlined_call_operand.hbm [shape: bf16[128,128], index: 7, kind: input, shape index: {}]   ;;  %s1432_s8 = inlined_call_operand.vmem [shape: bf16[1,128], index: 8, kind: input, shape index: {}]   ;;  %s1433_s9 = inlined_call_operand.vmem [shape: f32[8,128], index: 9, kind: output, shape index: {}]  }
   0x1   :  { %15 = vsyncpa [#allocation5], 0  ;;  %s1243_s30 = smov [#allocation4]   ;;  %s1173_s13 = scalar_lea.hbm %s1427_s3, 2048 }
   0x2   :  { %s37_s10 = sshll.u32 %s1243_s30, 4  ;;  %p1174_p0 = scmp.ne.s32.totalorder %s1427_s3, %s1173_s13  ;;  %s38_s10 = int_to_ptr.vmem [resolvable:$true] %s37_s10 }
   0x3   :  { %p1177_p1 = scmp.lt.u32.totalorder %s1173_s13, %s1427_s3 }
   0x5   :  { %p1179_p2 = pnand %p1177_p1, %p1174_p0 }
   0x7   :  { %1182 = shalt.err (!%p1179_p2)
}
   0x8   :  { %s1183_s18 = scalar_lea.vmem %s38_s10, 2048  ;;  %p1188_p4 = scmp.lt.s32.totalorder %s38_s10, %s38_s10 }
   0x9   :  { %p1184_p3 = scmp.ne.s32.totalorder %s38_s10, %s1183_s18  ;;  %p1189_p5 = scmp.lt.s32.totalorder %s1183_s18, %s1183_s18 }
   0xb   :  { %p1190_p6 = por %p1189_p5, %p1188_p4 }
   0xd   :  { %p1191_p7 = pnand %p1190_p6, %p1184_p3 }
   0xf   :  { %1194 = shalt.err (!%p1191_p7)
}
  0x10   :  { %s1244_s19 = smov 64   ;;  %s1245_s20 = smov 4  }
  0x11   :  { %43 = dma.hbm_to_vmem [thread:$0]  %s1427_s3, 2048, %s38_s10, [#allocation5], %s1244_s19, %s1244_s19, %s1245_s20  }
  0x12   :  { %s1246_s23 = smov [#allocation2]   ;;  %s1195_s27 = scalar_lea.hbm %s1425_s1, 6144 }
  0x13   :  { %s23_s24 = sshll.u32 %s1246_s23, 4  ;;  %p1196_p8 = scmp.ne.s32.totalorder %s1425_s1, %s1195_s27  ;;  %s24_s24 = int_to_ptr.vmem [resolvable:$true] %s23_s24 }
  0x14   :  { %p1199_p9 = scmp.lt.u32.totalorder %s1195_s27, %s1425_s1 }
  0x16   :  { %p1201_p10 = pnand %p1199_p9, %p1196_p8 }
  0x18   :  { %1204 = shalt.err (!%p1201_p10)
}
  0x19   :  { %s1205_s12 = scalar_lea.vmem %s24_s24, 6144  ;;  %p1210_p12 = scmp.lt.s32.totalorder %s24_s24, %s24_s24 }
  0x1a   :  { %p1206_p11 = scmp.ne.s32.totalorder %s24_s24, %s1205_s12  ;;  %p1211_p13 = scmp.lt.s32.totalorder %s1205_s12, %s1205_s12 }
  0x1c   :  { %p1212_p0 = por %p1211_p13, %p1210_p12 }
  0x1e   :  { %p1213_p1 = pnand %p1212_p0, %p1206_p11 }
  0x20   :  { %1216 = shalt.err (!%p1213_p1)
}
  0x21   :  { %s1247_s3 = smov 128   ;;  %s1248_s10 = smov 8  }
  0x22   :  { %29 = dma.hbm_to_vmem [thread:$0]  %s1425_s1, 6144, %s24_s24, [#allocation3], %s1247_s3, %s1247_s3, %s1248_s10  }
  0x23   :  { %s1249_s15 = smov [#allocation6]   ;;  %s1217_s21 = scalar_lea.hbm %s1431_s7, 1024 }
  0x24   :  { %s55_s16 = sshll.u32 %s1249_s15, 4  ;;  %p1218_p2 = scmp.ne.s32.totalorder %s1431_s7, %s1217_s21  ;;  %s56_s16 = int_to_ptr.vmem [resolvable:$true] %s55_s16 }
  0x25   :  { %p1221_p3 = scmp.lt.u32.totalorder %s1217_s21, %s1431_s7 }
  0x27   :  { %p1223_p4 = pnand %p1221_p3, %p1218_p2 }
  0x29   :  { %1226 = shalt.err (!%p1223_p4)
}
  0x2a   :  { %s1227_s27 = scalar_lea.vmem %s56_s16, 1024  ;;  %p1232_p6 = scmp.lt.s32.totalorder %s56_s16, %s56_s16 }
  0x2b   :  { %p1228_p5 = scmp.ne.s32.totalorder %s56_s16, %s1227_s27  ;;  %p1233_p7 = scmp.lt.s32.totalorder %s1227_s27, %s1227_s27 }
  0x2d   :  { %p1234_p8 = por %p1233_p7, %p1232_p6 }
  0x2f   :  { %p1235_p9 = pnand %p1234_p8, %p1228_p5 }
  0x31   :  { %1238 = shalt.err (!%p1235_p9)
}
  0x32   :  { %61 = dma.hbm_to_vmem [thread:$0]  %s1431_s7, 1024, %s56_s16, [#allocation5], %s1244_s19, %s1244_s19, %s1245_s20  }
  0x33   :  { %1239 = dma.done.wait [#allocation3], 6144  }
  0x34   :  { %1240 = vsyncadd [#allocation3], 4294961152 }
  0x35   :  { %1241 = dma.done.wait [#allocation5], 3072  }
  0x36   :  { %1242 = vsyncadd [#allocation5], 4294964224  ;;  %v1066_v0 = vld [vmem:[#allocation2 + $0x4] ss:$8 sps:$4 sm:$0xff]   ;;  %v1068_v1 = vld [vmem:[#allocation2] ss:$8 sps:$4 sm:$0xff]  }
  0x37   :  { %396 = vmatprep.subr.bf16.mxu0 %v1066_v0  ;;  %v1069_v2 = vld [vmem:[#allocation2 + $0x14] ss:$8 sps:$4 sm:$0xff]   ;;  %v1071_v3 = vld [vmem:[#allocation2 + $0x10] ss:$8 sps:$4 sm:$0xff]   ;;  %v1072_v4 = vld [vmem:[#allocation2 + $0x24] ss:$8 sps:$4 sm:$0xff]  }
  0x38   :  { %397 = vmatpush1.bf16.msra.mxu0 %v1068_v1  ;;  %v1074_v5 = vld [vmem:[#allocation2 + $0x20] ss:$8 sps:$4 sm:$0xff]   ;;  %v1075_v6 = vld [vmem:[#allocation2 + $0x34] ss:$8 sps:$4 sm:$0xff]   ;;  %v1077_v7 = vld [vmem:[#allocation2 + $0x30] ss:$8 sps:$4 sm:$0xff]  }
  0x39   :  { %398 = vmatprep.subr.bf16.mxu0 %v1069_v2  ;;  %v1078_v8 = vld [vmem:[#allocation2 + $0x44] ss:$8 sps:$4 sm:$0xff]   ;;  %v1080_v9 = vld [vmem:[#allocation2 + $0x40] ss:$8 sps:$4 sm:$0xff]   ;;  %v1081_v10 = vld [vmem:[#allocation2 + $0x54] ss:$8 sps:$4 sm:$0xff]  }
  0x3a   :  { %v1083_v11 = vld [vmem:[#allocation2 + $0x50] ss:$8 sps:$4 sm:$0xff]   ;;  %v1084_v12 = vld [vmem:[#allocation2 + $0x64] ss:$8 sps:$4 sm:$0xff]   ;;  %v1086_v15 = vld [vmem:[#allocation2 + $0x60] ss:$8 sps:$4 sm:$0xff]  }
  0x3b   :  { %v1348_v13 = vld [vmem:[%s1424_s0] sm:$0xff]  ;;  %v1087_v16 = vld [vmem:[#allocation2 + $0x74] ss:$8 sps:$4 sm:$0xff]   ;;  %v1089_v17 = vld [vmem:[#allocation2 + $0x70] ss:$8 sps:$4 sm:$0xff]   ;;  %v1250_v51 = vmov 0  }
  0x3c   :  { %399 = vmatpush1.bf16.msra.mxu0 %v1071_v3  ;;  %v888_v14 = vcombine.high %v1348_v13, %v1348_v13  ;;  %v1090_v18 = vld [vmem:[#allocation2 + $0x84] ss:$8 sps:$4 sm:$0xff]   ;;  %v1092_v19 = vld [vmem:[#allocation2 + $0x80] ss:$8 sps:$4 sm:$0xff]   ;;  %v1093_v20 = vld [vmem:[#allocation2 + $0x94] ss:$8 sps:$4 sm:$0xff]   ;;  %v887_v47 = vcombine.low %v1348_v13, %v1348_v13 }
  0x3d   :  { %400 = vmatprep.subr.bf16.mxu0 %v1072_v4  ;;  %v1095_v21 = vld [vmem:[#allocation2 + $0x90] ss:$8 sps:$4 sm:$0xff]   ;;  %v1141_v22 = vld [vmem:[#allocation4 + $0x40] sm:$0xff]   ;;  %v1143_v25 = vld [vmem:[#allocation4 + $0x48] sm:$0xff]   ;;  %vm1252_vm0 = vmmov 0  }
  0x3e   :  { %428 = vmatprep.mubr.bf16.mxu0 %v888_v14  ;;  %v1096_v23 = vld [vmem:[#allocation2 + $0xa4] ss:$8 sps:$4 sm:$0xff]   ;;  %970 = vmatprep.subr.bf16.mxu1 %v1141_v22  ;;  %v1145_v27 = vld [vmem:[#allocation4 + $0x50] sm:$0xff]   ;;  %v1098_v28 = vld [vmem:[#allocation2 + $0xa0] ss:$8 sps:$4 sm:$0xff]  }
  0x3f   :  { %v1142_v24 = vld [vmem:[#allocation4] sm:$0xff]   ;;  %v1144_v26 = vld [vmem:[#allocation4 + $0x8] sm:$0xff]   ;;  %v1099_v29 = vld [vmem:[#allocation2 + $0xb4] ss:$8 sps:$4 sm:$0xff]  }
  0x40   :  { %401 = vmatpush1.bf16.msra.mxu0 %v1074_v5  ;;  %971 = vmatpush3.bf16.msra.mxu1 %v1142_v24  ;;  %v1146_v30 = vld [vmem:[#allocation4 + $0x10] sm:$0xff]   ;;  %v1147_v31 = vld [vmem:[#allocation4 + $0x58] sm:$0xff]   ;;  %v1102_v33 = vld [vmem:[#allocation2 + $0xc4] ss:$8 sps:$4 sm:$0xff]   ;;  %v1251_v5 = vmov 0.0  }
  0x41   :  { %402 = vmatprep.subr.bf16.mxu0 %v1075_v6  ;;  %972 = vmatprep.subr.bf16.mxu1 %v1143_v25  ;;  %v1101_v32 = vld [vmem:[#allocation2 + $0xb0] ss:$8 sps:$4 sm:$0xff]   ;;  %v1104_v35 = vld [vmem:[#allocation2 + $0xc0] ss:$8 sps:$4 sm:$0xff]   ;;  %v1105_v37 = vld [vmem:[#allocation2 + $0xd4] ss:$8 sps:$4 sm:$0xff]   ;;  %v127_v6 = vlaneseq }
  0x42   :  { %v1148_v34 = vld [vmem:[#allocation4 + $0x18] sm:$0xff]   ;;  %v1149_v36 = vld [vmem:[#allocation4 + $0x60] sm:$0xff]   ;;  %v1151_v39 = vld [vmem:[#allocation4 + $0x68] sm:$0xff]  }
  0x43   :  { %v1150_v38 = vld [vmem:[#allocation4 + $0x20] sm:$0xff]   ;;  %v1107_v40 = vld [vmem:[#allocation2 + $0xd0] ss:$8 sps:$4 sm:$0xff]   ;;  %v1152_v42 = vld [vmem:[#allocation4 + $0x28] sm:$0xff]  }
  0x44   :  { %403 = vmatpush1.bf16.msra.mxu0 %v1077_v7  ;;  %973 = vmatpush3.bf16.msra.mxu1 %v1144_v26  ;;  %v1108_v41 = vld [vmem:[#allocation2 + $0xe4] ss:$8 sps:$4 sm:$0xff]   ;;  %v1110_v43 = vld [vmem:[#allocation2 + $0xe0] ss:$8 sps:$4 sm:$0xff]   ;;  %v1111_v44 = vld [vmem:[#allocation2 + $0xf4] ss:$8 sps:$4 sm:$0xff]  }
  0x45   :  { %404 = vmatprep.subr.bf16.mxu0 %v1078_v8  ;;  %974 = vmatprep.subr.bf16.mxu1 %v1145_v27  ;;  %v1113_v45 = vld [vmem:[#allocation2 + $0xf0] ss:$8 sps:$4 sm:$0xff]   ;;  %v1118_v46 = vld [vmem:[#allocation2 + $0x104] ss:$8 sps:$4 sm:$0xff]   ;;  %v1116_v48 = vld [vmem:[#allocation2 + $0x100] ss:$8 sps:$4 sm:$0xff]  }
  0x46   :  { %v1121_v49 = vld [vmem:[#allocation2 + $0x114] ss:$8 sps:$4 sm:$0xff]   ;;  %v1119_v50 = vld [vmem:[#allocation2 + $0x110] ss:$8 sps:$4 sm:$0xff]   ;;  %v1124_v52 = vld [vmem:[#allocation2 + $0x124] ss:$8 sps:$4 sm:$0xff]  }
  0x47   :  { %v1122_v53 = vld [vmem:[#allocation2 + $0x120] ss:$8 sps:$4 sm:$0xff]   ;;  %v1127_v54 = vld [vmem:[#allocation2 + $0x134] ss:$8 sps:$4 sm:$0xff]   ;;  %v1125_v55 = vld [vmem:[#allocation2 + $0x130] ss:$8 sps:$4 sm:$0xff]  }
  0x48   :  { %405 = vmatpush1.bf16.msra.mxu0 %v1080_v9  ;;  %975 = vmatpush3.bf16.msra.mxu1 %v1146_v30  ;;  %v1130_v56 = vld [vmem:[#allocation2 + $0x144] ss:$8 sps:$4 sm:$0xff]   ;;  %v1128_v57 = vld [vmem:[#allocation2 + $0x140] ss:$8 sps:$4 sm:$0xff]   ;;  %v1133_v58 = vld [vmem:[#allocation2 + $0x154] ss:$8 sps:$4 sm:$0xff]  }
  0x49   :  { %406 = vmatprep.subr.bf16.mxu0 %v1081_v10  ;;  %976 = vmatprep.subr.bf16.mxu1 %v1147_v31  ;;  %v1131_v59 = vld [vmem:[#allocation2 + $0x150] ss:$8 sps:$4 sm:$0xff]   ;;  %v1136_v60 = vld [vmem:[#allocation2 + $0x164] ss:$8 sps:$4 sm:$0xff]   ;;  %v1134_v61 = vld [vmem:[#allocation2 + $0x160] ss:$8 sps:$4 sm:$0xff]  }
  0x4a   :  { %v1139_v62 = vld [vmem:[#allocation2 + $0x174] ss:$8 sps:$4 sm:$0xff]   ;;  %v1137_v63 = vld [vmem:[#allocation2 + $0x170] ss:$8 sps:$4 sm:$0xff]   ;;  %v1140_v0 = vld [vmem:[%s1424_s0 + $0x8] ss:$0 sps:$4 sm:$0xff]  }
  0x4b   :  { %v1153_v1 = vld [vmem:[#allocation4 + $0x70] sm:$0xff]   ;;  %v1155_v3 = vld [vmem:[#allocation4 + $0x78] sm:$0xff]   ;;  %v128_v7 = vshrl.u32 %v127_v6, 7  ;;  %v124_v8 = vld [vmem:[%s1426_s2] sm:$0x3] }
  0x4c   :  { %407 = vmatpush1.bf16.msra.mxu0 %v1083_v11  ;;  %977 = vmatpush3.bf16.msra.mxu1 %v1148_v34  ;;  %v1154_v2 = vld [vmem:[#allocation4 + $0x30] sm:$0xff]   ;;  %v1156_v4 = vld [vmem:[#allocation4 + $0x38] sm:$0xff]   ;;  %v125_v9 = vunpack.c.l.bf16 %v124_v8  ;;  %v1157_v25 = vld [vmem:[%s1429_s5] sm:$0xff]  }
  0x4d   :  { %408 = vmatprep.subr.bf16.mxu0 %v1084_v12  ;;  %978 = vmatprep.subr.bf16.mxu1 %v1149_v36  ;;  %v1361_v10 = vsub.s32 0, %v128_v7  ;;  %v133_v11 = vsub.s32 2, %v128_v7  ;;  %v1158_v27 = vld [vmem:[%s1429_s5 + $0x8] sm:$0xff]   ;;  %v1161_v30 = vld [vmem:[%s1429_s5 + $0x20] sm:$0xff]  }
  0x4e   :  { %v1162_v31 = vld [vmem:[%s1429_s5 + $0x28] sm:$0xff]   ;;  %v514_v34 = vld [vmem:[%s1428_s4] sm:$0x1] }
  0x4f   :  { %v130_v12 = vrot.slane %v125_v9, %v1361_v10  ;;  %v134_v13 = vrot.slane %v125_v9, %v133_v11 }
  0x50   :  { %409 = vmatpush1.bf16.msra.mxu0 %v1086_v15  ;;  %979 = vmatpush3.bf16.msra.mxu1 %v1150_v38 }
  0x51   :  { %410 = vmatprep.subr.bf16.mxu0 %v1087_v16  ;;  %980 = vmatprep.subr.bf16.mxu1 %v1151_v39  ;;  %v140_v14 = vrot.slane %v130_v12, %v1361_v10  ;;  %v144_v15 = vrot.slane %v134_v13, %v1361_v10 }
  0x54   :  { %411 = vmatpush1.bf16.msra.mxu0 %v1089_v17  ;;  %981 = vmatpush3.bf16.msra.mxu1 %v1152_v42 }
  0x55   :  { %412 = vmatprep.subr.bf16.mxu0 %v1090_v18  ;;  %982 = vmatprep.subr.bf16.mxu1 %v1153_v1 }
  0x58   :  { %413 = vmatpush1.bf16.msra.mxu0 %v1092_v19  ;;  %983 = vmatpush3.bf16.msra.mxu1 %v1154_v2 }
  0x59   :  { %414 = vmatprep.subr.bf16.mxu0 %v1093_v20  ;;  %984 = vmatprep.subr.bf16.mxu1 %v1155_v3 }
  0x5c   :  { %415 = vmatpush1.bf16.msra.mxu0 %v1095_v21  ;;  %985 = vmatpush3.bf16.msra.mxu1 %v1156_v4 }
  0x5d   :  { %416 = vmatprep.subr.bf16.mxu0 %v1096_v23  ;;  %1010 = vmatprep.subr.bf16.mxu1 %v1251_v5 }
  0x60   :  { %417 = vmatpush1.bf16.msra.mxu0 %v1098_v28  ;;  %v1159_v28 = vld [vmem:[%s1429_s5 + $0x10] sm:$0xff]  }
  0x61   :  { %418 = vmatprep.subr.bf16.mxu0 %v1099_v29  ;;  %v1160_v29 = vld [vmem:[%s1429_s5 + $0x18] sm:$0xff]  }
  0x64   :  { %419 = vmatpush1.bf16.msra.mxu0 %v1101_v32  ;;  %v1163_v32 = vld [vmem:[%s1429_s5 + $0x30] sm:$0xff]  }
  0x65   :  { %420 = vmatprep.subr.bf16.mxu0 %v1102_v33  ;;  %v1164_v33 = vld [vmem:[%s1429_s5 + $0x38] sm:$0xff]  }
  0x68   :  { %421 = vmatpush1.bf16.msra.mxu0 %v1104_v35  ;;  %v515_v35 = vunpack.c.l.bf16 %v514_v34 }
  0x69   :  { %422 = vmatprep.subr.bf16.mxu0 %v1105_v37 }
  0x6a   :  { %v519_v37 = vrot.slane %v515_v35, %v1361_v10 }
  0x6c   :  { %423 = vmatpush1.bf16.msra.mxu0 %v1107_v40 }
  0x6d   :  { %424 = vmatprep.subr.bf16.mxu0 %v1108_v41 }
  0x70   :  { %425 = vmatpush1.bf16.msra.mxu0 %v1110_v43 }
  0x71   :  { %426 = vmatprep.subr.bf16.mxu0 %v1111_v44  ;;  %v1165_v44 = vld [vmem:[#allocation6] sm:$0xff]  }
  0x74   :  { %427 = vmatpush1.bf16.msra.mxu0 %v1113_v45 }
  0x75   :  { %437 = vmatprep.subr.bf16.mxu0 %v1118_v46  ;;  %v1166_v46 = vld [vmem:[#allocation6 + $0x8] sm:$0xff]  }
  0x77   :  { %429 = vmatmul.mubr.bf16.vlgmr.msra.gmra.mrb[0].mxu0 %v887_v47  ;;  %v1167_v47 = vld [vmem:[#allocation6 + $0x10] sm:$0xff]  }
  0x78   :  { %438 = vmatpush1.bf16.msra.mxu0 %v1116_v48  ;;  %469 = vmatprep.mubr.bf16.mxu0 %v1250_v51  ;;  %v1168_v48 = vld [vmem:[#allocation6 + $0x18] sm:$0xff]   ;;  %v1171_v51 = vld [vmem:[#allocation6 + $0x30] sm:$0xff]  }
  0x79   :  { %439 = vmatprep.subr.bf16.mxu0 %v1121_v49  ;;  %v1169_v49 = vld [vmem:[#allocation6 + $0x20] sm:$0xff]  }
  0x7c   :  { %440 = vmatpush1.bf16.msra.mxu0 %v1119_v50  ;;  %v1170_v50 = vld [vmem:[#allocation6 + $0x28] sm:$0xff]  }
  0x7d   :  { %441 = vmatprep.subr.bf16.mxu0 %v1124_v52  ;;  %v1172_v52 = vld [vmem:[#allocation6 + $0x38] sm:$0xff]  }
  0x80   :  { %442 = vmatpush1.bf16.msra.mxu0 %v1122_v53  ;;  %v674_v53 = vld [vmem:[%s1430_s6] sm:$0x1] }
  0x81   :  { %443 = vmatprep.subr.bf16.mxu0 %v1127_v54  ;;  %v675_v54 = vunpack.c.l.bf16 %v674_v53 }
  0x84   :  { %444 = vmatpush1.bf16.msra.mxu0 %v1125_v55  ;;  %v679_v55 = vrot.slane %v675_v54, %v1361_v10 }
  0x85   :  { %445 = vmatprep.subr.bf16.mxu0 %v1130_v56 }
  0x88   :  { %446 = vmatpush1.bf16.msra.mxu0 %v1128_v57 }
  0x89   :  { %447 = vmatprep.subr.bf16.mxu0 %v1133_v58 }
  0x8c   :  { %448 = vmatpush1.bf16.msra.mxu0 %v1131_v59 }
  0x8d   :  { %449 = vmatprep.subr.bf16.mxu0 %v1136_v60 }
  0x90   :  { %450 = vmatpush1.bf16.msra.mxu0 %v1134_v61 }
  0x91   :  { %451 = vmatprep.subr.bf16.mxu0 %v1139_v62 }
  0x94   :  { %452 = vmatpush1.bf16.msra.mxu0 %v1137_v63  ;;  %v786_v63 = vld [vmem:[%s1432_s8] sm:$0x1] }
  0x97   :  { %470 = vmatmul.mubr.bf16.vlgmr.msra.gmra.mrb[0].mxu0 %v1140_v0  ;;  %v787_v0 = vunpack.c.l.bf16 %v786_v63 }
  0x99   :  { %v791_v1 = vrot.slane %v787_v0, %v1361_v10 }
 0x16a   :  { %v471_v16 = vpop.f32.mrb[0].mxu0 }
 0x16b   :  { %v1050_v17 = vadd.f32 %v471_v16, %v140_v14  ;;  %v473_v18 = vpop.f32.mrb[1].mxu0 }
 0x16c   :  { %v1051_v19 = vadd.f32 %v473_v18, %v144_v15  ;;  %v475_v20 = vpop.f32.mrb[2].mxu0 }
 0x16d   :  { %v478_v21 = vmax.f32 %v1050_v17, 0.0  ;;  %v476_v22 = vpop.f32.mrb[3].mxu0 }
 0x16e   :  { %v479_v23 = vmax.f32 %v1051_v19, 0.0 }
 0x16f   :  { %v480_v26 = vpack.c.bf16 %v478_v21, %v478_v21 }
 0x170   :  { %v481_v24 = vpack.c.bf16 %v479_v23, %v479_v23 }
 0x172   :  { %648 = vmatprep.mubr.bf16.mxu1 %v481_v24 }
 0x173   :  { %649 = vmatmul.mubr.bf16.vlgmr.msra.gmra.mrb[0].mxu1 %v480_v26 }
 0x174   :  { %1011 = vmatpush3.bf16.msra.mxu1 %v1157_v25  ;;  %1026 = vmatprep.mubr.msk.bf16.mxu1 %vm1252_vm0, %v1251_v5 }
 0x175   :  { %1012 = vmatprep.subr.bf16.mxu1 %v1251_v5 }
 0x178   :  { %1013 = vmatpush3.bf16.msra.mxu1 %v1158_v27 }
 0x179   :  { %1014 = vmatprep.subr.bf16.mxu1 %v1251_v5 }
 0x17c   :  { %1015 = vmatpush3.bf16.msra.mxu1 %v1159_v28 }
 0x17d   :  { %1016 = vmatprep.subr.bf16.mxu1 %v1251_v5 }
 0x180   :  { %1017 = vmatpush3.bf16.msra.mxu1 %v1160_v29 }
 0x181   :  { %1018 = vmatprep.subr.bf16.mxu1 %v1251_v5 }
 0x184   :  { %1019 = vmatpush3.bf16.msra.mxu1 %v1161_v30 }
 0x185   :  { %1020 = vmatprep.subr.bf16.mxu1 %v1251_v5 }
 0x188   :  { %1021 = vmatpush3.bf16.msra.mxu1 %v1162_v31 }
 0x189   :  { %1022 = vmatprep.subr.bf16.mxu1 %v1251_v5 }
 0x18c   :  { %1023 = vmatpush3.bf16.msra.mxu1 %v1163_v32 }
 0x18d   :  { %1024 = vmatprep.subr.bf16.mxu1 %v1251_v5 }
 0x190   :  { %1025 = vmatpush3.bf16.msra.mxu1 %v1164_v33 }
 0x191   :  { %1030 = vmatprep.subr.bf16.mxu1 %v1251_v5 }
 0x246   :  { %v986_v36 = vpop.f32.mrb[0].mxu1 }
 0x247   :  { %v987_v38 = vpop.f32.mrb[1].mxu1 }
 0x248   :  { %v988_v39 = vadd.f32 %v987_v38, %v986_v36  ;;  %v989_v40 = vpop.f32.mrb[2].mxu1 }
 0x249   :  { %v990_v41 = vpop.f32.mrb[3].mxu1 }
 0x24a   :  { %v651_v42 = vadd.f32 %v988_v39, %v519_v37 }
 0x24c   :  { %v656_v43 = vmax.f32 %v651_v42, 0.0 }
 0x24e   :  { %v657_v45 = vpack.c.bf16 %v656_v43, %v656_v43 }
 0x250   :  { %1027 = vmatmul.mubr.bf16.vlgmr.msra.gmra.mrb[4].mxu1 %v657_v45 }
 0x251   :  { %1031 = vmatpush3.bf16.msra.mxu1 %v1165_v44  ;;  %1046 = vmatprep.mubr.msk.bf16.mxu1 %vm1252_vm0, %v1251_v5 }
 0x252   :  { %1032 = vmatprep.subr.bf16.mxu1 %v1251_v5 }
 0x255   :  { %1033 = vmatpush3.bf16.msra.mxu1 %v1166_v46 }
 0x256   :  { %1034 = vmatprep.subr.bf16.mxu1 %v1251_v5 }
 0x259   :  { %1035 = vmatpush3.bf16.msra.mxu1 %v1167_v47 }
 0x25a   :  { %1036 = vmatprep.subr.bf16.mxu1 %v1251_v5 }
 0x25d   :  { %1037 = vmatpush3.bf16.msra.mxu1 %v1168_v48 }
 0x25e   :  { %1038 = vmatprep.subr.bf16.mxu1 %v1251_v5 }
 0x261   :  { %1039 = vmatpush3.bf16.msra.mxu1 %v1169_v49 }
 0x262   :  { %1040 = vmatprep.subr.bf16.mxu1 %v1251_v5 }
 0x265   :  { %1041 = vmatpush3.bf16.msra.mxu1 %v1170_v50 }
 0x266   :  { %1042 = vmatprep.subr.bf16.mxu1 %v1251_v5 }
 0x269   :  { %1043 = vmatpush3.bf16.msra.mxu1 %v1171_v51 }
 0x26a   :  { %1044 = vmatprep.subr.bf16.mxu1 %v1251_v5 }
 0x26d   :  { %1045 = vmatpush3.bf16.msra.mxu1 %v1172_v52 }
 0x323   :  { %v762_v56 = vpop.f32.mrb[4].mxu1 }
 0x324   :  { %v763_v57 = vadd.f32 %v762_v56, %v679_v55  ;;  %v1028_v58 = vpop.f32.mrb[5].mxu1 }
 0x325   :  { %v765_v59 = vpop.f32.mrb[6].mxu1 }
 0x326   :  { %v768_v60 = vmax.f32 %v763_v57, 0.0  ;;  %v1029_v61 = vpop.f32.mrb[7].mxu1 }
 0x328   :  { %v769_v62 = vpack.c.bf16 %v768_v60, %v768_v60 }
 0x32a   :  { %1047 = vmatmul.mubr.bf16.vlgmr.msra.gmra.mrb[8].mxu1 %v769_v62 }
 0x3fd   :  { %v874_v2 = vpop.f32.mrb[8].mxu1 }
 0x3fe   :  { %v875_v3 = vadd.f32 %v874_v2, %v791_v1  ;;  %v1048_v4 = vpop.f32.mrb[9].mxu1 }
 0x3ff   :  { %v877_v5 = vpop.f32.mrb[10].mxu1 }
 0x400   :  { %880 = vst [vmem:[%s1433_s9] sm:$0xff] %v875_v3  ;;  %v1049_v6 = vpop.f32.mrb[11].mxu1 }
 0x401   :  { %885 = vsyncpa [#allocation3], 1 }
 0x402   :  { %886 = vsyncpa [#allocation5], 1 }

// kernel: preq_forward.3
= control target key start
LH: loop header
LB: loop body
LE: loop exit
PB: predicated region body
PF: predicated region fallthrough
CT: control target
= control target key end

     0   :  { %v6764_v17 = vmov 2102212464   ;;  %v6755_v19 = vmov 920167782   ;;  %v6753_v25 = vmov 1326507024   ;;  %s6750_s0 = inlined_call_operand.vmem [shape: f32[8,128], index: 0, kind: input, shape index: {}]   ;;  %s6751_s1 = inlined_call_operand.vmem [shape: f32[8,128], index: 1, kind: input, shape index: {}]   ;;  %s6752_s2 = inlined_call_operand.vmem [shape: f32[1,128], index: 2, kind: output, shape index: {}]  }
   0x1   :  { %v11_v0 = vld [vmem:[%s6750_s0 + $0x7] sm:$0x1]  ;;  %v228_v4 = vld [vmem:[%s6750_s0 + $0x6] sm:$0x1]  ;;  %v455_v13 = vld [vmem:[%s6750_s0 + $0x3] sm:$0x1] }
   0x2   :  { %v3875_v1 = vmul.f32 0.5, %v11_v0  ;;  %v3881_v6 = vmul.f32 0.5, %v228_v4  ;;  %v3889_v16 = vmul.f32 0.5, %v455_v13  ;;  %v6760_v27 = vmov 683565275  }
   0x3   :  { %v6758_v29 = vmov 2475754826   ;;  %v6762_v33 = vmov 2131351028  }
   0x4   :  { %v16_v2 = vand.u32 2139095040, %v3875_v1  ;;  %v233_v8 = vand.u32 2139095040, %v3881_v6  ;;  %v460_v21 = vand.u32 2139095040, %v3889_v16  ;;  %v13_v22 = vand.u32 2147483647, %v3875_v1 }
   0x5   :  { %v230_v56 = vand.u32 2147483647, %v3881_v6 }
   0x6   :  { %v17_v3 = vshrl.u32 %v16_v2, 23  ;;  %v234_v9 = vshrl.u32 %v233_v8, 23  ;;  %v461_v38 = vshrl.u32 %v460_v21, 23  ;;  %v20_v39 = vand.u32 8388607, %v13_v22 }
   0x8   :  { %v3621_v5 = vadd.s32 4294967169, %v17_v3  ;;  %v3629_v11 = vadd.s32 4294967169, %v234_v9  ;;  %v3637_v46 = vadd.s32 4294967169, %v461_v38  ;;  %v21_v47 = vor.u32 8388608, %v20_v39 }
   0xa   :  { %v23_v7 = vadd.s32 1, %v3621_v5  ;;  %v240_v14 = vadd.s32 1, %v3629_v11  ;;  %v467_v54 = vadd.s32 1, %v3637_v46  ;;  %v3930_v55 = vshll.u32 %v21_v47, 8 }
   0xb   :  { %v457_v47 = vand.u32 2147483647, %v3889_v16 }
   0xc   :  { %vm24_vm0 = vcmp.gt.s32.totalorder %v23_v7, 0  ;;  %vm241_vm1 = vcmp.gt.s32.totalorder %v240_v14, 0  ;;  %vm468_vm6 = vcmp.gt.s32.totalorder %v467_v54, 0 }
   0xd   :  { %v25_v10 = vsel %vm24_vm0, %v23_v7, 0  ;;  %v242_v31 = vsel %vm241_vm1, %v240_v14, 0  ;;  %v469_v21 = vsel %vm468_vm6, %v467_v54, 0 }
   0xe   :  { %v27_v12 = vand.u32 31, %v25_v10  ;;  %v3896_v23 = vshrl.u32 %v25_v10, 5  ;;  %v244_v41 = vand.u32 31, %v242_v31  ;;  %v3938_v60 = vshrl.u32 %v242_v31, 5 }
   0xf   :  { %v237_v10 = vand.u32 8388607, %v230_v56 }
  0x10   :  { %v3887_v15 = vsub.s32 32, %v27_v12  ;;  %v39_v18 = vshll.u32 %v6764_v17, %v27_v12  ;;  %v42_v24 = vshll.u32 %v6755_v19, %v27_v12  ;;  %v30_v28 = vshll.u32 %v6760_v27, %v27_v12 }
  0x11   :  { %v33_v30 = vshll.u32 %v6758_v29, %v27_v12  ;;  %v36_v35 = vshll.u32 %v6762_v33, %v27_v12  ;;  %vm48_vm2 = vcmp.lt.s32.totalorder %v3896_v23, 4  ;;  %vm45_vm3 = vcmp.lt.s32.totalorder %v3896_v23, 1 }
  0x12   :  { %v40_v20 = vshrl.u32 %v6755_v19, %v3887_v15  ;;  %v43_v26 = vshrl.u32 %v6753_v25, %v3887_v15  ;;  %v31_v32 = vshrl.u32 %v6758_v29, %v3887_v15  ;;  %v34_v34 = vshrl.u32 %v6762_v33, %v3887_v15 }
  0x13   :  { %v37_v36 = vshrl.u32 %v6764_v17, %v3887_v15  ;;  %vm47_vm4 = vcmp.lt.s32.totalorder %v3896_v23, 3  ;;  %v3919_v49 = vsub.s32 32, %v244_v41  ;;  %vm46_vm5 = vcmp.lt.s32.totalorder %v3896_v23, 2 }
  0x14   :  { %v41_v37 = vor.u32 %v40_v20, %v39_v18  ;;  %v44_v40 = vor.u32 %v43_v26, %v42_v24  ;;  %v32_v42 = vor.u32 %v31_v32, %v30_v28  ;;  %v35_v43 = vor.u32 %v34_v34, %v33_v30  ;;  %v702_v30 = vld [vmem:[%s6750_s0 + $0x4] sm:$0x1] }
  0x15   :  { %v38_v44 = vor.u32 %v37_v36, %v36_v35  ;;  %v256_v57 = vshll.u32 %v6764_v17, %v244_v41  ;;  %v257_v58 = vshrl.u32 %v6755_v19, %v3919_v49  ;;  %v247_v61 = vshll.u32 %v6760_v27, %v244_v41 }
  0x16   :  { %v54_v45 = vsel %vm48_vm2, %v41_v37, 920167782  ;;  %v58_v48 = vsel %vm48_vm2, %v44_v40, 1326507024  ;;  %v53_v50 = vsel %vm45_vm3, %v32_v42, %v35_v43  ;;  %v250_v62 = vshll.u32 %v6758_v29, %v244_v41 }
  0x17   :  { %v55_v51 = vsel %vm47_vm4, %v38_v44, %v54_v45  ;;  %v57_v52 = vsel %vm45_vm3, %v35_v43, %v38_v44  ;;  %v59_v53 = vsel %vm47_vm4, %v41_v37, %v58_v48  ;;  %v248_v0 = vshrl.u32 %v6758_v29, %v3919_v49 }
  0x18   :  { %v56_v59 = vsel %vm46_vm5, %v53_v50, %v55_v51  ;;  %v60_v63 = vsel %vm46_vm5, %v57_v52, %v59_v53  ;;  %v259_v2 = vshll.u32 %v6755_v19, %v244_v41  ;;  %v260_v3 = vshrl.u32 %v6753_v25, %v3919_v49 }
  0x19   :  { %v251_v4 = vshrl.u32 %v6762_v33, %v3919_v49  ;;  %v253_v5 = vshll.u32 %v6762_v33, %v244_v41  ;;  %v254_v7 = vshrl.u32 %v6764_v17, %v3919_v49  ;;  %v258_v11 = vor.u32 %v257_v58, %v256_v57 }
  0x1a   :  { %v3955_v8 = vmul.u32.u64.low %v3930_v55, %v56_v59  ;;  %v3956_v9 = vmul.u32.u64.high %v3930_v55, %v56_v59, %v3955_v8  ;;  %v29_v12 = vshrl.u32 %v6760_v27, %v3887_v15  ;;  %vm265_vm7 = vcmp.lt.s32.totalorder %v3938_v60, 4 }
  0x1b   :  { %v3964_v13 = vmul.u32.u64.low %v3930_v55, %v60_v63  ;;  %v3965_v14 = vmul.u32.u64.high %v3930_v55, %v60_v63, %v3964_v13  ;;  %v50_v18 = vsel %vm48_vm2, %v38_v44, 2102212464  ;;  %v261_v20 = vor.u32 %v260_v3, %v259_v2 }
  0x1c   :  { %v249_v24 = vor.u32 %v248_v0, %v247_v61  ;;  %v252_v26 = vor.u32 %v251_v4, %v250_v62  ;;  %v255_v28 = vor.u32 %v254_v7, %v253_v5  ;;  %v238_v31 = vor.u32 8388608, %v237_v10 }
  0x1d   :  { %vm262_vm8 = vcmp.lt.s32.totalorder %v3938_v60, 1  ;;  %vm264_vm9 = vcmp.lt.s32.totalorder %v3938_v60, 3  ;;  %v271_v15 = vsel %vm265_vm7, %v258_v11, 920167782  ;;  %v49_v32 = vsel %vm45_vm3, %v29_v12, %v32_v42 }
  0x1e   :  { %v51_v34 = vsel %vm47_vm4, %v35_v43, %v50_v18  ;;  %v471_v35 = vand.u32 31, %v469_v21  ;;  %v275_v36 = vsel %vm265_vm7, %v261_v20, 1326507024  ;;  %vm263_vm10 = vcmp.lt.s32.totalorder %v3938_v60, 2 }
  0x1f   :  { %v270_v37 = vsel %vm262_vm8, %v249_v24, %v252_v26  ;;  %v272_v38 = vsel %vm264_vm9, %v255_v28, %v271_v15  ;;  %v3988_v39 = vmul.f32 0.5, %v702_v30  ;;  %v52_v40 = vsel %vm46_vm5, %v49_v32, %v51_v34 }
  0x20   :  { %v71_v41 = vadd.s32 1, %v3956_v9  ;;  %v278_v42 = vshll.u32 %v238_v31, 8  ;;  %vm70_vm11 = vc.u32 %v3965_v14, %v3955_v8  ;;  %v274_v43 = vsel %vm262_vm8, %v252_v26, %v255_v28 }
  0x21   :  { %v276_v44 = vsel %vm264_vm9, %v258_v11, %v275_v36  ;;  %v472_v45 = vsub.s32 32, %v471_v35  ;;  %v273_v46 = vsel %vm263_vm10, %v270_v37, %v272_v38  ;;  %v707_v23 = vand.u32 2139095040, %v3988_v39 }
  0x22   :  { %v68_v48 = vmul.u32 %v3930_v55, %v52_v40  ;;  %v72_v50 = vsel %vm70_vm11, %v71_v41, %v3956_v9  ;;  %v246_v51 = vshrl.u32 %v6760_v27, %v3919_v49  ;;  %v277_v52 = vsel %vm263_vm10, %v274_v43, %v276_v44 }
  0x23   :  { %v4009_v53 = vmul.u32.u64.low %v278_v42, %v273_v46  ;;  %v4010_v54 = vmul.u32.u64.high %v278_v42, %v273_v46, %v4009_v53  ;;  %v483_v57 = vshll.u32 %v6764_v17, %v471_v35  ;;  %v484_v58 = vshrl.u32 %v6755_v19, %v472_v45 }
  0x24   :  { %v267_v59 = vsel %vm265_vm7, %v255_v28, 2102212464  ;;  %v4017_v55 = vshrl.u32 %v469_v21, 5  ;;  %v486_v61 = vshll.u32 %v6755_v19, %v471_v35  ;;  %v487_v49 = vshrl.u32 %v6753_v25, %v472_v45 }
  0x25   :  { %v4021_v62 = vmul.u32.u64.low %v278_v42, %v277_v52  ;;  %v4022_v63 = vmul.u32.u64.high %v278_v42, %v277_v52, %v4021_v62  ;;  %v474_v0 = vshll.u32 %v6760_v27, %v471_v35  ;;  %v477_v2 = vshll.u32 %v6758_v29, %v471_v35 }
  0x26   :  { %v475_v3 = vshrl.u32 %v6758_v29, %v472_v45  ;;  %v478_v4 = vshrl.u32 %v6762_v33, %v472_v45  ;;  %v480_v5 = vshll.u32 %v6762_v33, %v471_v35  ;;  %v481_v7 = vshrl.u32 %v6764_v17, %v472_v45  ;;  %v959_v62 = vld [vmem:[%s6750_s0 + $0x5] sm:$0x1] }
  0x27   :  { %v485_v9 = vor.u32 %v484_v58, %v483_v57  ;;  %v708_v10 = vshrl.u32 %v707_v23, 23  ;;  %v464_v11 = vand.u32 8388607, %v457_v47  ;;  %v488_v12 = vor.u32 %v487_v49, %v486_v61 }
  0x28   :  { %vm492_vm12 = vcmp.lt.s32.totalorder %v4017_v55, 4  ;;  %v73_v13 = vadd.s32 %v72_v50, %v68_v48  ;;  %v266_v18 = vsel %vm262_vm8, %v246_v51, %v249_v24  ;;  %v268_v20 = vsel %vm264_vm9, %v252_v26, %v267_v59 }
  0x29   :  { %v476_v21 = vor.u32 %v475_v3, %v474_v0  ;;  %v479_v28 = vor.u32 %v478_v4, %v477_v2  ;;  %v482_v30 = vor.u32 %v481_v7, %v480_v5  ;;  %vm489_vm13 = vcmp.lt.s32.totalorder %v4017_v55, 1 }
  0x2a   :  { %vm491_vm14 = vcmp.lt.s32.totalorder %v4017_v55, 3  ;;  %v498_v31 = vsel %vm492_vm12, %v485_v9, 920167782  ;;  %v3645_v15 = vadd.s32 4294967169, %v708_v10  ;;  %v269_v32 = vsel %vm263_vm10, %v266_v18, %v268_v20 }
  0x2b   :  { %v288_v34 = vadd.s32 1, %v4010_v54  ;;  %v465_v24 = vor.u32 8388608, %v464_v11  ;;  %v502_v26 = vsel %vm492_vm12, %v488_v12, 1326507024  ;;  %v74_v35 = vadd.s32 536870912, %v73_v13 }
  0x2c   :  { %vm287_vm15 = vc.u32 %v4022_v63, %v4009_v53  ;;  %vm490_vm0 = vcmp.lt.s32.totalorder %v4017_v55, 2  ;;  %v497_v36 = vsel %vm489_vm13, %v476_v21, %v479_v28  ;;  %v499_v37 = vsel %vm491_vm14, %v482_v30, %v498_v31 }
  0x2d   :  { %v285_v60 = vmul.u32 %v278_v42, %v269_v32  ;;  %v501_v38 = vsel %vm489_vm13, %v479_v28, %v482_v30  ;;  %v503_v40 = vsel %vm491_vm14, %v485_v9, %v502_v26  ;;  %v714_v41 = vadd.s32 1, %v3645_v15 }
  0x2e   :  { %v289_v43 = vsel %vm287_vm15, %v288_v34, %v4010_v54  ;;  %v505_v44 = vshll.u32 %v465_v24, 8  ;;  %v4058_v46 = vshrl.u32 %v74_v35, 30  ;;  %v500_v23 = vsel %vm490_vm0, %v497_v36, %v499_v37 }
  0x2f   :  { %v504_v48 = vsel %vm490_vm0, %v501_v38, %v503_v40  ;;  %v290_v50 = vadd.s32 %v289_v43, %v285_v60  ;;  %vm715_vm1 = vcmp.gt.s32.totalorder %v714_v41, 0  ;;  %v473_v57 = vshrl.u32 %v6760_v27, %v472_v45 }
  0x30   :  { %v4064_v42 = vmul.u32.u64.low %v505_v44, %v500_v23  ;;  %v4065_v51 = vmul.u32.u64.high %v505_v44, %v500_v23, %v4064_v42  ;;  %v76_v52 = vshll.u32 %v4058_v46, 30  ;;  %v494_v59 = vsel %vm492_vm12, %v482_v30, 2102212464 }
  0x31   :  { %v4070_v54 = vmul.u32.u64.low %v505_v44, %v504_v48  ;;  %v4071_v58 = vmul.u32.u64.high %v505_v44, %v504_v48, %v4070_v54  ;;  %v716_v61 = vsel %vm715_vm1, %v714_v41, 0  ;;  %v291_v49 = vadd.s32 536870912, %v290_v50 }
  0x32   :  { %v4078_v0 = vsub.s32 %v73_v13, %v76_v52  ;;  %v493_v2 = vsel %vm489_vm13, %v473_v57, %v476_v21  ;;  %v495_v45 = vsel %vm491_vm14, %v479_v28, %v494_v59  ;;  %v718_v3 = vand.u32 31, %v716_v61 }
  0x33   :  { %v4084_v4 = vmul.f32 0.5, %v959_v62  ;;  %v4086_v5 = vshrl.u32 %v291_v49, 30  ;;  %v496_v7 = vsel %vm490_vm0, %v493_v2, %v495_v45  ;;  %v515_v9 = vadd.s32 1, %v4065_v51 }
  0x34   :  { %v79_v10 = vsub.s32 0, %v4078_v0  ;;  %vm514_vm2 = vc.u32 %v4071_v58, %v4064_v42  ;;  %v719_v11 = vsub.s32 32, %v718_v3  ;;  %v512_v18 = vmul.u32 %v505_v44, %v496_v7 }
  0x35   :  { %v964_v12 = vand.u32 2139095040, %v4084_v4  ;;  %v293_v13 = vshll.u32 %v4086_v5, 30  ;;  %v516_v20 = vsel %vm514_vm2, %v515_v9, %v4065_v51  ;;  %v704_v55 = vand.u32 2147483647, %v3988_v39 }
  0x36   :  { %v3622_v21 = vmin.u32 %v79_v10, %v4078_v0  ;;  %v730_v28 = vshll.u32 %v6764_v17, %v718_v3  ;;  %v731_v30 = vshrl.u32 %v6755_v19, %v719_v11  ;;  %v4101_v31 = vshrl.u32 %v716_v61, 5 }
  0x37   :  { %v733_v15 = vshll.u32 %v6755_v19, %v718_v3  ;;  %v734_v32 = vshrl.u32 %v6753_v25, %v719_v11  ;;  %v965_v34 = vshrl.u32 %v964_v12, 23  ;;  %v4105_v24 = vsub.s32 %v290_v50, %v293_v13 }
  0x38   :  { %v517_v26 = vadd.s32 %v516_v20, %v512_v18  ;;  %v721_v35 = vshll.u32 %v6760_v27, %v718_v3  ;;  %v724_v36 = vshll.u32 %v6758_v29, %v718_v3  ;;  %v722_v37 = vshrl.u32 %v6758_v29, %v719_v11 }
  0x39   :  { %v725_v60 = vshrl.u32 %v6762_v33, %v719_v11  ;;  %v727_v38 = vshll.u32 %v6762_v33, %v718_v3  ;;  %v728_v40 = vshrl.u32 %v6764_v17, %v719_v11  ;;  %v81_v41 = vclz %v3622_v21 }
  0x3a   :  { %v732_v43 = vor.u32 %v731_v30, %v730_v28  ;;  %v711_v44 = vand.u32 8388607, %v704_v55  ;;  %v735_v23 = vor.u32 %v734_v32, %v733_v15  ;;  %vm739_vm3 = vcmp.lt.s32.totalorder %v4101_v31, 4 }
  0x3b   :  { %v3653_v48 = vadd.s32 4294967169, %v965_v34  ;;  %v296_v50 = vsub.s32 0, %v4105_v24  ;;  %v518_v51 = vadd.s32 536870912, %v517_v26  ;;  %v723_v52 = vor.u32 %v722_v37, %v721_v35 }
  0x3c   :  { %v726_v57 = vor.u32 %v725_v60, %v724_v36  ;;  %v729_v54 = vor.u32 %v728_v40, %v727_v38  ;;  %v3623_v59 = vadd.s32 4294967294, %v81_v41  ;;  %vm736_vm4 = vcmp.lt.s32.totalorder %v4101_v31, 1  ;;  %v1216_v38 = vld [vmem:[%s6750_s0 + $0x1] sm:$0x1] }
  0x3d   :  { %vm738_vm5 = vcmp.lt.s32.totalorder %v4101_v31, 3  ;;  %v745_v61 = vsel %vm739_vm3, %v732_v43, 920167782  ;;  %v712_v49 = vor.u32 8388608, %v711_v44  ;;  %v749_v62 = vsel %vm739_vm3, %v735_v23, 1326507024 }
  0x3e   :  { %v971_v2 = vadd.s32 1, %v3653_v48  ;;  %v3630_v45 = vmin.u32 %v296_v50, %v4105_v24  ;;  %v4124_v3 = vshrl.u32 %v518_v51, 30  ;;  %vm737_vm6 = vcmp.lt.s32.totalorder %v4101_v31, 2 }
  0x3f   :  { %v744_v7 = vsel %vm736_vm4, %v723_v52, %v726_v57  ;;  %v746_v9 = vsel %vm738_vm5, %v729_v54, %v745_v61  ;;  %vm3624_vm7 = vcmp.lt.s32.totalorder %v3623_v59, 0  ;;  %v748_v10 = vsel %vm736_vm4, %v726_v57, %v729_v54 }
  0x40   :  { %v750_v12 = vsel %vm738_vm5, %v732_v43, %v749_v62  ;;  %v752_v13 = vshll.u32 %v712_v49, 8  ;;  %vm972_vm8 = vcmp.gt.s32.totalorder %v971_v2, 0  ;;  %v747_v18 = vsel %vm737_vm6, %v744_v7, %v746_v9 }
  0x41   :  { %v84_v20 = vsel %vm3624_vm7, 0, %v3623_v59  ;;  %v298_v21 = vclz %v3630_v45  ;;  %v520_v28 = vshll.u32 %v4124_v3, 30  ;;  %v751_v30 = vsel %vm737_vm6, %v748_v10, %v750_v12 }
  0x42   :  { %v973_v15 = vsel %vm972_vm8, %v971_v2, 0  ;;  %v4140_v32 = vmul.u32.u64.low %v752_v13, %v747_v18  ;;  %v4141_v34 = vmul.u32.u64.high %v752_v13, %v747_v18, %v4140_v32  ;;  %v89_v35 = vsub.s32 4294967266, %v84_v20 }
  0x43   :  { %v720_v36 = vshrl.u32 %v6760_v27, %v719_v11  ;;  %v4145_v37 = vmul.u32.u64.low %v752_v13, %v751_v30  ;;  %v4146_v60 = vmul.u32.u64.high %v752_v13, %v751_v30, %v4145_v37  ;;  %v3631_v40 = vadd.s32 4294967294, %v298_v21 }
  0x44   :  { %v4151_v41 = vsub.s32 %v517_v26, %v520_v28  ;;  %v741_v43 = vsel %vm739_vm3, %v729_v54, 2102212464  ;;  %v975_v44 = vand.u32 31, %v973_v15  ;;  %v69_v23 = vadd.s32 %v3955_v8, %v3965_v14 }
  0x45   :  { %v4157_v48 = vmul.f32 0.5, %v1216_v38  ;;  %v85_v11 = vsub.s32 32, %v84_v20  ;;  %v90_v50 = vadd.s32 127, %v89_v35  ;;  %v740_v51 = vsel %vm736_vm4, %v720_v36, %v723_v52 }
  0x46   :  { %v742_v59 = vsel %vm738_vm5, %v726_v57, %v741_v43  ;;  %vm3632_vm9 = vcmp.lt.s32.totalorder %v3631_v40, 0  ;;  %v523_v26 = vsub.s32 0, %v4151_v41  ;;  %v4164_v61 = vsub.s32 32, %v975_v44 }
  0x47   :  { %v86_v54 = vshll.u32 %v4078_v0, %v84_v20  ;;  %v743_v8 = vsel %vm737_vm6, %v740_v51, %v742_v59  ;;  %v762_v14 = vadd.s32 1, %v4141_v34  ;;  %v1221_v49 = vand.u32 2139095040, %v4157_v48 }
  0x48   :  { %v87_v62 = vshrl.u32 %v69_v23, %v85_v11  ;;  %v91_v2 = vshll.u32 %v90_v50, 23  ;;  %v301_v52 = vsel %vm3632_vm9, 0, %v3631_v40  ;;  %vm761_vm10 = vc.u32 %v4146_v60, %v4140_v32 }
  0x49   :  { %v3638_v57 = vmin.u32 %v523_v26, %v4151_v41  ;;  %v961_v45 = vand.u32 2147483647, %v4084_v4  ;;  %v987_v7 = vshll.u32 %v6764_v17, %v975_v44  ;;  %v988_v0 = vshrl.u32 %v6755_v19, %v4164_v61 }
  0x4a   :  { %v759_v31 = vmul.u32 %v752_v13, %v743_v8  ;;  %v4178_v9 = vshrl.u32 %v973_v15, 5  ;;  %v990_v10 = vshll.u32 %v6755_v19, %v975_v44  ;;  %v991_v12 = vshrl.u32 %v6753_v25, %v4164_v61 }
  0x4b   :  { %v763_v18 = vsel %vm761_vm10, %v762_v14, %v4141_v34  ;;  %v978_v20 = vshll.u32 %v6760_v27, %v975_v44  ;;  %v981_v21 = vshll.u32 %v6758_v29, %v975_v44  ;;  %v1222_v28 = vshrl.u32 %v1221_v49, 23 }
  0x4c   :  { %v979_v30 = vshrl.u32 %v6758_v29, %v4164_v61  ;;  %v982_v13 = vshrl.u32 %v6762_v33, %v4164_v61  ;;  %v984_v15 = vshll.u32 %v6762_v33, %v975_v44  ;;  %v985_v35 = vshrl.u32 %v6764_v17, %v4164_v61 }
  0x4d   :  { %v306_v36 = vsub.s32 4294967266, %v301_v52  ;;  %v989_v37 = vor.u32 %v988_v0, %v987_v7  ;;  %v525_v38 = vclz %v3638_v57  ;;  %v968_v34 = vand.u32 8388607, %v961_v45 }
  0x4e   :  { %v992_v40 = vor.u32 %v991_v12, %v990_v10  ;;  %vm996_vm11 = vcmp.lt.s32.totalorder %v4178_v9, 4  ;;  %v88_v43 = vor.u32 %v87_v62, %v86_v54  ;;  %v286_v23 = vadd.s32 %v4009_v53, %v4022_v63 }
  0x4f   :  { %v764_v11 = vadd.s32 %v763_v18, %v759_v31  ;;  %v3661_v50 = vadd.s32 4294967169, %v1222_v28  ;;  %v92_v51 = vor.u32 4788187, %v91_v2  ;;  %v980_v44 = vor.u32 %v979_v30, %v978_v20 }
  0x50   :  { %v983_v59 = vor.u32 %v982_v13, %v981_v21  ;;  %v986_v26 = vor.u32 %v985_v35, %v984_v15  ;;  %v302_v8 = vsub.s32 32, %v301_v52  ;;  %vm993_vm12 = vcmp.lt.s32.totalorder %v4178_v9, 1 }
  0x51   :  { %vm995_vm13 = vcmp.lt.s32.totalorder %v4178_v9, 3  ;;  %v1002_v14 = vsel %vm996_vm11, %v989_v37, 920167782  ;;  %v307_v49 = vadd.s32 127, %v306_v36  ;;  %v3639_v57 = vadd.s32 4294967294, %v525_v38 }
  0x52   :  { %v969_v54 = vor.u32 8388608, %v968_v34  ;;  %v1006_v53 = vsel %vm996_vm11, %v992_v40, 1326507024  ;;  %v95_v63 = vcvt.s32.f32 %v88_v43  ;;  %v765_v62 = vadd.s32 536870912, %v764_v11 }
  0x53   :  { %v1228_v2 = vadd.s32 1, %v3661_v50  ;;  %v93_v7 = vand.u32 2147483647, %v92_v51  ;;  %vm994_vm14 = vcmp.lt.s32.totalorder %v4178_v9, 2  ;;  %v1001_v0 = vsel %vm993_vm12, %v980_v44, %v983_v59 }
  0x54   :  { %v1003_v31 = vsel %vm995_vm13, %v986_v26, %v1002_v14  ;;  %v303_v10 = vshll.u32 %v4105_v24, %v301_v52  ;;  %v304_v12 = vshrl.u32 %v286_v23, %v302_v8  ;;  %v1005_v18 = vsel %vm993_vm12, %v983_v59, %v986_v26 }
  0x55   :  { %v1007_v20 = vsel %vm995_vm13, %v989_v37, %v1006_v53  ;;  %v308_v21 = vshll.u32 %v307_v49, 23  ;;  %vm3640_vm15 = vcmp.lt.s32.totalorder %v3639_v57, 0  ;;  %v4214_v28 = vshll.u32 %v969_v54, 8 }
  0x56   :  { %v4216_v30 = vshrl.u32 %v765_v62, 30  ;;  %v1004_v13 = vsel %vm994_vm14, %v1001_v0, %v1003_v31  ;;  %vm1229_vm0 = vcmp.gt.s32.totalorder %v1228_v2, 0  ;;  %v1008_v24 = vsel %vm994_vm14, %v1005_v18, %v1007_v20 }
  0x57   :  { %v96_v52 = vmul.f32 %v95_v63, %v93_v7  ;;  %v305_v15 = vor.u32 %v304_v12, %v303_v10  ;;  %v528_v35 = vsel %vm3640_vm15, 0, %v3639_v57  ;;  %v309_v36 = vor.u32 4788187, %v308_v21 }
  0x58   :  { %v4223_v38 = vmul.u32.u64.low %v4214_v28, %v1004_v13  ;;  %v4224_v37 = vmul.u32.u64.high %v4214_v28, %v1004_v13, %v4223_v38  ;;  %v1230_v34 = vsel %vm1229_vm0, %v1228_v2, 0  ;;  %v767_v40 = vshll.u32 %v4216_v30, 30 }
  0x59   :  { %v977_v43 = vshrl.u32 %v6760_v27, %v4164_v61  ;;  %v4231_v23 = vmul.u32.u64.low %v4214_v28, %v1008_v24  ;;  %v4232_v50 = vmul.u32.u64.high %v4214_v28, %v1008_v24, %v4231_v23  ;;  %v533_v51 = vsub.s32 4294967266, %v528_v35 }
  0x5a   :  { %v998_v8 = vsel %vm996_vm11, %v986_v26, 2102212464  ;;  %v97_v14 = vxor.u32 2147483648, %v96_v52  ;;  %v1232_v49 = vand.u32 31, %v1230_v34  ;;  %vm15_vm1 = vcmp.lt.s32.totalorder %v3875_v1, 0 }
  0x5b   :  { %v99_v57 = vsub.s32 4, %v4058_v46  ;;  %v312_v54 = vcvt.s32.f32 %v305_v15  ;;  %v310_v53 = vand.u32 2147483647, %v309_v36  ;;  %v4238_v63 = vsub.s32 %v764_v11, %v767_v40 }
  0x5c   :  { %v997_v61 = vsel %vm993_vm12, %v977_v43, %v980_v44  ;;  %v999_v62 = vsel %vm995_vm13, %v983_v59, %v998_v8  ;;  %v513_v2 = vadd.s32 %v4064_v42, %v4071_v58  ;;  %v529_v26 = vsub.s32 32, %v528_v35 }
  0x5d   :  { %v534_v7 = vadd.s32 127, %v533_v51  ;;  %vm4248_vm2 = vcmp.le.f32.partialorder %v13_v22, 0.7853982  ;;  %v98_v11 = vsel %vm15_vm1, %v97_v14, %v96_v52  ;;  %v4254_v31 = vsub.s32 32, %v1232_v49 }
  0x5e   :  { %vm232_vm3 = vcmp.lt.s32.totalorder %v3881_v6, 0  ;;  %v1000_v44 = vsel %vm994_vm14, %v997_v61, %v999_v62  ;;  %v1019_v42 = vadd.s32 1, %v4224_v37  ;;  %v100_v58 = vsel %vm15_vm1, %v99_v57, %v4058_v46 }
  0x5f   :  { %v313_v22 = vmul.f32 %v312_v54, %v310_v53  ;;  %v770_v59 = vsub.s32 0, %v4238_v63  ;;  %vm1018_vm4 = vc.u32 %v4232_v50, %v4223_v38  ;;  %v101_v10 = vsel %vm4248_vm2, %v3875_v1, %v98_v11 }
  0x60   :  { %vm4271_vm5 = vcmp.le.f32.partialorder %v230_v56, 0.7853982  ;;  %v530_v12 = vshll.u32 %v4151_v41, %v528_v35  ;;  %v531_v18 = vshrl.u32 %v513_v2, %v529_v26  ;;  %v535_v46 = vshll.u32 %v534_v7, 23 }
  0x61   :  { %v1016_v20 = vmul.u32 %v4214_v28, %v1000_v44  ;;  %v6757_v21 = vand.u32 2147483647, %v4157_v48  ;;  %v1244_v13 = vshll.u32 %v6764_v17, %v1232_v49  ;;  %v1245_v24 = vshrl.u32 %v6755_v19, %v4254_v31 }
  0x62   :  { %v1020_v52 = vsel %vm1018_vm4, %v1019_v42, %v4224_v37  ;;  %v4282_v15 = vshrl.u32 %v1230_v34, 5  ;;  %v1247_v56 = vshll.u32 %v6755_v19, %v1232_v49  ;;  %v1248_v41 = vshrl.u32 %v6753_v25, %v4254_v31 }
  0x63   :  { %v314_v35 = vxor.u32 2147483648, %v313_v22  ;;  %v3646_v36 = vmin.u32 %v770_v59, %v4238_v63  ;;  %v1235_v28 = vshll.u32 %v6760_v27, %v1232_v49  ;;  %v1238_v40 = vshll.u32 %v6758_v29, %v1232_v49 }
  0x64   :  { %v1236_v43 = vshrl.u32 %v6758_v29, %v4254_v31  ;;  %v1239_v37 = vshrl.u32 %v6762_v33, %v4254_v31  ;;  %v1241_v34 = vshll.u32 %v6762_v33, %v1232_v49  ;;  %v1242_v23 = vshrl.u32 %v6764_v17, %v4254_v31 }
  0x65   :  { %3795 = vcosq.f32 %v101_v10  ;;  %v532_v51 = vor.u32 %v531_v18, %v530_v12  ;;  %v4297_v8 = vadd.s32 %v1020_v52, %v1016_v20  ;;  %v1246_v14 = vor.u32 %v1245_v24, %v1244_v13 }
  0x66   :  { %v536_v57 = vor.u32 4788187, %v535_v46  ;;  %v1225_v54 = vand.u32 8388607, %v6757_v21  ;;  %v1249_v53 = vor.u32 %v1248_v41, %v1247_v56  ;;  %vm1253_vm6 = vcmp.lt.s32.totalorder %v4282_v15, 4 }
  0x67   :  { %v102_v61 = vsel %vm4248_vm2, 0, %v100_v58  ;;  %3797 = vsinq.f32 %v101_v10  ;;  %v316_v49 = vsub.s32 4, %v4086_v5  ;;  %v772_v62 = vclz %v3646_v36 }
  0x68   :  { %v315_v2 = vsel %vm232_vm3, %v314_v35, %v313_v22  ;;  %v4307_v26 = vor.u32 %v1236_v43, %v1235_v28  ;;  %v4309_v7 = vor.u32 %v1239_v37, %v1238_v40  ;;  %v1243_v11 = vor.u32 %v1242_v23, %v1241_v34  ;;  %v1522_v40 = vld [vmem:[%s6750_s0 + $0x2] sm:$0x1] }
  0x69   :  { %v1022_v44 = vadd.s32 536870912, %v4297_v8  ;;  %vm1250_vm7 = vcmp.lt.s32.totalorder %v4282_v15, 1  ;;  %vm1252_vm8 = vcmp.lt.s32.totalorder %v4282_v15, 3  ;;  %v1259_v0 = vsel %vm1253_vm6, %v1246_v14, 920167782 }
  0x6a   :  { %v537_v42 = vand.u32 2147483647, %v536_v57  ;;  %v539_v58 = vcvt.s32.f32 %v532_v51  ;;  %v1226_v59 = vor.u32 8388608, %v1225_v54  ;;  %v1263_v22 = vsel %vm1253_vm6, %v1249_v53, 1326507024 }
  0x6b   :  { %v4318_v10 = vand.u32 3, %v102_v61  ;;  %v317_v12 = vsel %vm232_vm3, %v316_v49, %v4086_v5  ;;  %v318_v18 = vsel %vm4271_vm5, %v3881_v6, %v315_v2  ;;  %v3647_v46 = vadd.s32 4294967294, %v772_v62 }
  0x6c   :  { %v209_v20 = vadd.s32 3, %v102_v61  ;;  %vm1251_vm9 = vcmp.lt.s32.totalorder %v4282_v15, 2  ;;  %v1258_v13 = vsel %vm1250_vm7, %v4307_v26, %v4309_v7  ;;  %v1260_v24 = vsel %vm1252_vm8, %v1243_v11, %v1259_v0 }
  0x6d   :  { %vm459_vm10 = vcmp.lt.s32.totalorder %v3889_v16, 0  ;;  %v4334_v52 = vshrl.u32 %v1022_v44, 30  ;;  %v1262_v5 = vsel %vm1250_vm7, %v4309_v7, %v1243_v11  ;;  %v1264_v56 = vsel %vm1252_vm8, %v1246_v14, %v1263_v22 }
  0x6e   :  { %v319_v41 = vsel %vm4271_vm5, 0, %v317_v12  ;;  %3799 = vcosq.f32 %v318_v18  ;;  %v540_v35 = vmul.f32 %v539_v58, %v537_v42  ;;  %v4343_v36 = vshll.u32 %v1226_v59, 8 }
  0x6f   :  { %v3796_v28 = vpop.eup %3795  ;;  %3801 = vsinq.f32 %v318_v18  ;;  %vm4347_vm11 = vcmp.le.f32.partialorder %v457_v47, 0.7853982  ;;  %vm3648_vm12 = vcmp.lt.s32.totalorder %v3647_v46, 0  ;;  %v1261_v43 = vsel %vm1251_vm9, %v1258_v13, %v1260_v24 }
  0x70   :  { %vm107_vm13 = vcmp.lt.s32.totalorder %v4318_v10, 2  ;;  %vm108_vm14 = vcmp.eq.s32.totalorder %v4318_v10, 0  ;;  %v210_v9 = vand.u32 3, %v209_v20  ;;  %v1265_v37 = vsel %vm1251_vm9, %v1262_v5, %v1264_v56 }
  0x71   :  { %v3798_v34 = vpop.eup %3797  ;;  %v4357_v23 = vand.u32 3, %v319_v41  ;;  %v426_v51 = vadd.s32 3, %v319_v41  ;;  %v543_v47 = vsub.s32 4, %v4124_v3  ;;  %v1024_v14 = vshll.u32 %v4334_v52, 30 }
  0x72   :  { %v541_v57 = vxor.u32 2147483648, %v540_v35  ;;  %v4361_v54 = vsel %vm3648_vm12, 0, %v3647_v46  ;;  %v4364_v53 = vmul.u32.u64.low %v4343_v36, %v1261_v43  ;;  %v4365_v61 = vmul.u32.u64.high %v4343_v36, %v1261_v43, %v4364_v53 }
  0x73   :  { %v112_v49 = vxor.u32 2147483648, %v3796_v28  ;;  %v1234_v62 = vshrl.u32 %v6760_v27, %v4254_v31  ;;  %v4371_v2 = vmul.u32.u64.low %v4343_v36, %v1265_v37  ;;  %v4372_v44 = vmul.u32.u64.high %v4343_v36, %v1265_v37, %v4371_v2 }
  0x74   :  { %vm105_vm15 = vweird.f32 %v3875_v1  ;;  %v109_v0 = vxor.u32 2147483648, %v3798_v34  ;;  %vm111_vm0 = vcmp.eq.s32.totalorder %v4318_v10, 2  ;;  %vm211_vm1 = vcmp.lt.s32.totalorder %v210_v9, 2 }
  0x75   :  { %v1255_v42 = vsel %vm1253_vm6, %v1243_v11, 2102212464  ;;  %vm212_vm2 = vcmp.eq.s32.totalorder %v210_v9, 0  ;;  %vm215_vm3 = vcmp.eq.s32.totalorder %v210_v9, 2  ;;  %v780_v58 = vsub.s32 4294967266, %v4361_v54 }
  0x76   :  { %v4380_v59 = vsub.s32 %v4297_v8, %v1024_v14  ;;  %vm325_vm4 = vcmp.eq.s32.totalorder %v4357_v23, 0  ;;  %vm328_vm5 = vcmp.eq.s32.totalorder %v4357_v23, 2  ;;  %v427_v31 = vand.u32 3, %v426_v51 }
  0x77   :  { %v542_v22 = vsel %vm459_vm10, %v541_v57, %v540_v35  ;;  %v113_v12 = vsel %vm111_vm0, %v112_v49, %v3798_v34  ;;  %v544_v11 = vsel %vm459_vm10, %v543_v47, %v4124_v3  ;;  %v1254_v18 = vsel %vm1250_vm7, %v1234_v62, %v4307_v26 }
  0x78   :  { %v1256_v8 = vsel %vm1252_vm8, %v4309_v7, %v1255_v42  ;;  %v3800_v46 = vpop.eup %3799  ;;  %v110_v20 = vsel %vm108_vm14, %v3796_v28, %v109_v0  ;;  %v214_v13 = vsel %vm212_vm2, %v3796_v28, %v109_v0  ;;  %v217_v24 = vsel %vm215_vm3, %v112_v49, %v3798_v34 }
  0x79   :  { %v760_v5 = vadd.s32 %v4140_v32, %v4146_v60  ;;  %v3802_v3 = vpop.eup %3801  ;;  %v545_v26 = vsel %vm4347_vm11, %v3889_v16, %v542_v22  ;;  %v776_v56 = vsub.s32 32, %v4361_v54  ;;  %v781_v41 = vadd.s32 127, %v780_v58 }
  0x7a   :  { %v1027_v7 = vsub.s32 0, %v4380_v59  ;;  %vm429_vm6 = vcmp.eq.s32.totalorder %v427_v31, 0  ;;  %vm432_vm7 = vcmp.eq.s32.totalorder %v427_v31, 2  ;;  %v1257_v35 = vsel %vm1251_vm9, %v1254_v18, %v1256_v8 }
  0x7b   :  { %v1276_v28 = vadd.s32 1, %v4365_v61  ;;  %v114_v32 = vsel %vm107_vm13, %v110_v20, %v113_v12  ;;  %v218_v60 = vsel %vm211_vm1, %v214_v13, %v217_v24  ;;  %v546_v43 = vsel %vm4347_vm11, 0, %v544_v11 }
  0x7c   :  { %vm1275_vm8 = vc.u32 %v4372_v44, %v4364_v53  ;;  %v326_v37 = vxor.u32 2147483648, %v3802_v3  ;;  %v329_v34 = vxor.u32 2147483648, %v3800_v46  ;;  %3803 = vcosq.f32 %v545_v26 }
  0x7d   :  { %v777_v15 = vshll.u32 %v4238_v63, %v4361_v54  ;;  %v778_v51 = vshrl.u32 %v760_v5, %v776_v56  ;;  %v782_v47 = vshll.u32 %v781_v41, 23  ;;  %v3654_v14 = vmin.u32 %v1027_v7, %v4380_v59 }
  0x7e   :  { %v1273_v10 = vmul.u32 %v4343_v36, %v1257_v35  ;;  %vm324_vm9 = vcmp.lt.s32.totalorder %v4357_v23, 2  ;;  %vm428_vm10 = vcmp.lt.s32.totalorder %v427_v31, 2  ;;  %3805 = vsinq.f32 %v545_v26 }
  0x7f   :  { %v1277_v9 = vsel %vm1275_vm8, %v1276_v28, %v4365_v61  ;;  %v115_v57 = vsel %vm105_vm15, nan, %v114_v32  ;;  %v219_v63 = vsel %vm105_vm15, nan, %v218_v60  ;;  %v330_v54 = vsel %vm328_vm5, %v329_v34, %v3802_v3 }
  0x80   :  { %v653_v36 = vadd.s32 3, %v546_v43  ;;  %v327_v49 = vsel %vm325_vm4, %v3800_v46, %v326_v37  ;;  %v431_v62 = vsel %vm429_vm6, %v3800_v46, %v326_v37  ;;  %v434_v2 = vsel %vm432_vm7, %v329_v34, %v3802_v3 }
  0x81   :  { %v4435_v0 = vmul.f32 0.5, %v1522_v40  ;;  %v779_v61 = vor.u32 %v778_v51, %v777_v15  ;;  %v783_v42 = vor.u32 4788187, %v782_v47  ;;  %v1029_v58 = vclz %v3654_v14 }
  0x82   :  { %v4437_v22 = vadd.s32 %v1277_v9, %v1273_v10  ;;  %vm322_vm11 = vweird.f32 %v3881_v6  ;;  %v220_v1 = vmul.f32 0.0, %v115_v57  ;;  %v221_v12 = vmul.f32 -1.0, %v219_v63 }
  0x83   :  { %v4440_v11 = vand.u32 3, %v546_v43  ;;  %v4442_v18 = vand.u32 3, %v653_v36  ;;  %v225_v8 = vmul.f32 0.0, %v219_v63  ;;  %v331_v46 = vsel %vm324_vm9, %v327_v49, %v330_v54 }
  0x84   :  { %v435_v20 = vsel %vm428_vm10, %v431_v62, %v434_v2  ;;  %v1527_v13 = vand.u32 2139095040, %v4435_v0  ;;  %v784_v24 = vand.u32 2147483647, %v783_v42  ;;  %v786_v5 = vcvt.s32.f32 %v779_v61 }
  0x85   :  { %v3655_v3 = vadd.s32 4294967294, %v1029_v58  ;;  %v1279_v26 = vadd.s32 536870912, %v4437_v22  ;;  %vm706_vm12 = vcmp.lt.s32.totalorder %v3988_v39, 0  ;;  %v222_v41 = vmul.f32 0.0, %v221_v12 }
  0x86   :  { %v3804_v56 = vpop.eup %3803  ;;  %v436_v7 = vsel %vm322_vm11, nan, %v435_v20  ;;  %vm551_vm13 = vcmp.lt.s32.totalorder %v4440_v11, 2  ;;  %vm552_vm14 = vcmp.eq.s32.totalorder %v4440_v11, 0  ;;  %vm555_vm15 = vcmp.eq.s32.totalorder %v4440_v11, 2 }
  0x87   :  { %v226_v31 = vsub.f32 %v220_v1, %v225_v8  ;;  %v227_v35 = vadd.f32 %v225_v8, %v220_v1  ;;  %v332_v28 = vsel %vm322_vm11, nan, %v331_v46  ;;  %vm655_vm0 = vcmp.lt.s32.totalorder %v4442_v18, 2 }
  0x88   :  { %v3806_v23 = vpop.eup %3805  ;;  %vm4460_vm1 = vcmp.le.f32.partialorder %v704_v55, 0.7853982  ;;  %v787_v60 = vmul.f32 %v786_v5, %v784_v24  ;;  %vm3656_vm2 = vcmp.lt.s32.totalorder %v3655_v3, 0  ;;  %v4464_v43 = vshrl.u32 %v1279_v26, 30 }
  0x89   :  { %v1528_v37 = vshrl.u32 %v1527_v13, 23  ;;  %v438_v34 = vmul.f32 -1.0, %v436_v7  ;;  %vm549_vm3 = vweird.f32 %v3889_v16  ;;  %v556_v15 = vxor.u32 2147483648, %v3804_v56 }
  0x8a   :  { %vm656_vm4 = vcmp.eq.s32.totalorder %v4442_v18, 0  ;;  %vm659_vm5 = vcmp.eq.s32.totalorder %v4442_v18, 2  ;;  %v223_v6 = vsub.f32 %v220_v1, %v222_v41  ;;  %v224_v51 = vadd.f32 %v222_v41, %v220_v1 }
  0x8b   :  { %v437_v47 = vmul.f32 0.0, %v332_v28  ;;  %v553_v55 = vxor.u32 2147483648, %v3806_v23  ;;  %v442_v14 = vmul.f32 %v332_v28, %v226_v31  ;;  %v448_v10 = vmul.f32 0.0, %v436_v7 }
  0x8c   :  { %v790_v40 = vsub.s32 4, %v4216_v30  ;;  %v1032_v9 = vsel %vm3656_vm2, 0, %v3655_v3  ;;  %v446_v57 = vmul.f32 %v332_v28, %v227_v35  ;;  %v788_v63 = vxor.u32 2147483648, %v787_v60  ;;  %v1780_v28 = vld [vmem:[%s6751_s1 + $0x7] sm:$0x1] }
  0x8d   :  { %v1281_v54 = vshll.u32 %v4464_v43, 30  ;;  %v3669_v36 = vadd.s32 4294967169, %v1528_v37  ;;  %v439_v49 = vmul.f32 0.0, %v438_v34  ;;  %v451_v62 = vmul.f32 %v436_v7, %v227_v35 }
  0x8e   :  { %v453_v2 = vmul.f32 %v436_v7, %v226_v31  ;;  %v557_v61 = vsel %vm555_vm15, %v556_v15, %v3806_v23  ;;  %v554_v42 = vsel %vm552_vm14, %v3804_v56, %v553_v55  ;;  %v658_v58 = vsel %vm656_vm4, %v3804_v56, %v553_v55 }
  0x8f   :  { %v661_v1 = vsel %vm659_vm5, %v556_v15, %v3806_v23  ;;  %v1037_v12 = vsub.s32 4294967266, %v1032_v9  ;;  %v443_v8 = vmul.f32 %v438_v34, %v227_v35  ;;  %v445_v46 = vmul.f32 %v438_v34, %v226_v31 }
  0x90   :  { %v449_v20 = vsub.f32 %v437_v47, %v448_v10  ;;  %v791_v13 = vsel %vm706_vm12, %v790_v40, %v4216_v30  ;;  %v450_v24 = vadd.f32 %v448_v10, %v437_v47  ;;  %v789_v5 = vsel %vm706_vm12, %v788_v63, %v787_v60 }
  0x91   :  { %v4485_v3 = vsub.s32 %v4437_v22, %v1281_v54  ;;  %v1534_v26 = vadd.s32 1, %v3669_v36  ;;  %v4487_v56 = vsub.f32 %v442_v14, %v451_v62  ;;  %v4489_v41 = vadd.f32 %v453_v2, %v446_v57 }
  0x92   :  { %v558_v7 = vsel %vm551_vm13, %v554_v42, %v557_v61  ;;  %v662_v23 = vsel %vm655_vm0, %v658_v58, %v661_v1  ;;  %v793_v30 = vsel %vm4460_vm1, 0, %v791_v13  ;;  %v1017_v31 = vadd.s32 %v4223_v38, %v4232_v50 }
  0x93   :  { %v1033_v35 = vsub.s32 32, %v1032_v9  ;;  %v1038_v22 = vadd.s32 127, %v1037_v12  ;;  %v440_v60 = vsub.f32 %v437_v47, %v439_v49  ;;  %v441_v37 = vadd.f32 %v439_v49, %v437_v47 }
  0x94   :  { %v4502_v34 = vsub.f32 %v442_v14, %v443_v8  ;;  %v792_v11 = vsel %vm4460_vm1, %v3988_v39, %v789_v5  ;;  %v4509_v18 = vsel %vm549_vm3, nan, %v558_v7  ;;  %v4513_v38 = vsel %vm549_vm3, nan, %v662_v23 }
  0x95   :  { %v1284_v50 = vsub.s32 0, %v4485_v3  ;;  %vm1535_vm6 = vcmp.gt.s32.totalorder %v1534_v26, 0  ;;  %v4516_v15 = vadd.f32 %v446_v57, %v445_v46  ;;  %v900_v47 = vadd.s32 3, %v793_v30 }
  0x96   :  { %v1524_v55 = vand.u32 2147483647, %v4435_v0  ;;  %v4519_v14 = vmul.f32 0.5, %v1780_v28  ;;  %3807 = vcosq.f32 %v792_v11  ;;  %v1034_v32 = vshll.u32 %v4380_v59, %v1032_v9 }
  0x97   :  { %v1035_v10 = vshrl.u32 %v1017_v31, %v1033_v35  ;;  %v1039_v40 = vshll.u32 %v1038_v22, 23  ;;  %v664_v63 = vmul.f32 0.0, %v4513_v38  ;;  %v666_v16 = vmul.f32 0.0, %v4509_v18 }
  0x98   :  { %6813 = vst [vmem:[#allocation2_spill] sm:$0xff] %v4519_v14  ;;  %3809 = vsinq.f32 %v792_v11  ;;  %v1536_v54 = vsel %vm1535_vm6, %v1534_v26, 0  ;;  %v670_v36 = vmul.f32 %v4509_v18, %v223_v6  ;;  %v671_v57 = vmul.f32 %v4513_v38, %v223_v6 }
  0x99   :  { %v4526_v49 = vand.u32 3, %v793_v30  ;;  %v3662_v62 = vmin.u32 %v1284_v50, %v4485_v3  ;;  %v673_v2 = vmul.f32 %v4509_v18, %v224_v51  ;;  %v674_v59 = vmul.f32 %v4513_v38, %v224_v51 }
  0x9a   :  { %v678_v9 = vmul.f32 %v4509_v18, %v440_v60  ;;  %v4532_v61 = vand.u32 3, %v900_v47  ;;  %vm963_vm7 = vcmp.lt.s32.totalorder %v4084_v4, 0  ;;  %v679_v42 = vmul.f32 %v4513_v38, %v449_v20 }
  0x9b   :  { %v1036_v58 = vor.u32 %v1035_v10, %v1034_v32  ;;  %v1040_v1 = vor.u32 4788187, %v1039_v40  ;;  %v1538_v12 = vand.u32 31, %v1536_v54  ;;  %v4537_v6 = vsub.f32 %v4509_v18, %v664_v63 }
  0x9c   :  { %v4539_v8 = vsub.f32 %v666_v16, %v664_v63  ;;  %v4542_v46 = vadd.f32 %v666_v16, %v4513_v38  ;;  %v4544_v51 = vadd.f32 %v666_v16, %v664_v63  ;;  %v4546_v13 = vsub.f32 %v670_v36, %v671_v57 }
  0x9d   :  { %v681_v5 = vmul.f32 %v4509_v18, %v441_v37  ;;  %v682_v26 = vmul.f32 %v4513_v38, %v450_v24  ;;  %v1286_v7 = vclz %v3662_v62  ;;  %v684_v23 = vmul.f32 %v4513_v38, %v440_v60 }
  0x9e   :  { %v685_v30 = vmul.f32 %v4509_v18, %v449_v20  ;;  %v687_v31 = vmul.f32 %v4513_v38, %v441_v37  ;;  %v688_v35 = vmul.f32 %v4509_v18, %v450_v24  ;;  %vm799_vm8 = vcmp.eq.s32.totalorder %v4526_v49, 0 }
  0x9f   :  { %vm802_vm9 = vcmp.eq.s32.totalorder %v4526_v49, 2  ;;  %v1041_v22 = vand.u32 2147483647, %v1040_v1  ;;  %v1043_v28 = vcvt.s32.f32 %v1036_v58  ;;  %v1047_v11 = vsub.s32 4, %v4334_v52 }
  0xa0   :  { %v4557_v50 = vsub.s32 32, %v1538_v12  ;;  %v4559_v47 = vsub.f32 %v673_v2, %v674_v59  ;;  %v4561_v32 = vadd.f32 %v671_v57, %v670_v36  ;;  %v4563_v60 = vadd.f32 %v674_v59, %v673_v2  ;;  %v3808_v37 = vpop.eup %3807 }
  0xa1   :  { %v4565_v20 = vsub.f32 %v678_v9, %v679_v42  ;;  %vm4569_vm10 = vcmp.le.f32.partialorder %v961_v45, 0.7853982  ;;  %v4573_v10 = vsub.f32 %v681_v5, %v682_v26  ;;  %v690_v40 = vmul.f32 %v4509_v18, %v4502_v34 }
  0xa2   :  { %v691_v63 = vmul.f32 %v4513_v38, %v4487_v56  ;;  %v3663_v16 = vadd.s32 4294967294, %v1286_v7  ;;  %v3810_v36 = vpop.eup %3809  ;;  %v4579_v57 = vadd.f32 %v685_v30, %v684_v23  ;;  %v4581_v62 = vadd.f32 %v688_v35, %v687_v31 }
  0xa3   :  { %v693_v45 = vmul.f32 %v4509_v18, %v4516_v15  ;;  %v694_v2 = vmul.f32 %v4513_v38, %v4489_v41  ;;  %vm798_vm11 = vcmp.lt.s32.totalorder %v4526_v49, 2  ;;  %vm903_vm12 = vcmp.eq.s32.totalorder %v4532_v61, 0 }
  0xa4   :  { %vm906_vm13 = vcmp.eq.s32.totalorder %v4532_v61, 2  ;;  %v1044_v59 = vmul.f32 %v1043_v28, %v1041_v22  ;;  %v1048_v9 = vsel %vm963_vm7, %v1047_v11, %v4334_v52  ;;  %v1550_v42 = vshll.u32 %v6764_v17, %v1538_v12 }
  0xa5   :  { %v1551_v58 = vshrl.u32 %v6755_v19, %v4557_v50  ;;  %v803_v1 = vxor.u32 2147483648, %v3808_v37  ;;  %v4596_v5 = vshrl.u32 %v1536_v54, 5  ;;  %v1553_v26 = vshll.u32 %v6755_v19, %v1538_v12 }
  0xa6   :  { %v1554_v7 = vshrl.u32 %v6753_v25, %v4557_v50  ;;  %v800_v23 = vxor.u32 2147483648, %v3810_v36  ;;  %vm902_vm14 = vcmp.lt.s32.totalorder %v4532_v61, 2  ;;  %vm3664_vm15 = vcmp.lt.s32.totalorder %v3663_v16, 0 }
  0xa7   :  { %v1541_v30 = vshll.u32 %v6760_v27, %v1538_v12  ;;  %v1544_v52 = vshll.u32 %v6758_v29, %v1538_v12  ;;  %v1542_v31 = vshrl.u32 %v6758_v29, %v4557_v50  ;;  %v1545_v54 = vshrl.u32 %v6762_v33, %v4557_v50 }
  0xa8   :  { %v1547_v35 = vshll.u32 %v6762_v33, %v1538_v12  ;;  %v1548_v22 = vshrl.u32 %v6764_v17, %v4557_v50  ;;  %v696_v28 = vmul.f32 %v4513_v38, %v4502_v34  ;;  %v697_v11 = vmul.f32 %v4509_v18, %v4487_v56 }
  0xa9   :  { %vm796_vm0 = vweird.f32 %v3988_v39  ;;  %v1045_v25 = vxor.u32 2147483648, %v1044_v59  ;;  %v1552_v19 = vor.u32 %v1551_v58, %v1550_v42  ;;  %v1289_v21 = vsel %vm3664_vm15, 0, %v3663_v16 }
  0xaa   :  { %v1531_v29 = vand.u32 8388607, %v1524_v55  ;;  %v1555_v27 = vor.u32 %v1554_v7, %v1553_v26  ;;  %vm1559_vm1 = vcmp.lt.s32.totalorder %v4596_v5, 4  ;;  %v4619_v12 = vsub.f32 %v690_v40, %v691_v63 }
  0xab   :  { %v801_v33 = vsel %vm799_vm8, %v3808_v37, %v800_v23  ;;  %v804_v34 = vsel %vm802_vm9, %v803_v1, %v3810_v36  ;;  %v1050_v56 = vsel %vm4569_vm10, 0, %v1048_v9  ;;  %v4627_v17 = vor.u32 %v1542_v31, %v1541_v30 }
  0xac   :  { %v4629_v16 = vor.u32 %v1545_v54, %v1544_v52  ;;  %v1549_v42 = vor.u32 %v1548_v22, %v1547_v35  ;;  %vm1556_vm2 = vcmp.lt.s32.totalorder %v4596_v5, 1  ;;  %v1046_v40 = vsel %vm963_vm7, %v1045_v25, %v1044_v59 }
  0xad   :  { %v1294_v63 = vsub.s32 4294967266, %v1289_v21  ;;  %vm1558_vm3 = vcmp.lt.s32.totalorder %v4596_v5, 3  ;;  %v1565_v58 = vsel %vm1559_vm1, %v1552_v19, 920167782  ;;  %v4637_v26 = vsub.f32 %v693_v45, %v694_v2 }
  0xae   :  { %v1157_v7 = vadd.s32 3, %v1050_v56  ;;  %v1532_v9 = vor.u32 8388608, %v1531_v29  ;;  %v1569_v30 = vsel %vm1559_vm1, %v1555_v27, 1326507024  ;;  %v805_v52 = vsel %vm798_vm11, %v801_v33, %v804_v34 }
  0xaf   :  { %v905_v31 = vsel %vm903_vm12, %v3808_v37, %v800_v23  ;;  %v908_v25 = vsel %vm906_vm13, %v803_v1, %v3810_v36  ;;  %v1274_v59 = vadd.s32 %v4364_v53, %v4372_v44  ;;  %v1049_v45 = vsel %vm4569_vm10, %v4084_v4, %v1046_v40 }
  0xb0   :  { %vm1557_vm4 = vcmp.lt.s32.totalorder %v4596_v5, 2  ;;  %v1564_v27 = vsel %vm1556_vm2, %v4627_v17, %v4629_v16  ;;  %v1566_v29 = vsel %vm1558_vm3, %v1549_v42, %v1565_v58  ;;  %v1290_v33 = vsub.s32 32, %v1289_v21 }
  0xb1   :  { %v1295_v49 = vadd.s32 127, %v1294_v63  ;;  %v1568_v53 = vsel %vm1556_vm2, %v4629_v16, %v1549_v42  ;;  %v1570_v44 = vsel %vm1558_vm3, %v1552_v19, %v1569_v30  ;;  %v699_v24 = vmul.f32 %v4513_v38, %v4516_v15 }
  0xb2   :  { %v909_v37 = vsel %vm902_vm14, %v905_v31, %v908_v25  ;;  %v4668_v36 = vshll.u32 %v1532_v9, 8  ;;  %v1785_v2 = vand.u32 2139095040, %v4519_v14  ;;  %v700_v1 = vmul.f32 %v4509_v18, %v4489_v41 }
  0xb3   :  { %3811 = vcosq.f32 %v1049_v45  ;;  %v4673_v23 = vand.u32 3, %v1050_v56  ;;  %v1567_v54 = vsel %vm1557_vm4, %v1564_v27, %v1566_v29  ;;  %v4679_v19 = vsel %vm796_vm0, nan, %v805_v52 }
  0xb4   :  { %3813 = vsinq.f32 %v1049_v45  ;;  %v4681_v38 = vand.u32 3, %v1157_v7  ;;  %v1571_v15 = vsel %vm1557_vm4, %v1568_v53, %v1570_v44  ;;  %v4687_v61 = vsel %vm796_vm0, nan, %v909_v37 }
  0xb5   :  { %v1291_v41 = vshll.u32 %v4485_v3, %v1289_v21  ;;  %v1292_v18 = vshrl.u32 %v1274_v59, %v1290_v33  ;;  %v1296_v35 = vshll.u32 %v1295_v49, 23  ;;  %v6766_v56 = vand.u32 2147483647, %v4519_v14 }
  0xb6   :  { %v4691_v22 = vmul.u32.u64.low %v4668_v36, %v1567_v54  ;;  %v4692_v34 = vmul.u32.u64.high %v4668_v36, %v1567_v54, %v4691_v22  ;;  %v1786_v40 = vshrl.u32 %v1785_v2, 23  ;;  %v4696_v63 = vadd.f32 %v697_v11, %v696_v28 }
  0xb7   :  { %v6816_v58 = vmov 683565275   ;;  %v4701_v39 = vmul.u32.u64.low %v4668_v36, %v1571_v15  ;;  %v4702_v9 = vmul.u32.u64.high %v4668_v36, %v1571_v15, %v4701_v39  ;;  %v4704_v21 = vadd.f32 %v700_v1, %v699_v24 }
  0xb8   :  { %v1540_v7 = vshrl.u32 %v6816_v58, %v4557_v50  ;;  %v911_v3 = vmul.f32 %v4679_v19, %v4537_v6  ;;  %v912_v30 = vmul.f32 %v4687_v61, %v4565_v20  ;;  %v1561_v52 = vsel %vm1559_vm1, %v1549_v42, 2102212464 }
  0xb9   :  { %v914_v28 = vmul.f32 %v4679_v19, %v4539_v8  ;;  %v915_v50 = vmul.f32 %v4687_v61, %v4573_v10  ;;  %vm1059_vm5 = vcmp.eq.s32.totalorder %v4673_v23, 2  ;;  %v1293_v11 = vor.u32 %v1292_v18, %v1291_v41 }
  0xba   :  { %v1297_v31 = vor.u32 4788187, %v1296_v35  ;;  %vm1056_vm6 = vcmp.eq.s32.totalorder %v4673_v23, 0  ;;  %vm1160_vm7 = vcmp.eq.s32.totalorder %v4681_v38, 0  ;;  %vm1163_vm8 = vcmp.eq.s32.totalorder %v4681_v38, 2 }
  0xbb   :  { %v4720_v25 = vadd.s32 4294967169, %v1786_v40  ;;  %v4724_v42 = vand.u32 8388607, %v6766_v56  ;;  %v917_v59 = vmul.f32 %v4687_v61, %v4537_v6  ;;  %v918_v45 = vmul.f32 %v4679_v19, %v4565_v20 }
  0xbc   :  { %vm1220_vm9 = vcmp.lt.s32.totalorder %v4157_v48, 0  ;;  %v1560_v27 = vsel %vm1556_vm2, %v1540_v7, %v4627_v17  ;;  %v1562_v29 = vsel %vm1558_vm3, %v4629_v16, %v1561_v52  ;;  %v920_v33 = vmul.f32 %v4687_v61, %v4539_v8 }
  0xbd   :  { %v921_v49 = vmul.f32 %v4679_v19, %v4573_v10  ;;  %v923_v6 = vmul.f32 %v4679_v19, %v4546_v13  ;;  %v924_v20 = vmul.f32 %v4687_v61, %v4619_v12  ;;  %v3812_v53 = vpop.eup %3811  ;;  %v4745_v44 = vsub.f32 %v911_v3, %v912_v30 }
  0xbe   :  { %v4747_v17 = vsub.f32 %v914_v28, %v915_v50  ;;  %vm1055_vm10 = vcmp.lt.s32.totalorder %v4673_v23, 2  ;;  %vm1159_vm11 = vcmp.lt.s32.totalorder %v4681_v38, 2  ;;  %v1298_v16 = vand.u32 2147483647, %v1297_v31  ;;  %v3814_v24 = vpop.eup %3813 }
  0xbf   :  { %v1300_v8 = vcvt.s32.f32 %v1293_v11  ;;  %v926_v10 = vmul.f32 %v4679_v19, %v4559_v47  ;;  %v927_v37 = vmul.f32 %v4687_v61, %v4637_v26  ;;  %v1563_v2 = vsel %vm1557_vm4, %v1560_v27, %v1562_v29 }
  0xc0   :  { %v1582_v1 = vadd.s32 1, %v4692_v34  ;;  %v4758_v54 = vadd.f32 %v918_v45, %v917_v59  ;;  %v929_v15 = vmul.f32 %v4687_v61, %v4546_v13  ;;  %v930_v41 = vmul.f32 %v4679_v19, %v4619_v12 }
  0xc1   :  { %v6817_v18 = vand.u32 2147483647, %v4157_v48  ;;  %vm1581_vm13 = vc.u32 %v4702_v9, %v4691_v22  ;;  %v4772_v5 = vadd.f32 %v921_v49, %v920_v33  ;;  %v4774_v40 = vsub.f32 %v923_v6, %v924_v20 }
  0xc2   :  { %vm1053_vm14 = vweird.f32 %v4084_v4  ;;  %v1060_v7 = vxor.u32 2147483648, %v3812_v53  ;;  %v1304_v13 = vsub.s32 4, %v4464_v43  ;;  %v932_v12 = vmul.f32 %v4687_v61, %v4559_v47 }
  0xc3   :  { %vm4766_vm12 = vcmp.le.f32.partialorder %v6817_v18, 0.7853982  ;;  %v1057_v39 = vxor.u32 2147483648, %v3814_v24  ;;  %v1301_v3 = vmul.f32 %v1300_v8, %v1298_v16  ;;  %v1579_v30 = vmul.u32 %v4668_v36, %v1563_v2 }
  0xc4   :  { %v4781_v52 = vsub.f32 %v926_v10, %v927_v37  ;;  %v933_v28 = vmul.f32 %v4679_v19, %v4637_v26  ;;  %v935_v50 = vmul.f32 %v4679_v19, %v4542_v46  ;;  %v1583_v11 = vsel %vm1581_vm13, %v1582_v1, %v4692_v34 }
  0xc5   :  { %v4788_v31 = vadd.f32 %v930_v41, %v929_v15  ;;  %v936_v59 = vmul.f32 %v4687_v61, %v4579_v57  ;;  %v938_v47 = vmul.f32 %v4679_v19, %v4544_v51  ;;  %v939_v36 = vmul.f32 %v4687_v61, %v4581_v62 }
  0xc6   :  { %v941_v45 = vmul.f32 %v4687_v61, %v4542_v46  ;;  %v1061_v26 = vsel %vm1059_vm5, %v1060_v7, %v3814_v24  ;;  %v1165_v34 = vsel %vm1163_vm8, %v1060_v7, %v3814_v24  ;;  %v1305_v27 = vsel %vm1220_vm9, %v1304_v13, %v4464_v43 }
  0xc7   :  { %v1058_v29 = vsel %vm1056_vm6, %v3812_v53, %v1057_v39  ;;  %v1162_v33 = vsel %vm1160_vm7, %v3812_v53, %v1057_v39  ;;  %v1302_v49 = vxor.u32 2147483648, %v1301_v3  ;;  %v4809_v6 = vadd.s32 %v1583_v11, %v1579_v30 }
  0xc8   :  { %v934_v46 = vadd.f32 %v933_v28, %v932_v12  ;;  %v942_v20 = vmul.f32 %v4679_v19, %v4579_v57  ;;  %v944_v16 = vmul.f32 %v4687_v61, %v4544_v51  ;;  %v945_v8 = vmul.f32 %v4679_v19, %v4581_v62 }
  0xc9   :  { %v947_v43 = vmul.f32 %v4679_v19, %v4561_v32  ;;  %v948_v24 = vmul.f32 %v4687_v61, %v4696_v63  ;;  %v950_v53 = vmul.f32 %v4679_v19, %v4563_v60  ;;  %v951_v10 = vmul.f32 %v4687_v61, %v4704_v21 }
  0xca   :  { %v953_v57 = vmul.f32 %v4687_v61, %v4561_v32  ;;  %v1062_v51 = vsel %vm1055_vm10, %v1058_v29, %v1061_v26  ;;  %v1166_v62 = vsel %vm1159_vm11, %v1162_v33, %v1165_v34  ;;  %v1307_v37 = vsel %vm4766_vm12, 0, %v1305_v27 }
  0xcb   :  { %v954_v2 = vmul.f32 %v4679_v19, %v4696_v63  ;;  %v1303_v1 = vsel %vm1220_vm9, %v1302_v49, %v1301_v3  ;;  %v1585_v15 = vadd.s32 536870912, %v4809_v6  ;;  %v1792_v41 = vadd.s32 1, %v4720_v25 }
  0xcc   :  { %v937_v32 = vsub.f32 %v935_v50, %v936_v59  ;;  %v940_v18 = vsub.f32 %v938_v47, %v939_v36  ;;  %v4839_v23 = vadd.f32 %v942_v20, %v941_v45  ;;  %v956_v38 = vmul.f32 %v4687_v61, %v4563_v60 }
  0xcd   :  { %v957_v7 = vmul.f32 %v4679_v19, %v4704_v21  ;;  %v4847_v63 = vsel %vm1053_vm14, nan, %v1062_v51  ;;  %v4851_v13 = vsel %vm1053_vm14, nan, %v1166_v62  ;;  %v1414_v12 = vadd.s32 3, %v1307_v37 }
  0xce   :  { %v4853_v25 = vadd.f32 %v945_v8, %v944_v16  ;;  %v949_v39 = vsub.f32 %v947_v43, %v948_v24  ;;  %v952_v3 = vsub.f32 %v950_v53, %v951_v10  ;;  %v1306_v60 = vsel %vm4766_vm12, %v4157_v48, %v1303_v1 }
  0xcf   :  { %v4858_v61 = vadd.f32 %v954_v2, %v953_v57  ;;  %v4860_v19 = vshrl.u32 %v1585_v15, 30  ;;  %v1790_v21 = vor.u32 8388608, %v4724_v42  ;;  %vm1793_vm15 = vcmp.gt.s32.totalorder %v1792_v41, 0 }
  0xd0   :  { %v1168_v4 = vmul.f32 %v4847_v63, %v4745_v44  ;;  %v1169_v30 = vmul.f32 %v4851_v13, %v4774_v40  ;;  %v1171_v28 = vmul.f32 %v4847_v63, %v4747_v17  ;;  %v1172_v35 = vmul.f32 %v4851_v13, %v4781_v52 }
  0xd1   :  { %v4871_v50 = vadd.f32 %v957_v7, %v956_v38  ;;  %3815 = vcosq.f32 %v1306_v60  ;;  %v4873_v11 = vand.u32 3, %v1307_v37  ;;  %v4875_v59 = vand.u32 3, %v1414_v12 }
  0xd2   :  { %v1174_v42 = vmul.f32 %v4851_v13, %v4745_v44  ;;  %v1175_v47 = vmul.f32 %v4847_v63, %v4774_v40  ;;  %3817 = vsinq.f32 %v1306_v60  ;;  %v1794_v36 = vsel %vm1793_vm15, %v1792_v41, 0  ;;  %v1997_v41 = vld [vmem:[%s6751_s1 + $0x6] sm:$0x1] }
  0xd3   :  { %v1177_v45 = vmul.f32 %v4851_v13, %v4747_v17  ;;  %v4885_v26 = vadd.s32 %v4691_v22, %v4702_v9  ;;  %v1587_v34 = vshll.u32 %v4860_v19, 30  ;;  %v4888_v27 = vshll.u32 %v1790_v21, 8 }
  0xd4   :  { %v4890_v29 = vsub.f32 %v1168_v4, %v1169_v30  ;;  %v4892_v33 = vsub.f32 %v1171_v28, %v1172_v35  ;;  %v1178_v44 = vmul.f32 %v4847_v63, %v4781_v52  ;;  %v1180_v40 = vmul.f32 %v4847_v63, %v4758_v54 }
  0xd5   :  { %v1181_v17 = vmul.f32 %v4851_v13, %v4788_v31  ;;  %v1183_v22 = vmul.f32 %v4847_v63, %v4772_v5  ;;  %v1184_v9 = vmul.f32 %v4851_v13, %v934_v46  ;;  %v1796_v49 = vand.u32 31, %v1794_v36 }
  0xd6   :  { %v4903_v20 = vadd.f32 %v1175_v47, %v1174_v42  ;;  %v1186_v16 = vmul.f32 %v4851_v13, %v4758_v54  ;;  %v1187_v52 = vmul.f32 %v4847_v63, %v4788_v31  ;;  %v1189_v8 = vmul.f32 %v4851_v13, %v4772_v5 }
  0xd7   :  { %v1190_v43 = vmul.f32 %v4847_v63, %v934_v46  ;;  %v1192_v24 = vmul.f32 %v4847_v63, %v937_v32  ;;  %v1193_v53 = vmul.f32 %v4851_v13, %v949_v39  ;;  %v4915_v10 = vsub.s32 %v4809_v6, %v1587_v34 }
  0xd8   :  { %v1195_v57 = vmul.f32 %v4847_v63, %v940_v18  ;;  %v1196_v51 = vmul.f32 %v4851_v13, %v952_v3  ;;  %v1198_v54 = vmul.f32 %v4851_v13, %v937_v32  ;;  %v1199_v31 = vmul.f32 %v4847_v63, %v949_v39 }
  0xd9   :  { %vm1417_vm0 = vcmp.eq.s32.totalorder %v4875_v59, 0  ;;  %vm1420_vm1 = vcmp.eq.s32.totalorder %v4875_v59, 2  ;;  %v4923_v5 = vadd.f32 %v1178_v44, %v1177_v45  ;;  %v4925_v46 = vsub.f32 %v1180_v40, %v1181_v17 }
  0xda   :  { %v4927_v62 = vsub.f32 %v1183_v22, %v1184_v9  ;;  %v1797_v6 = vsub.s32 32, %v1796_v49  ;;  %v1201_v37 = vmul.f32 %v4851_v13, %v940_v18  ;;  %v1202_v2 = vmul.f32 %v4847_v63, %v952_v3 }
  0xdb   :  { %v1204_v1 = vmul.f32 %v4847_v63, %v4839_v23  ;;  %v1205_v15 = vmul.f32 %v4851_v13, %v4858_v61  ;;  %vm1313_vm2 = vcmp.eq.s32.totalorder %v4873_v11, 0  ;;  %vm1316_vm3 = vcmp.eq.s32.totalorder %v4873_v11, 2  ;;  %v3816_v32 = vpop.eup %3815 }
  0xdc   :  { %v4940_v38 = vadd.f32 %v1187_v52, %v1186_v16  ;;  %v4942_v18 = vadd.f32 %v1190_v43, %v1189_v8  ;;  %v4944_v7 = vsub.f32 %v1192_v24, %v1193_v53  ;;  %vm1416_vm4 = vcmp.lt.s32.totalorder %v4875_v59, 2  ;;  %v3818_v39 = vpop.eup %3817 }
  0xdd   :  { %v1590_v12 = vsub.s32 0, %v4915_v10  ;;  %v4948_v3 = vsub.f32 %v1195_v57, %v1196_v51  ;;  %v4950_v60 = vadd.f32 %v1199_v31, %v1198_v54  ;;  %v1207_v21 = vmul.f32 %v4847_v63, %v4853_v25 }
  0xde   :  { %v1208_v4 = vmul.f32 %v4851_v13, %v4871_v50  ;;  %v1210_v30 = vmul.f32 %v4851_v13, %v4839_v23  ;;  %vm1312_vm5 = vcmp.lt.s32.totalorder %v4873_v11, 2  ;;  %vm1526_vm6 = vcmp.lt.s32.totalorder %v4435_v0, 0  ;;  %v2224_v11 = vld [vmem:[%s6751_s1 + $0x3] sm:$0x1] }
  0xdf   :  { %v6820_v28 = vmov 920167782   ;;  %v6821_v42 = vmov 1326507024   ;;  %v4962_v45 = vmul.f32 0.5, %v1997_v41  ;;  %v4964_v34 = vadd.f32 %v1202_v2, %v1201_v37 }
  0xe0   :  { %v1811_v35 = vshll.u32 %v6820_v28, %v1796_v49  ;;  %v1812_v47 = vshrl.u32 %v6821_v42, %v1797_v6  ;;  %v4966_v44 = vsub.f32 %v1204_v1, %v1205_v15  ;;  %vm1310_vm7 = vweird.f32 %v4157_v48 }
  0xe1   :  { %6822 = vst [vmem:[#allocation3_spill] sm:$0xff] %v4962_v45  ;;  %v4969_v40 = vshrl.u32 %v1794_v36, 5  ;;  %v6823_v17 = vmov 2102212464   ;;  %v1314_v22 = vxor.u32 2147483648, %v3818_v39  ;;  %v1317_v9 = vxor.u32 2147483648, %v3816_v32 }
  0xe2   :  { %v1808_v23 = vshll.u32 %v6823_v17, %v1796_v49  ;;  %v3670_v16 = vmin.u32 %v1590_v12, %v4915_v10  ;;  %v1809_v52 = vshrl.u32 %v6820_v28, %v1797_v6  ;;  %vm4976_vm8 = vcmp.le.f32.partialorder %v1524_v55, 0.7853982 }
  0xe3   :  { %v6826_v43 = vmov 2475754826   ;;  %v6827_v53 = vmov 2131351028   ;;  %v1806_v51 = vshrl.u32 %v6823_v17, %v1797_v6  ;;  %v1211_v54 = vmul.f32 %v4847_v63, %v4858_v61 }
  0xe4   :  { %v1802_v24 = vshll.u32 %v6826_v43, %v1796_v49  ;;  %v1803_v57 = vshrl.u32 %v6827_v53, %v1797_v6  ;;  %v1805_v36 = vshll.u32 %v6827_v53, %v1796_v49  ;;  %v1213_v31 = vmul.f32 %v4851_v13, %v4853_v25 }
  0xe5   :  { %v1813_v37 = vor.u32 %v1812_v47, %v1811_v35  ;;  %v2002_v55 = vand.u32 2139095040, %v4962_v45  ;;  %v1610_v2 = vsub.s32 4, %v4860_v19  ;;  %v1799_v1 = vshll.u32 %v6816_v58, %v1796_v49 }
  0xe6   :  { %v1800_v15 = vshrl.u32 %v6826_v43, %v1797_v6  ;;  %vm1817_vm9 = vcmp.lt.s32.totalorder %v4969_v40, 4  ;;  %v1419_v41 = vsel %vm1417_vm0, %v3816_v32, %v1314_v22  ;;  %v1422_v61 = vsel %vm1420_vm1, %v1317_v9, %v3818_v39 }
  0xe7   :  { %v1592_v12 = vclz %v3670_v16  ;;  %v1810_v56 = vor.u32 %v1809_v52, %v1808_v23  ;;  %v1804_v13 = vor.u32 %v1803_v57, %v1802_v24  ;;  %v1807_v25 = vor.u32 %v1806_v51, %v1805_v36 }
  0xe8   :  { %vm1814_vm10 = vcmp.lt.s32.totalorder %v4969_v40, 1  ;;  %vm1816_vm11 = vcmp.lt.s32.totalorder %v4969_v40, 3  ;;  %v1315_v49 = vsel %vm1313_vm2, %v3816_v32, %v1314_v22  ;;  %v1318_v35 = vsel %vm1316_vm3, %v1317_v9, %v3818_v39 }
  0xe9   :  { %v1827_v47 = vsel %vm1817_vm9, %v1813_v37, 1326507024  ;;  %v2003_v14 = vshrl.u32 %v2002_v55, 23  ;;  %v1423_v16 = vsel %vm1416_vm4, %v1419_v41, %v1422_v61  ;;  %v1611_v23 = vsel %vm1526_vm6, %v1610_v2, %v4860_v19 }
  0xea   :  { %v1798_v52 = vshrl.u32 %v6816_v58, %v1797_v6  ;;  %v1801_v24 = vor.u32 %v1800_v15, %v1799_v1  ;;  %v1214_v32 = vmul.f32 %v4847_v63, %v4871_v50  ;;  %v3671_v22 = vadd.s32 4294967294, %v1592_v12 }
  0xeb   :  { %v1819_v39 = vsel %vm1817_vm9, %v1807_v25, 2102212464  ;;  %v1823_v9 = vsel %vm1817_vm9, %v1810_v56, 920167782  ;;  %v1319_v59 = vsel %vm1312_vm5, %v1315_v49, %v1318_v35  ;;  %vm1815_vm12 = vcmp.lt.s32.totalorder %v4969_v40, 2 }
  0xec   :  { %v1826_v19 = vsel %vm1814_vm10, %v1804_v13, %v1807_v25  ;;  %v1828_v6 = vsel %vm1816_vm11, %v1810_v56, %v1827_v47  ;;  %v5024_v57 = vsub.f32 %v1207_v21, %v1208_v4  ;;  %v5028_v63 = vsel %vm1310_vm7, nan, %v1423_v16 }
  0xed   :  { %v1613_v50 = vsel %vm4976_vm8, 0, %v1611_v23  ;;  %v3685_v36 = vadd.s32 4294967169, %v2003_v14  ;;  %v1818_v51 = vsel %vm1814_vm10, %v1798_v52, %v1801_v24  ;;  %v1820_v56 = vsel %vm1816_vm11, %v1804_v13, %v1819_v39 }
  0xee   :  { %v1822_v21 = vsel %vm1814_vm10, %v1801_v24, %v1804_v13  ;;  %v1824_v4 = vsel %vm1816_vm11, %v1807_v25, %v1823_v9  ;;  %v5043_v37 = vadd.f32 %v1211_v54, %v1210_v30  ;;  %v5047_v14 = vsel %vm1310_vm7, nan, %v1319_v59 }
  0xef   :  { %vm3672_vm13 = vcmp.lt.s32.totalorder %v3671_v22, 0  ;;  %v1829_v55 = vsel %vm1815_vm12, %v1826_v19, %v1828_v6  ;;  %v5051_v2 = vadd.f32 %v1214_v32, %v1213_v31  ;;  %v5054_v1 = vmul.f32 -1.0, %v5028_v63 }
  0xf0   :  { %v5056_v15 = vand.u32 3, %v1613_v50  ;;  %v5058_v41 = vmul.f32 0.5, %v2224_v11  ;;  %v1720_v61 = vadd.s32 3, %v1613_v50  ;;  %v5062_v30 = vsel %vm1815_vm12, %v1818_v51, %v1820_v56 }
  0xf1   :  { %v1825_v48 = vsel %vm1815_vm12, %v1822_v21, %v1824_v4  ;;  %v2009_v54 = vadd.s32 1, %v3685_v36  ;;  %v1425_v31 = vmul.f32 %v5047_v14, %v4890_v29  ;;  %v5068_v12 = vsel %vm3672_vm13, 0, %v3671_v22 }
  0xf2   :  { %6828 = vst [vmem:[#allocation4_spill] sm:$0xff] %v5058_v41  ;;  %v5071_v13 = vmul.u32.u64.low %v4888_v27, %v1829_v55  ;;  %v5072_v25 = vmul.u32.u64.high %v4888_v27, %v1829_v55, %v5071_v13  ;;  %v1430_v49 = vmul.f32 %v5047_v14, %v4892_v33  ;;  %v1432_v35 = vmul.f32 %v5047_v14, %v4903_v20 }
  0xf3   :  { %v1436_v40 = vmul.f32 %v5047_v14, %v4923_v5  ;;  %v1438_v47 = vmul.f32 %v5047_v14, %v4925_v46  ;;  %v1427_v16 = vmul.f32 %v5054_v1, %v4892_v33  ;;  %v1429_v23 = vmul.f32 %v5054_v1, %v4890_v29 }
  0xf4   :  { %v1433_v52 = vmul.f32 %v5054_v1, %v4923_v5  ;;  %v1435_v24 = vmul.f32 %v5054_v1, %v4903_v20  ;;  %v1439_v32 = vmul.f32 %v5054_v1, %v4927_v62  ;;  %vm2010_vm14 = vcmp.gt.s32.totalorder %v2009_v54, 0 }
  0xf5   :  { %v5093_v22 = vmul.u32.u64.low %v4888_v27, %v1825_v48  ;;  %v5094_v39 = vmul.u32.u64.high %v4888_v27, %v1825_v48, %v5093_v22  ;;  %v1441_v33 = vmul.f32 %v5054_v1, %v4925_v46  ;;  %v1442_v29 = vmul.f32 %v5047_v14, %v4927_v62 }
  0xf6   :  { %v1444_v5 = vmul.f32 %v5047_v14, %v4940_v38  ;;  %v1445_v20 = vmul.f32 %v5054_v1, %v4942_v18  ;;  %v1447_v9 = vmul.f32 %v5054_v1, %v4940_v38  ;;  %v1448_v59 = vmul.f32 %v5047_v14, %v4942_v18 }
  0xf7   :  { %v5109_v19 = vand.u32 3, %v1720_v61  ;;  %v1837_v46 = vmul.u32 %v4888_v27, %v5062_v30  ;;  %v5113_v6 = vsub.f32 %v1425_v31, %v1427_v16  ;;  %v5115_v62 = vadd.f32 %v1430_v49, %v1429_v23 }
  0xf8   :  { %v6769_v50 = vand.u32 2147483647, %v4962_v45  ;;  %v2011_v36 = vsel %vm2010_vm14, %v2009_v54, 0  ;;  %v5118_v11 = vsub.f32 %v1432_v35, %v1433_v52  ;;  %v5120_v51 = vadd.f32 %v1436_v40, %v1435_v24 }
  0xf9   :  { %v5122_v38 = vsub.f32 %v1438_v47, %v1439_v32  ;;  %v1600_v18 = vsub.s32 4294967266, %v5068_v12  ;;  %v5125_v56 = vadd.f32 %v1442_v29, %v1441_v33  ;;  %v5127_v21 = vsub.f32 %v1444_v5, %v1445_v20 }
  0xfa   :  { %v1450_v27 = vmul.f32 %v5047_v14, %v4944_v7  ;;  %v1451_v4 = vmul.f32 %v5028_v63, %v4948_v3  ;;  %v5133_v55 = vadd.f32 %v1448_v59, %v1447_v9  ;;  %v1453_v61 = vmul.f32 %v5028_v63, %v4944_v7 }
  0xfb   :  { %v1454_v30 = vmul.f32 %v5047_v14, %v4948_v3  ;;  %v2013_v48 = vand.u32 31, %v2011_v36  ;;  %v1456_v54 = vmul.f32 %v5047_v14, %v4950_v60  ;;  %v1457_v31 = vmul.f32 %v5028_v63, %v4964_v34 }
  0xfc   :  { %v1459_v13 = vmul.f32 %v5028_v63, %v4950_v60  ;;  %v1460_v49 = vmul.f32 %v5047_v14, %v4964_v34  ;;  %v1462_v35 = vmul.f32 %v5047_v14, %v4966_v44  ;;  %v1596_v7 = vsub.s32 32, %v5068_v12 }
  0xfd   :  { %v1601_v40 = vadd.s32 127, %v1600_v18  ;;  %v1840_v3 = vadd.s32 1, %v5094_v39  ;;  %v1463_v47 = vmul.f32 %v5028_v63, %v5024_v57  ;;  %v1465_v16 = vmul.f32 %v5028_v63, %v4966_v44 }
  0xfe   :  { %v1466_v60 = vmul.f32 %v5047_v14, %v5024_v57  ;;  %vm1839_vm15 = vc.u32 %v5072_v25, %v5093_v22  ;;  %v5159_v34 = vsub.f32 %v1450_v27, %v1451_v4  ;;  %v5161_v23 = vadd.f32 %v1454_v30, %v1453_v61 }
  0xff   :  { %v5163_v52 = vsub.s32 32, %v2013_v48  ;;  %v2229_v24 = vand.u32 2139095040, %v5058_v41  ;;  %v5166_v32 = vsub.f32 %v1456_v54, %v1457_v31  ;;  %v5168_v33 = vadd.f32 %v1460_v49, %v1459_v13 }
 0x100   :  { %v1468_v44 = vmul.f32 %v5047_v14, %v5043_v37  ;;  %v1469_v57 = vmul.f32 %v5028_v63, %v5051_v2  ;;  %v1597_v29 = vshll.u32 %v4915_v10, %v5068_v12  ;;  %v1598_v5 = vshrl.u32 %v4885_v26, %v1596_v7 }
 0x101   :  { %v1602_v20 = vshll.u32 %v1601_v40, 23  ;;  %v1841_v9 = vsel %vm1839_vm15, %v1840_v3, %v5094_v39  ;;  %v5178_v59 = vsub.f32 %v1462_v35, %v1463_v47  ;;  %v5180_v18 = vadd.f32 %v1466_v60, %v1465_v16 }
 0x102   :  { %v1471_v27 = vmul.f32 %v5028_v63, %v5043_v37  ;;  %v1472_v4 = vmul.f32 %v5047_v14, %v5051_v2  ;;  %v1474_v61 = vmul.f32 %v5113_v6, %v5047_v14  ;;  %v2025_v10 = vshll.u32 %v6823_v17, %v2013_v48 }
 0x103   :  { %v2026_v26 = vshrl.u32 %v6820_v28, %v5163_v52  ;;  %v2230_v12 = vshrl.u32 %v2229_v24, 23  ;;  %v5191_v39 = vadd.s32 %v1841_v9, %v1837_v46  ;;  %v5193_v30 = vshrl.u32 %v2011_v36, 5 }
 0x104   :  { %v2028_v54 = vshll.u32 %v6820_v28, %v2013_v48  ;;  %v2029_v37 = vshrl.u32 %v6821_v42, %v5163_v52  ;;  %v1599_v31 = vor.u32 %v1598_v5, %v1597_v29  ;;  %v1603_v2 = vor.u32 4788187, %v1602_v20 }
 0x105   :  { %v2016_v13 = vshll.u32 %v6816_v58, %v2013_v48  ;;  %v2019_v49 = vshll.u32 %v6826_v43, %v2013_v48  ;;  %v2017_v35 = vshrl.u32 %v6826_v43, %v5163_v52  ;;  %v2020_v46 = vshrl.u32 %v6827_v53, %v5163_v52 }
 0x106   :  { %v2022_v36 = vshll.u32 %v6827_v53, %v2013_v48  ;;  %v2023_v7 = vshrl.u32 %v6823_v17, %v5163_v52  ;;  %v5207_v40 = vsub.f32 %v1468_v44, %v1469_v57  ;;  %v1475_v3 = vmul.f32 %v5115_v62, %v5054_v1 }
 0x107   :  { %v2027_v47 = vor.u32 %v2026_v26, %v2025_v10  ;;  %v3693_v16 = vadd.s32 4294967169, %v2230_v12  ;;  %v1843_v60 = vadd.s32 536870912, %v5191_v39  ;;  %v2006_v24 = vand.u32 8388607, %v6769_v50  ;;  %v2471_v12 = vld [vmem:[%s6751_s1 + $0x4] sm:$0x1] }
 0x108   :  { %v2030_v29 = vor.u32 %v2029_v37, %v2028_v54  ;;  %vm2034_vm0 = vcmp.lt.s32.totalorder %v5193_v30, 4  ;;  %v5215_v5 = vadd.f32 %v1472_v4, %v1471_v27  ;;  %v1477_v48 = vmul.f32 %v5113_v6, %v5054_v1 }
 0x109   :  { %v1478_v44 = vmul.f32 %v5115_v62, %v5047_v14  ;;  %v1606_v57 = vcvt.s32.f32 %v1599_v31  ;;  %v1604_v20 = vand.u32 2147483647, %v1603_v2  ;;  %v2018_v9 = vor.u32 %v2017_v35, %v2016_v13 }
 0x10a   :  { %v2021_v10 = vor.u32 %v2020_v46, %v2019_v49  ;;  %v2024_v26 = vor.u32 %v2023_v7, %v2022_v36  ;;  %vm2031_vm1 = vcmp.lt.s32.totalorder %v5193_v30, 1  ;;  %vm2033_vm2 = vcmp.lt.s32.totalorder %v5193_v30, 3 }
 0x10b   :  { %v2040_v27 = vsel %vm2034_vm0, %v2027_v47, 920167782  ;;  %v2236_v6 = vadd.s32 1, %v3693_v16  ;;  %v1480_v62 = vmul.f32 %v5118_v11, %v5047_v14  ;;  %v5230_v4 = vshrl.u32 %v1843_v60, 30 }
 0x10c   :  { %v2007_v54 = vor.u32 8388608, %v2006_v24  ;;  %v2044_v37 = vsel %vm2034_vm0, %v2030_v29, 1326507024  ;;  %v5234_v31 = vsub.f32 %v1474_v61, %v1475_v3  ;;  %v5236_v2 = vadd.f32 %v1478_v44, %v1477_v48 }
 0x10d   :  { %v1481_v13 = vmul.f32 %v5120_v51, %v5054_v1  ;;  %v1483_v49 = vmul.f32 %v5118_v11, %v5054_v1  ;;  %vm2032_vm3 = vcmp.lt.s32.totalorder %v5193_v30, 2  ;;  %v2039_v35 = vsel %vm2031_vm1, %v2018_v9, %v2021_v10 }
 0x10e   :  { %v2041_v46 = vsel %vm2033_vm2, %v2024_v26, %v2040_v27  ;;  %v5247_v36 = vmul.f32 0.5, %v2471_v12  ;;  %v1607_v61 = vmul.f32 %v1606_v57, %v1604_v20  ;;  %v2043_v7 = vsel %vm2031_vm1, %v2021_v10, %v2024_v26 }
 0x10f   :  { %v2045_v3 = vsel %vm2033_vm2, %v2027_v47, %v2044_v37  ;;  %vm2237_vm4 = vcmp.gt.s32.totalorder %v2236_v6, 0  ;;  %v1484_v11 = vmul.f32 %v5120_v51, %v5047_v14  ;;  %v1486_v16 = vmul.f32 %v5122_v38, %v5047_v14 }
 0x110   :  { %6829 = vst [vmem:[#allocation5_spill] sm:$0xff] %v5247_v36  ;;  %v1845_v60 = vshll.u32 %v5230_v4, 30  ;;  %v5258_v24 = vshll.u32 %v2007_v54, 8  ;;  %v1487_v29 = vmul.f32 %v5125_v56, %v5028_v63  ;;  %v1489_v48 = vmul.f32 %v5122_v38, %v5028_v63 }
 0x111   :  { %v1490_v47 = vmul.f32 %v5125_v56, %v5047_v14  ;;  %v2042_v44 = vsel %vm2032_vm3, %v2039_v35, %v2041_v46  ;;  %v1492_v51 = vmul.f32 %v5127_v21, %v5047_v14  ;;  %v1493_v57 = vmul.f32 %v5133_v55, %v5028_v63 }
 0x112   :  { %v2046_v20 = vsel %vm2032_vm3, %v2043_v7, %v2045_v3  ;;  %v2238_v12 = vsel %vm2237_vm4, %v2236_v6, 0  ;;  %v1495_v27 = vmul.f32 %v5127_v21, %v5028_v63  ;;  %v1496_v38 = vmul.f32 %v5133_v55, %v5047_v14 }
 0x113   :  { %v1608_v56 = vxor.u32 2147483648, %v1607_v61  ;;  %v2476_v54 = vand.u32 2139095040, %v5247_v36  ;;  %v5280_v37 = vsub.s32 %v5191_v39, %v1845_v60  ;;  %v2015_v35 = vshrl.u32 %v6816_v58, %v5163_v52 }
 0x114   :  { %v5285_v46 = vmul.u32.u64.low %v5258_v24, %v2042_v44  ;;  %v5286_v50 = vmul.u32.u64.high %v5258_v24, %v2042_v44, %v5285_v46  ;;  %v2036_v21 = vsel %vm2034_vm0, %v2024_v26, 2102212464  ;;  %v2240_v7 = vand.u32 31, %v2238_v12 }
 0x115   :  { %v5292_v6 = vmul.u32.u64.low %v5258_v24, %v2046_v20  ;;  %v5293_v55 = vmul.u32.u64.high %v5258_v24, %v2046_v20, %v5292_v6  ;;  %v5295_v3 = vsub.f32 %v1480_v62, %v1481_v13  ;;  %v5297_v39 = vadd.f32 %v1484_v11, %v1483_v49 }
 0x116   :  { %v1498_v52 = vmul.f32 %v5159_v34, %v5047_v14  ;;  %v1499_v60 = vmul.f32 %v5161_v23, %v5054_v1  ;;  %v5303_v44 = vsub.f32 %v1486_v16, %v1487_v29  ;;  %v5305_v45 = vadd.f32 %v1490_v47, %v1489_v48 }
 0x117   :  { %v1501_v26 = vmul.f32 %v5159_v34, %v5054_v1  ;;  %v1502_v20 = vmul.f32 %v5161_v23, %v5047_v14  ;;  %v5311_v62 = vsub.f32 %v1492_v51, %v1493_v57  ;;  %v2035_v13 = vsel %vm2031_vm1, %v2015_v35, %v2018_v9 }
 0x118   :  { %v2037_v49 = vsel %vm2033_vm2, %v2021_v10, %v2036_v21  ;;  %v2477_v11 = vshrl.u32 %v2476_v54, 23  ;;  %v5317_v6 = vadd.f32 %v1496_v38, %v1495_v27  ;;  %v1609_v16 = vsel %vm1526_vm6, %v1608_v56, %v1607_v61 }
 0x119   :  { %v1848_v29 = vsub.s32 0, %v5280_v37  ;;  %v5322_v34 = vsub.s32 32, %v2240_v7  ;;  %v5324_v48 = vsub.f32 %v1498_v52, %v1499_v60  ;;  %v1504_v23 = vmul.f32 %v5166_v32, %v5047_v14 }
 0x11a   :  { %v1505_v9 = vmul.f32 %v5168_v33, %v5054_v1  ;;  %v1507_v10 = vmul.f32 %v5166_v32, %v5054_v1  ;;  %v5332_v47 = vadd.f32 %v1502_v20, %v1501_v26  ;;  %v1508_v61 = vmul.f32 %v5168_v33, %v5047_v14 }
 0x11b   :  { %6830 = vst [vmem:[#allocation6_spill] sm:$0xff] %v5324_v48  ;;  %v5338_v51 = vmul.f32 %v5178_v59, %v5047_v14  ;;  %v2038_v57 = vsel %vm2032_vm3, %v2035_v13, %v2037_v49  ;;  %v1612_v27 = vsel %vm4976_vm8, %v4435_v0, %v1609_v16  ;;  %v2057_v38 = vadd.s32 1, %v5286_v50 }
 0x11c   :  { %6831 = vst [vmem:[#allocation7_spill] sm:$0xff] %v5332_v47  ;;  %v6775_v1 = vand.u32 2147483647, %v5058_v41  ;;  %v3701_v32 = vadd.s32 4294967169, %v2477_v11  ;;  %v3678_v56 = vmin.u32 %v1848_v29, %v5280_v37  ;;  %vm2056_vm5 = vc.u32 %v5293_v55, %v5285_v46  ;;  %v6833_v29 = vld [vmem:[#allocation2_spill] sm:$0xff] }
 0x11d   :  { %v2252_v33 = vshll.u32 %v6823_v17, %v2240_v7  ;;  %v2253_v30 = vshrl.u32 %v6820_v28, %v5322_v34  ;;  %v2054_v54 = vmul.u32 %v5258_v24, %v2038_v57  ;;  %v5354_v35 = vshrl.u32 %v2238_v12, 5 }
 0x11e   :  { %v2255_v8 = vshll.u32 %v6820_v28, %v2240_v7  ;;  %v2256_v21 = vshrl.u32 %v6821_v42, %v5322_v34  ;;  %v2243_v52 = vshll.u32 %v6816_v58, %v2240_v7  ;;  %v2244_v60 = vshrl.u32 %v6826_v43, %v5322_v34 }
 0x11f   :  { %v2246_v26 = vshll.u32 %v6826_v43, %v2240_v7  ;;  %v2249_v20 = vshll.u32 %v6827_v53, %v2240_v7  ;;  %v2058_v13 = vsel %vm2056_vm5, %v2057_v38, %v5286_v50  ;;  %v2247_v24 = vshrl.u32 %v6827_v53, %v5322_v34 }
 0x120   :  { %v2250_v12 = vshrl.u32 %v6823_v17, %v5322_v34  ;;  %v2483_v49 = vadd.s32 1, %v3701_v32  ;;  %v5369_v11 = vsub.f32 %v1504_v23, %v1505_v9  ;;  %v1511_v16 = vmul.f32 %v5180_v18, %v5028_v63 }
 0x121   :  { %vm1784_vm6 = vcmp.lt.s32.totalorder %v6833_v29, 0  ;;  %v2233_v57 = vand.u32 8388607, %v6775_v1  ;;  %v2254_v7 = vor.u32 %v2253_v30, %v2252_v33  ;;  %3819 = vcosq.f32 %v1612_v27 }
 0x122   :  { %6832 = vst [vmem:[#allocation8_spill] sm:$0xff] %v5369_v11  ;;  %v1850_v50 = vclz %v3678_v56  ;;  %v2257_v38 = vor.u32 %v2256_v21, %v2255_v8  ;;  %vm2261_vm7 = vcmp.lt.s32.totalorder %v5354_v35, 4  ;;  %v1513_v47 = vmul.f32 %v5178_v59, %v5028_v63  ;;  %v2728_v59 = vld [vmem:[%s6751_s1 + $0x5] sm:$0x1] }
 0x123   :  { %v1514_v23 = vmul.f32 %v5180_v18, %v5047_v14  ;;  %3821 = vsinq.f32 %v1612_v27  ;;  %v5381_v9 = vadd.s32 %v2058_v13, %v2054_v54  ;;  %v6834_v32 = vand.u32 2147483647, %v6833_v29 }
 0x124   :  { %v6835_v41 = vmov 0  ;;  %v5389_v33 = vor.u32 %v2244_v60, %v2243_v52  ;;  %v5391_v56 = vor.u32 %v2247_v24, %v2246_v26  ;;  %v2251_v30 = vor.u32 %v2250_v12, %v2249_v20 }
 0x125   :  { %vm5385_vm8 = vcmp.le.f32.partialorder %v6834_v32, 0.7853982  ;;  %vm2484_vm9 = vcmp.gt.s32.totalorder %v2483_v49, 0  ;;  %v5396_v18 = vadd.f32 %v1508_v61, %v1507_v10  ;;  %vm2258_vm10 = vcmp.lt.s32.totalorder %v5354_v35, 1 }
 0x126   :  { %v6836_v41 = vsel %vm5385_vm8, 4294967295, %v6835_v41  ;;  %vm2260_vm11 = vcmp.lt.s32.totalorder %v5354_v35, 3  ;;  %v2267_v27 = vsel %vm2261_vm7, %v2254_v7, 920167782  ;;  %v3679_v54 = vadd.s32 4294967294, %v1850_v50 }
 0x127   :  { %6837 = vst [vmem:[#allocation2_spill] sm:$0xff] %v6836_v41  ;;  %6838 = vst [vmem:[#allocation9_spill] sm:$0xff] %v5396_v18  ;;  %v1868_v8 = vsub.s32 4, %v5230_v4  ;;  %v2234_v21 = vor.u32 8388608, %v2233_v57  ;;  %v2271_v52 = vsel %vm2261_vm7, %v2257_v38, 1326507024  ;;  %v1516_v60 = vmul.f32 %v5207_v40, %v5047_v14 }
 0x128   :  { %vm1622_vm12 = vcmp.eq.s32.totalorder %v5056_v15, 2  ;;  %v2060_v10 = vadd.s32 536870912, %v5381_v9  ;;  %v2485_v61 = vsel %vm2484_vm9, %v2483_v49, 0  ;;  %v5409_v26 = vmul.f32 0.5, %v2728_v59 }
 0x129   :  { %v1517_v20 = vmul.f32 %v5215_v5, %v5028_v63  ;;  %vm2259_vm13 = vcmp.lt.s32.totalorder %v5354_v35, 2  ;;  %v2266_v13 = vsel %vm2258_vm10, %v5389_v33, %v5391_v56  ;;  %v2268_v24 = vsel %vm2260_vm11, %v2251_v30, %v2267_v27 }
 0x12a   :  { %v1519_v12 = vmul.f32 %v5207_v40, %v5028_v63  ;;  %v1520_v49 = vmul.f32 %v5215_v5, %v5047_v14  ;;  %v2270_v57 = vsel %vm2258_vm10, %v5391_v56, %v2251_v30  ;;  %v2272_v50 = vsel %vm2260_vm11, %v2254_v7, %v2271_v52 }
 0x12b   :  { %vm3680_vm14 = vcmp.lt.s32.totalorder %v3679_v54, 0  ;;  %v1869_v38 = vsel %vm1784_vm6, %v1868_v8, %v5230_v4  ;;  %v5432_v32 = vshll.u32 %v2234_v21, 8  ;;  %v2487_v59 = vand.u32 31, %v2485_v61  ;;  %v3820_v7 = vpop.eup %3819 }
 0x12c   :  { %v5435_v63 = vsub.f32 %v5338_v51, %v1511_v16  ;;  %vm1726_vm15 = vcmp.eq.s32.totalorder %v5109_v19, 2  ;;  %v5438_v14 = vshrl.u32 %v2060_v10, 30  ;;  %v2269_v40 = vsel %vm2259_vm13, %v2266_v13, %v2268_v24 }
 0x12d   :  { %v2733_v5 = vand.u32 2139095040, %v5409_v26  ;;  %v5443_v27 = vadd.f32 %v1514_v23, %v1513_v47  ;;  %v5445_v52 = vsub.f32 %v1516_v60, %v1517_v20  ;;  %v2273_v4 = vsel %vm2259_vm13, %v2270_v57, %v2272_v50  ;;  %v3822_v16 = vpop.eup %3821  ;;  %v2985_v60 = vld [vmem:[%s6751_s1 + $0x1] sm:$0x1] }
 0x12e   :  { %6839 = vst [vmem:[#allocation10_spill] sm:$0xff] %v5435_v63  ;;  %6840 = vst [vmem:[#allocation11_spill] sm:$0xff] %v5438_v14  ;;  %v6776_v51 = vand.u32 2147483647, %v5247_v36  ;;  %v5450_v8 = vadd.f32 %v1520_v49, %v1519_v12  ;;  %vm1619_vm0 = vcmp.eq.s32.totalorder %v5056_v15, 0  ;;  %vm1723_vm1 = vcmp.eq.s32.totalorder %v5109_v19, 0 }
 0x12f   :  { %6841 = vst [vmem:[#allocation12_spill] sm:$0xff] %v5443_v27  ;;  %6842 = vst [vmem:[#allocation13_spill] sm:$0xff] %v5445_v52  ;;  %v5456_v21 = vadd.s32 %v5093_v22, %v5072_v25  ;;  %v5459_v47 = vsel %vm3680_vm14, 0, %v3679_v54  ;;  %v5463_v23 = vsel %vm5385_vm8, 0, %v1869_v38  ;;  %v2242_v10 = vshrl.u32 %v6816_v58, %v5322_v34 }
 0x130   :  { %6843 = vst [vmem:[#allocation14_spill] sm:$0xff] %v5450_v8  ;;  %v5471_v20 = vmul.u32.u64.low %v5432_v32, %v2269_v40  ;;  %v5472_v13 = vmul.u32.u64.high %v5432_v32, %v2269_v40, %v5471_v20  ;;  %v5475_v25 = vsub.s32 32, %v2487_v59  ;;  %v2062_v22 = vshll.u32 %v5438_v14, 30 }
 0x131   :  { %v5479_v54 = vmul.u32.u64.low %v5432_v32, %v2273_v4  ;;  %v5480_v24 = vmul.u32.u64.high %v5432_v32, %v2273_v4, %v5479_v54  ;;  %v2734_v12 = vshrl.u32 %v2733_v5, 23  ;;  %v1623_v49 = vxor.u32 2147483648, %v3820_v7 }
 0x132   :  { %6844 = vst [vmem:[#allocation15_spill] sm:$0xff] %v5471_v20  ;;  %vm1722_vm2 = vcmp.lt.s32.totalorder %v5109_v19, 2  ;;  %v2263_v34 = vsel %vm2261_vm7, %v2251_v30, 2102212464  ;;  %v5487_v57 = vand.u32 8388607, %v6776_v51  ;;  %v2262_v30 = vsel %vm2258_vm10, %v2242_v10, %v5389_v33 }
 0x133   :  { %v5489_v50 = vmul.f32 0.5, %v2985_v60  ;;  %v1620_v38 = vxor.u32 2147483648, %v3822_v16  ;;  %v1854_v40 = vsub.s32 32, %v5459_v47  ;;  %v1858_v1 = vsub.s32 4294967266, %v5459_v47 }
 0x134   :  { %v1978_v4 = vadd.s32 3, %v5463_v23  ;;  %v1624_v5 = vsel %vm1622_vm12, %v1623_v49, %v3822_v16  ;;  %v2499_v54 = vshll.u32 %v6823_v17, %v2487_v59  ;;  %v2500_v60 = vshrl.u32 %v6820_v28, %v5475_v25 }
 0x135   :  { %vm1616_vm3 = vweird.f32 %v4435_v0  ;;  %vm1618_vm4 = vcmp.lt.s32.totalorder %v5056_v15, 2  ;;  %v5505_v51 = vsub.s32 %v5381_v9, %v2062_v22  ;;  %v2264_v36 = vsel %vm2260_vm11, %v5391_v56, %v2263_v34 }
 0x136   :  { %v5510_v8 = vshrl.u32 %v2485_v61, 5  ;;  %v3709_v52 = vadd.s32 4294967169, %v2734_v12  ;;  %v2490_v33 = vshll.u32 %v6816_v58, %v2487_v59  ;;  %v2491_v10 = vshrl.u32 %v6826_v43, %v5475_v25 }
 0x137   :  { %v2502_v27 = vshll.u32 %v6820_v28, %v2487_v59  ;;  %v2503_v63 = vshrl.u32 %v6821_v42, %v5475_v25  ;;  %v2493_v9 = vshll.u32 %v6826_v43, %v2487_v59  ;;  %v2494_v22 = vshrl.u32 %v6827_v53, %v5475_v25 }
 0x138   :  { %v2496_v56 = vshll.u32 %v6827_v53, %v2487_v59  ;;  %v2497_v61 = vshrl.u32 %v6823_v17, %v5475_v25  ;;  %v1728_v12 = vsel %vm1726_vm15, %v1623_v49, %v3822_v16  ;;  %v2265_v34 = vsel %vm2259_vm13, %v2262_v30, %v2264_v36 }
 0x139   :  { %v2284_v14 = vadd.s32 1, %v5472_v13  ;;  %v2501_v18 = vor.u32 %v2500_v60, %v2499_v54  ;;  %v2065_v11 = vsub.s32 0, %v5505_v51  ;;  %vm2283_vm5 = vc.u32 %v5480_v24, %v5471_v20 }
 0x13a   :  { %vm2508_vm7 = vcmp.lt.s32.totalorder %v5510_v8, 4  ;;  %v2740_v59 = vadd.s32 1, %v3709_v52  ;;  %v1621_v48 = vsel %vm1619_vm0, %v3820_v7, %v1620_v38  ;;  %v1725_v16 = vsel %vm1723_vm1, %v3820_v7, %v1620_v38 }
 0x13b   :  { %v1859_v49 = vadd.s32 127, %v1858_v1  ;;  %v2504_v35 = vor.u32 %v2503_v63, %v2502_v27  ;;  %v2281_v36 = vmul.u32 %v5432_v32, %v2265_v34  ;;  %v2492_v30 = vor.u32 %v2491_v10, %v2490_v33 }
 0x13c   :  { %v2495_v54 = vor.u32 %v2494_v22, %v2493_v9  ;;  %v2498_v60 = vor.u32 %v2497_v61, %v2496_v56  ;;  %v2285_v41 = vsel %vm2283_vm5, %v2284_v14, %v5472_v13  ;;  %vm2505_vm9 = vcmp.lt.s32.totalorder %v5510_v8, 1 }
 0x13d   :  { %vm2507_vm10 = vcmp.lt.s32.totalorder %v5510_v8, 3  ;;  %v2514_v52 = vsel %vm2508_vm7, %v2501_v18, 920167782  ;;  %v1729_v20 = vsel %vm1722_vm2, %v1725_v16, %v1728_v12  ;;  %v3686_v1 = vmin.u32 %v2065_v11, %v5505_v51 }
 0x13e   :  { %v2481_v63 = vor.u32 8388608, %v5487_v57  ;;  %vm2741_vm11 = vcmp.gt.s32.totalorder %v2740_v59, 0  ;;  %v1855_v32 = vshll.u32 %v5280_v37, %v5459_v47  ;;  %v1856_v14 = vshrl.u32 %v5456_v21, %v1854_v40 }
 0x13f   :  { %v1860_v7 = vshll.u32 %v1859_v49, 23  ;;  %v2518_v27 = vsel %vm2508_vm7, %v2504_v35, 1326507024  ;;  %v5552_v13 = vadd.s32 %v2285_v41, %v2281_v36  ;;  %vm2506_vm12 = vcmp.lt.s32.totalorder %v5510_v8, 2 }
 0x140   :  { %v2513_v19 = vsel %vm2505_vm9, %v2492_v30, %v2495_v54  ;;  %v2515_v11 = vsel %vm2507_vm10, %v2498_v60, %v2514_v52  ;;  %v1625_v57 = vsel %vm1618_vm4, %v1621_v48, %v1624_v5  ;;  %v5563_v37 = vsel %vm1616_vm3, nan, %v1729_v20 }
 0x141   :  { %v5566_v21 = vand.u32 3, %v5463_v23  ;;  %v2742_v41 = vsel %vm2741_vm11, %v2740_v59, 0  ;;  %v2067_v47 = vclz %v3686_v1  ;;  %v2517_v38 = vsel %vm2505_vm9, %v2495_v54, %v2498_v60 }
 0x142   :  { %v2519_v40 = vsel %vm2507_vm10, %v2501_v18, %v2518_v27  ;;  %v5572_v33 = vshll.u32 %v2481_v63, 8  ;;  %v1857_v10 = vor.u32 %v1856_v14, %v1855_v32  ;;  %v1861_v15 = vor.u32 4788187, %v1860_v7 }
 0x143   :  { %v5574_v48 = vand.u32 3, %v1978_v4  ;;  %v2516_v20 = vsel %vm2506_vm12, %v2513_v19, %v2515_v11  ;;  %v5580_v23 = vsel %vm1616_vm3, nan, %v1625_v57  ;;  %v5583_v5 = vmul.f32 -1.0, %v5563_v37 }
 0x144   :  { %v2287_v9 = vadd.s32 536870912, %v5552_v13  ;;  %v2744_v22 = vand.u32 31, %v2742_v41  ;;  %v1738_v18 = vmul.f32 %v5580_v23, %v5295_v3  ;;  %v1739_v4 = vmul.f32 %v5563_v37, %v5297_v39 }
 0x145   :  { %v1741_v56 = vmul.f32 %v5563_v37, %v5295_v3  ;;  %v2520_v0 = vsel %vm2506_vm12, %v2517_v38, %v2519_v40  ;;  %v3687_v61 = vadd.s32 4294967294, %v2067_v47  ;;  %v2489_v12 = vshrl.u32 %v6816_v58, %v5475_v25 }
 0x146   :  { %v5597_v34 = vmul.u32.u64.low %v5572_v33, %v2516_v20  ;;  %v5598_v59 = vmul.u32.u64.high %v5572_v33, %v2516_v20, %v5597_v34  ;;  %v1742_v16 = vmul.f32 %v5580_v23, %v5297_v39  ;;  %v1862_v49 = vand.u32 2147483647, %v1861_v15 }
 0x147   :  { %v1864_v35 = vcvt.s32.f32 %v1857_v10  ;;  %v2510_v3 = vsel %vm2508_vm7, %v2498_v60, 2102212464  ;;  %v5605_v36 = vshrl.u32 %v2287_v9, 30  ;;  %v5611_v25 = vsub.s32 32, %v2744_v22 }
 0x148   :  { %v5608_v52 = vmul.u32.u64.low %v5572_v33, %v2520_v0  ;;  %v5609_v1 = vmul.u32.u64.high %v5572_v33, %v2520_v0, %v5608_v52  ;;  %v1731_v63 = vmul.f32 %v5580_v23, %v5234_v31  ;;  %v1733_v32 = vmul.f32 %v5583_v5, %v5236_v2 }
 0x149   :  { %v1736_v39 = vmul.f32 %v5580_v23, %v5236_v2  ;;  %v5621_v60 = vmul.f32 %v5580_v23, %v5303_v44  ;;  %v1735_v14 = vmul.f32 %v5583_v5, %v5234_v31  ;;  %vm3688_vm13 = vcmp.lt.s32.totalorder %v3687_v61, 0 }
 0x14a   :  { %v2509_v7 = vsel %vm2505_vm9, %v2489_v12, %v2492_v30  ;;  %v2511_v27 = vsel %vm2507_vm10, %v2495_v54, %v2510_v3  ;;  %v5629_v19 = vsub.f32 %v1738_v18, %v1739_v4  ;;  %v5631_v11 = vadd.f32 %v1742_v16, %v1741_v56 }
 0x14b   :  { %v1745_v2 = vmul.f32 %v5583_v5, %v5305_v45  ;;  %v5637_v57 = vmul.f32 %v5583_v5, %v5303_v44  ;;  %v5639_v47 = vmul.f32 %v1864_v35, %v1862_v49  ;;  %v2289_v31 = vshll.u32 %v5605_v36, 30 }
 0x14c   :  { %6845 = vst [vmem:[#allocation16_spill] sm:$0xff] %v5629_v19  ;;  %6846 = vst [vmem:[#allocation17_spill] sm:$0xff] %v5631_v11  ;;  %v2756_v30 = vshll.u32 %v6823_v17, %v2744_v22  ;;  %v2757_v54 = vshrl.u32 %v6820_v28, %v5611_v25  ;;  %v2070_v38 = vsel %vm3688_vm13, 0, %v3687_v61  ;;  %v2512_v40 = vsel %vm2506_vm12, %v2509_v7, %v2511_v27 }
 0x14d   :  { %v6790_v10 = vand.u32 2147483647, %v5409_v26  ;;  %v5648_v15 = vshrl.u32 %v2742_v41, 5  ;;  %v2531_v44 = vadd.s32 1, %v5598_v59  ;;  %v2747_v20 = vshll.u32 %v6816_v58, %v2744_v22 }
 0x14e   :  { %v2748_v9 = vshrl.u32 %v6826_v43, %v5611_v25  ;;  %v2990_v18 = vand.u32 2139095040, %v5489_v50  ;;  %v2750_v4 = vshll.u32 %v6826_v43, %v2744_v22  ;;  %v2751_v56 = vshrl.u32 %v6827_v53, %v5611_v25 }
 0x14f   :  { %v2753_v8 = vshll.u32 %v6827_v53, %v2744_v22  ;;  %v2754_v41 = vshrl.u32 %v6823_v17, %v5611_v25  ;;  %v2075_v0 = vsub.s32 4294967266, %v2070_v38  ;;  %v5662_v61 = vsub.s32 %v5552_v13, %v2289_v31 }
 0x150   :  { %vm2530_vm14 = vc.u32 %v5609_v1, %v5597_v34  ;;  %v2758_v12 = vor.u32 %v2757_v54, %v2756_v30  ;;  %v2737_v16 = vand.u32 8388607, %v6790_v10  ;;  %v2759_v49 = vshll.u32 %v6820_v28, %v2744_v22 }
 0x151   :  { %v2760_v35 = vshrl.u32 %v6821_v42, %v5611_v25  ;;  %vm2765_vm15 = vcmp.lt.s32.totalorder %v5648_v15, 4  ;;  %v2055_v3 = vadd.s32 %v5285_v46, %v5293_v55  ;;  %v2071_v52 = vsub.s32 32, %v2070_v38 }
 0x152   :  { %v2528_v13 = vmul.u32 %v5572_v33, %v2512_v40  ;;  %v2991_v7 = vshrl.u32 %v2990_v18, 23  ;;  %v2532_v27 = vsel %vm2530_vm14, %v2531_v44, %v5598_v59  ;;  %v2749_v31 = vor.u32 %v2748_v9, %v2747_v20 }
 0x153   :  { %v2752_v30 = vor.u32 %v2751_v56, %v2750_v4  ;;  %v2755_v54 = vor.u32 %v2754_v41, %v2753_v8  ;;  %v2076_v10 = vadd.s32 127, %v2075_v0  ;;  %vm2762_vm0 = vcmp.lt.s32.totalorder %v5648_v15, 1 }
 0x154   :  { %vm2764_vm1 = vcmp.lt.s32.totalorder %v5648_v15, 3  ;;  %v2771_v22 = vsel %vm2765_vm15, %v2758_v12, 920167782  ;;  %v1748_v46 = vmul.f32 %v5580_v23, %v5305_v45  ;;  %v2292_v55 = vsub.s32 0, %v5662_v61 }
 0x155   :  { %v2738_v33 = vor.u32 8388608, %v2737_v16  ;;  %v2761_v40 = vor.u32 %v2760_v35, %v2759_v49  ;;  %v5683_v18 = vsub.f32 %v1731_v63, %v1733_v32  ;;  %v1750_v59 = vmul.f32 %v5580_v23, %v5311_v62 }
 0x156   :  { %v5687_v44 = vadd.s32 %v2532_v27, %v2528_v13  ;;  %v3717_v20 = vadd.s32 4294967169, %v2991_v7  ;;  %v1866_v9 = vxor.u32 2147483648, %v5639_v47  ;;  %vm2763_vm2 = vcmp.lt.s32.totalorder %v5648_v15, 2 }
 0x157   :  { %6847 = vst [vmem:[#allocation18_spill] sm:$0xff] %v5683_v18  ;;  %v2770_v4 = vsel %vm2762_vm0, %v2749_v31, %v2752_v30  ;;  %v2772_v45 = vsel %vm2764_vm1, %v2755_v54, %v2771_v22  ;;  %v5695_v56 = vadd.f32 %v1736_v39, %v1735_v14  ;;  %v2072_v63 = vshll.u32 %v5505_v51, %v2070_v38 }
 0x158   :  { %v2073_v32 = vshrl.u32 %v2055_v3, %v2071_v52  ;;  %v2077_v8 = vshll.u32 %v2076_v10, 23  ;;  %v5699_v41 = vsub.f32 %v5621_v60, %v1745_v2  ;;  %v3694_v0 = vmin.u32 %v2292_v55, %v5662_v61 }
 0x159   :  { %6848 = vst [vmem:[#allocation19_spill] sm:$0xff] %v5695_v56  ;;  %v2775_v16 = vsel %vm2765_vm15, %v2761_v40, 1326507024  ;;  %v5704_v49 = vshll.u32 %v2738_v33, 8  ;;  %v2534_v35 = vadd.s32 536870912, %v5687_v44  ;;  %v2773_v39 = vsel %vm2763_vm2, %v2770_v4, %v2772_v45 }
 0x15a   :  { %6849 = vst [vmem:[#allocation20_spill] sm:$0xff] %v5699_v41  ;;  %v2774_v51 = vsel %vm2762_vm0, %v2752_v30, %v2755_v54  ;;  %v2997_v14 = vadd.s32 1, %v3717_v20  ;;  %v1751_v60 = vmul.f32 %v5563_v37, %v5317_v6  ;;  %v1753_v2 = vmul.f32 %v5563_v37, %v5311_v62 }
 0x15b   :  { %v1867_v38 = vsel %vm1784_vm6, %v1866_v9, %v5639_v47  ;;  %v2746_v10 = vshrl.u32 %v6816_v58, %v5611_v25  ;;  %v2074_v3 = vor.u32 %v2073_v32, %v2072_v63  ;;  %v2078_v52 = vor.u32 4788187, %v2077_v8 }
 0x15c   :  { %v2767_v13 = vsel %vm2765_vm15, %v2755_v54, 2102212464  ;;  %v2776_v7 = vsel %vm2764_vm1, %v2758_v12, %v2775_v16  ;;  %v2294_v27 = vclz %v3694_v0  ;;  %v5731_v47 = vshrl.u32 %v2534_v35, 30 }
 0x15d   :  { %v2777_v22 = vsel %vm2763_vm2, %v2774_v51, %v2776_v7  ;;  %v5727_v62 = vmul.u32.u64.low %v5704_v49, %v2773_v39  ;;  %v5728_v55 = vmul.u32.u64.high %v5704_v49, %v2773_v39, %v5727_v62  ;;  %vm2998_vm6 = vcmp.gt.s32.totalorder %v2997_v14, 0 }
 0x15e   :  { %v5734_v25 = vmul.u32.u64.low %v5704_v49, %v2777_v22  ;;  %v5735_v33 = vmul.u32.u64.high %v5704_v49, %v2777_v22, %v5734_v25  ;;  %v1754_v54 = vmul.f32 %v5580_v23, %v5317_v6  ;;  %v2766_v12 = vsel %vm2762_vm0, %v2746_v10, %v2749_v31  ;;  %v6853_v6 = vld [vmem:[#allocation6_spill] sm:$0xff] }
 0x15f   :  { %v2768_v40 = vsel %vm2764_vm1, %v2752_v30, %v2767_v13  ;;  %v2999_v20 = vsel %vm2998_vm6, %v2997_v14, 0  ;;  %v1870_v4 = vsel %vm5385_vm8, %v6833_v29, %v1867_v38  ;;  %v2079_v45 = vand.u32 2147483647, %v2078_v52  ;;  %v6854_v14 = vld [vmem:[#allocation7_spill] sm:$0xff] }
 0x160   :  { %v2081_v63 = vcvt.s32.f32 %v2074_v3  ;;  %v3001_v32 = vand.u32 31, %v2999_v20  ;;  %v5747_v8 = vadd.f32 %v1748_v46, %v5637_v57  ;;  %v5749_v0 = vsub.f32 %v1750_v59, %v1751_v60  ;;  %v6856_v59 = vld [vmem:[#allocation3_spill] sm:$0xff] }
 0x161   :  { %v1756_v16 = vmul.f32 %v5580_v23, %v6853_v6  ;;  %v3695_v31 = vadd.s32 4294967294, %v2294_v27  ;;  %v2536_v35 = vshll.u32 %v5731_v47, 30  ;;  %v2769_v30 = vsel %vm2763_vm2, %v2766_v12, %v2768_v40 }
 0x162   :  { %6851 = vst [vmem:[#allocation2_spill] sm:$0xff] %v5747_v8  ;;  %6852 = vst [vmem:[#allocation21_spill] sm:$0xff] %v5749_v0  ;;  %v2788_v39 = vadd.s32 1, %v5728_v55  ;;  %v5757_v51 = vsub.s32 32, %v3001_v32  ;;  %v1757_v38 = vmul.f32 %v5583_v5, %v6854_v14  ;;  %v1759_v57 = vmul.f32 %v5583_v5, %v6853_v6  ;;  %v6865_v0 = vld [vmem:[#allocation15_spill] sm:$0xff]  ;;  %v6868_v8 = vld [vmem:[#allocation12_spill] sm:$0xff] }
 0x163   :  { %3823 = vcosq.f32 %v1870_v4  ;;  %vm2787_vm8 = vc.u32 %v5735_v33, %v5727_v62  ;;  %v5765_v46 = vadd.f32 %v1754_v54, %v1753_v2  ;;  %v1760_v15 = vmul.f32 %v5580_v23, %v6854_v14 }
 0x164   :  { %3825 = vsinq.f32 %v1870_v4  ;;  %vm2001_vm3 = vcmp.lt.s32.totalorder %v6856_v59, 0  ;;  %v2082_v60 = vmul.f32 %v2081_v63, %v2079_v45  ;;  %vm3696_vm4 = vcmp.lt.s32.totalorder %v3695_v31, 0 }
 0x165   :  { %6855 = vst [vmem:[#allocation6_spill] sm:$0xff] %v5765_v46  ;;  %v2785_v10 = vmul.u32 %v5704_v49, %v2769_v30  ;;  %v6792_v3 = vand.u32 2147483647, %v5489_v50  ;;  %v3013_v52 = vshll.u32 %v6823_v17, %v3001_v32  ;;  %v5774_v13 = vsub.s32 %v5687_v44, %v2536_v35 }
 0x166   :  { %v2789_v2 = vsel %vm2787_vm8, %v2788_v39, %v5728_v55  ;;  %v5777_v7 = vshrl.u32 %v2999_v20, 5  ;;  %v3014_v27 = vshrl.u32 %v6820_v28, %v5757_v51  ;;  %v3004_v22 = vshll.u32 %v6816_v58, %v3001_v32  ;;  %v6857_v20 = vld [vmem:[#allocation8_spill] sm:$0xff] }
 0x167   :  { %v3007_v25 = vshll.u32 %v6826_v43, %v3001_v32  ;;  %v3010_v49 = vshll.u32 %v6827_v53, %v3001_v32  ;;  %v3016_v54 = vshll.u32 %v6820_v28, %v3001_v32  ;;  %v3005_v12 = vshrl.u32 %v6826_v43, %v5757_v51 }
 0x168   :  { %v3008_v44 = vshrl.u32 %v6827_v53, %v5757_v51  ;;  %v3011_v55 = vshrl.u32 %v6823_v17, %v5757_v51  ;;  %v3017_v40 = vshrl.u32 %v6821_v42, %v5757_v51  ;;  %v1762_v9 = vmul.f32 %v5580_v23, %v6857_v20 }
 0x169   :  { %v6858_v4 = vand.u32 2147483647, %v6856_v59  ;;  %v5802_v63 = vsel %vm3696_vm4, 0, %v3695_v31  ;;  %v5804_v32 = vadd.s32 %v2789_v2, %v2785_v10  ;;  %v3015_v6 = vor.u32 %v3014_v27, %v3013_v52 }
 0x16a   :  { %v2539_v35 = vsub.s32 0, %v5774_v13  ;;  %v2994_v30 = vand.u32 8388607, %v6792_v3  ;;  %v3018_v39 = vor.u32 %v3017_v40, %v3016_v54  ;;  %vm3022_vm7 = vcmp.lt.s32.totalorder %v5777_v7, 4 }
 0x16b   :  { %vm5797_vm5 = vcmp.le.f32.partialorder %v6858_v4, 0.7853982  ;;  %v5810_v14 = vsub.f32 %v1756_v16, %v1757_v38  ;;  %v6862_v4 = vld [vmem:[#allocation9_spill] sm:$0xff]  ;;  %v5816_v31 = vmul.f32 %v5563_v37, %v6857_v20  ;;  %v2083_v10 = vxor.u32 2147483648, %v2082_v60  ;;  %v6864_v20 = vld [vmem:[#allocation11_spill] sm:$0xff] }
 0x16c   :  { %v1763_v46 = vmul.f32 %v5563_v37, %v6862_v4  ;;  %v2302_v52 = vsub.s32 4294967266, %v5802_v63  ;;  %v5819_v2 = vor.u32 %v3005_v12, %v3004_v22  ;;  %v5821_v27 = vor.u32 %v3008_v44, %v3007_v25 }
 0x16d   :  { %6861 = vst [vmem:[#allocation7_spill] sm:$0xff] %v5810_v14  ;;  %v3012_v3 = vor.u32 %v3011_v55, %v3010_v49  ;;  %v5823_v54 = vpop.eup %3823  ;;  %vm1984_vm9 = vcmp.eq.s32.totalorder %v5574_v48, 2  ;;  %v2791_v16 = vadd.s32 536870912, %v5804_v32  ;;  %vm3019_vm10 = vcmp.lt.s32.totalorder %v5777_v7, 1 }
 0x16e   :  { %vm3021_vm11 = vcmp.lt.s32.totalorder %v5777_v7, 3  ;;  %v3028_v38 = vsel %vm3022_vm7, %v3015_v6, 920167782  ;;  %v5831_v40 = vpop.eup %3825  ;;  %v5833_v22 = vadd.f32 %v1760_v15, %v1759_v57  ;;  %vm1981_vm12 = vcmp.eq.s32.totalorder %v5574_v48, 0 }
 0x16f   :  { %v3702_v25 = vmin.u32 %v2539_v35, %v5774_v13  ;;  %v2995_v49 = vor.u32 8388608, %v2994_v30  ;;  %v3032_v12 = vsel %vm3022_vm7, %v3018_v39, 1326507024  ;;  %v1766_v44 = vmul.f32 %v5580_v23, %v6862_v4  ;;  %v3291_v4 = vld [vmem:[%s6751_s1 + $0x2] sm:$0x1] }
 0x170   :  { %6863 = vst [vmem:[#allocation3_spill] sm:$0xff] %v5833_v22  ;;  %v2084_v55 = vsel %vm2001_vm3, %v2083_v10, %v2082_v60  ;;  %v2085_v14 = vsub.s32 4, %v6864_v20  ;;  %v2282_v57 = vadd.s32 %v6865_v0, %v5480_v24  ;;  %vm1880_vm13 = vcmp.eq.s32.totalorder %v5566_v21, 2 }
 0x171   :  { %v2298_v15 = vsub.s32 32, %v5802_v63  ;;  %vm3020_vm14 = vcmp.lt.s32.totalorder %v5777_v7, 2  ;;  %v3027_v35 = vsel %vm3019_vm10, %v5819_v2, %v5821_v27  ;;  %v3029_v30 = vsel %vm3021_vm11, %v3012_v3, %v3028_v38  ;;  %v6867_v38 = vld [vmem:[#allocation10_spill] sm:$0xff] }
 0x172   :  { %vm1877_vm15 = vcmp.eq.s32.totalorder %v5566_v21, 0  ;;  %vm1980_vm0 = vcmp.lt.s32.totalorder %v5574_v48, 2  ;;  %v2303_v60 = vadd.s32 127, %v2302_v52  ;;  %v5857_v24 = vshrl.u32 %v2791_v16, 30 }
 0x173   :  { %v3031_v0 = vsel %vm3019_vm10, %v5821_v27, %v3012_v3  ;;  %v3033_v39 = vsel %vm3021_vm11, %v3015_v6, %v3032_v12  ;;  %v5867_v10 = vsub.f32 %v1762_v9, %v1763_v46  ;;  %v5871_v22 = vmul.f32 %v5580_v23, %v6867_v38 }
 0x174   :  { %v2541_v52 = vclz %v3702_v25  ;;  %v5873_v16 = vshll.u32 %v2995_v49, 8  ;;  %v1769_v41 = vmul.f32 %v5583_v5, %v6868_v8  ;;  %v1881_v11 = vxor.u32 2147483648, %v5823_v54 }
 0x175   :  { %6866 = vst [vmem:[#allocation8_spill] sm:$0xff] %v5867_v10  ;;  %v2086_v6 = vsel %vm2001_vm3, %v2085_v14, %v6864_v20  ;;  %v3030_v46 = vsel %vm3020_vm14, %v3027_v35, %v3029_v30  ;;  %vm1874_vm1 = vweird.f32 %v6833_v29  ;;  %vm1876_vm2 = vcmp.lt.s32.totalorder %v5566_v21, 2 }
 0x176   :  { %v1878_v9 = vxor.u32 2147483648, %v5831_v40  ;;  %v2087_v25 = vsel %vm5797_vm5, %v6856_v59, %v2084_v55  ;;  %v3034_v49 = vsel %vm3020_vm14, %v3031_v0, %v3033_v39  ;;  %v5891_v12 = vmul.f32 0.5, %v3291_v4  ;;  %v6869_v0 = vld [vmem:[#allocation4_spill] sm:$0xff] }
 0x177   :  { %v2299_v14 = vshll.u32 %v5662_v61, %v5802_v63  ;;  %v2300_v20 = vshrl.u32 %v2282_v57, %v2298_v15  ;;  %v2304_v35 = vshll.u32 %v2303_v60, 23  ;;  %v2793_v30 = vshll.u32 %v5857_v24, 30 }
 0x178   :  { %v3703_v10 = vadd.s32 4294967294, %v2541_v52  ;;  %v3003_v19 = vshrl.u32 %v6816_v58, %v5757_v51  ;;  %v5899_v56 = vmul.u32.u64.low %v5873_v16, %v3030_v46  ;;  %v5900_v18 = vmul.u32.u64.high %v5873_v16, %v3030_v46, %v5899_v56 }
 0x179   :  { %v5905_v55 = vmul.f32 %v5583_v5, %v6867_v38  ;;  %vm2228_vm6 = vcmp.lt.s32.totalorder %v6869_v0, 0  ;;  %v3024_v61 = vsel %vm3022_vm7, %v3012_v3, 2102212464  ;;  %v5916_v51 = vmul.f32 %v5580_v23, %v6868_v8 }
 0x17a   :  { %v5911_v63 = vmul.u32.u64.low %v5873_v16, %v3034_v49  ;;  %v5912_v57 = vmul.u32.u64.high %v5873_v16, %v3034_v49, %v5911_v63  ;;  %v1986_v15 = vsel %vm1984_vm9, %v1881_v11, %v5831_v40  ;;  %v2088_v5 = vsel %vm5797_vm5, 0, %v2086_v6 }
 0x17b   :  { %v3296_v60 = vand.u32 2139095040, %v5891_v12  ;;  %v1983_v3 = vsel %vm1981_vm12, %v5823_v54, %v1878_v9  ;;  %3827 = vcosq.f32 %v2087_v25  ;;  %v2301_v39 = vor.u32 %v2300_v20, %v2299_v14  ;;  %v6875_v14 = vld [vmem:[#allocation14_spill] sm:$0xff] }
 0x17c   :  { %v5928_v4 = vsub.s32 %v5804_v32, %v2793_v30  ;;  %v6870_v8 = vand.u32 2147483647, %v6869_v0  ;;  %v2305_v52 = vor.u32 4788187, %v2304_v35  ;;  %vm3704_vm3 = vcmp.lt.s32.totalorder %v3703_v10, 0  ;;  %v6873_v32 = vld [vmem:[#allocation13_spill] sm:$0xff] }
 0x17d   :  { %v3023_v45 = vsel %vm3019_vm10, %v3003_v19, %v5819_v2  ;;  %v3025_v6 = vsel %vm3021_vm11, %v5821_v27, %v3024_v61  ;;  %v5943_v46 = vadd.f32 %v1766_v44, %v5816_v31  ;;  %v5947_v49 = vmul.f32 %v5580_v23, %v6873_v32 }
 0x17e   :  { %vm5932_vm8 = vcmp.le.f32.partialorder %v6870_v8, 0.7853982  ;;  %v5951_v20 = vmul.f32 %v5563_v37, %v6875_v14  ;;  %v1882_v35 = vsel %vm1880_vm13, %v1881_v11, %v5831_v40  ;;  %v1879_v19 = vsel %vm1877_vm15, %v5823_v54, %v1878_v9 }
 0x17f   :  { %6874 = vst [vmem:[#allocation9_spill] sm:$0xff] %v5947_v49  ;;  %v1987_v31 = vsel %vm1980_vm0, %v1983_v3, %v1986_v15  ;;  %v2312_v2 = vsub.s32 4, %v5605_v36  ;;  %v3297_v27 = vshrl.u32 %v3296_v60, 23  ;;  %v2195_v44 = vadd.s32 3, %v2088_v5 }
 0x180   :  { %v5962_v30 = vsel %vm3704_vm3, 0, %v3703_v10  ;;  %v2796_v61 = vsub.s32 0, %v5928_v4  ;;  %v3026_v63 = vsel %vm3020_vm14, %v3023_v45, %v3025_v6  ;;  %3829 = vsinq.f32 %v2087_v25 }
 0x181   :  { %v2306_v11 = vand.u32 2147483647, %v2305_v52  ;;  %v2308_v40 = vcvt.s32.f32 %v2301_v39  ;;  %v3045_v8 = vadd.s32 1, %v5900_v18  ;;  %v1883_v48 = vsel %vm1876_vm2, %v1879_v19, %v1882_v35 }
 0x182   :  { %v1988_v54 = vsel %vm1874_vm1, nan, %v1987_v31  ;;  %v5972_v9 = vand.u32 3, %v2088_v5  ;;  %vm3044_vm4 = vc.u32 %v5912_v57, %v5899_v56  ;;  %v2313_v7 = vsel %vm2228_vm6, %v2312_v2, %v5605_v36 }
 0x183   :  { %v2549_v10 = vsub.s32 4294967266, %v5962_v30  ;;  %v3042_v25 = vmul.u32 %v5873_v16, %v3026_v63  ;;  %v3725_v15 = vadd.s32 4294967169, %v3297_v27  ;;  %v5982_v21 = vsub.f32 %v5871_v22, %v1769_v41 }
 0x184   :  { %v5986_v60 = vmul.f32 %v5563_v37, %v6873_v32  ;;  %v1990_v5 = vmul.f32 -1.0, %v1988_v54  ;;  %v3710_v3 = vmin.u32 %v2796_v61, %v5928_v4  ;;  %v1884_v39 = vsel %vm1874_vm1, nan, %v1883_v48 }
 0x185   :  { %6876 = vst [vmem:[#allocation11_spill] sm:$0xff] %v5982_v21  ;;  %v5991_v52 = vand.u32 3, %v2195_v44  ;;  %v2309_v36 = vmul.f32 %v2308_v40, %v2306_v11  ;;  %v3046_v45 = vsel %vm3044_vm4, %v3045_v8, %v5900_v18  ;;  %v5994_v16 = vpop.eup %3827  ;;  %vm2094_vm5 = vcmp.eq.s32.totalorder %v5972_v9, 0 }
 0x186   :  { %6877 = vst [vmem:[#allocation15_spill] sm:$0xff] %v5986_v60  ;;  %vm2097_vm7 = vcmp.eq.s32.totalorder %v5972_v9, 2  ;;  %v2315_v37 = vsel %vm5932_vm8, 0, %v2313_v7  ;;  %v2529_v41 = vadd.s32 %v5597_v34, %v5609_v1  ;;  %v2545_v29 = vsub.s32 32, %v5962_v30 }
 0x187   :  { %v2550_v22 = vadd.s32 127, %v2549_v10  ;;  %v3047_v6 = vadd.s32 %v3046_v45, %v3042_v25  ;;  %v3303_v32 = vadd.s32 1, %v3725_v15  ;;  %v1989_v35 = vmul.f32 0.0, %v1884_v39 }
 0x188   :  { %v1991_v19 = vmul.f32 0.0, %v1990_v5  ;;  %v1994_v18 = vmul.f32 0.0, %v1988_v54  ;;  %v2798_v31 = vclz %v3710_v3  ;;  %vm2198_vm9 = vcmp.eq.s32.totalorder %v5991_v52, 0 }
 0x189   :  { %vm2201_vm10 = vcmp.eq.s32.totalorder %v5991_v52, 2  ;;  %v2310_v2 = vxor.u32 2147483648, %v2309_v36  ;;  %v3048_v27 = vadd.s32 536870912, %v3047_v6  ;;  %vm3304_vm11 = vcmp.gt.s32.totalorder %v3303_v32, 0 }
 0x18a   :  { %v2098_v44 = vxor.u32 2147483648, %v5994_v16  ;;  %v2422_v61 = vadd.s32 3, %v2315_v37  ;;  %v2546_v34 = vshll.u32 %v5774_v13, %v5962_v30  ;;  %v3305_v1 = vsel %vm3304_vm11, %v3303_v32, 0  ;;  %v3830_v63 = vpop.eup %3829 }
 0x18b   :  { %vm2093_vm12 = vcmp.lt.s32.totalorder %v5972_v9, 2  ;;  %v2547_v11 = vshrl.u32 %v2529_v41, %v2545_v29  ;;  %v2551_v40 = vshll.u32 %v2550_v22, 23  ;;  %v6009_v8 = vshrl.u32 %v3048_v27, 30 }
 0x18c   :  { %v3307_v48 = vand.u32 31, %v3305_v1  ;;  %v6011_v54 = vsub.f32 %v1989_v35, %v1991_v19  ;;  %v6013_v7 = vsub.f32 %v1989_v35, %v1994_v18  ;;  %v6015_v10 = vadd.f32 %v1994_v18, %v1989_v35 }
 0x18d   :  { %v3711_v25 = vadd.s32 4294967294, %v2798_v31  ;;  %v6017_v15 = vadd.f32 %v1991_v19, %v1989_v35  ;;  %v2311_v13 = vsel %vm2228_vm6, %v2310_v2, %v2309_v36  ;;  %v6021_v30 = vand.u32 3, %v2315_v37 }
 0x18e   :  { %v3050_v5 = vshll.u32 %v6009_v8, 30  ;;  %v2095_v3 = vxor.u32 2147483648, %v3830_v63  ;;  %v2099_v39 = vsel %vm2097_vm7, %v2098_v44, %v3830_v63  ;;  %vm2197_vm13 = vcmp.lt.s32.totalorder %v5991_v52, 2 }
 0x18f   :  { %v6027_v45 = vand.u32 3, %v2422_v61  ;;  %v6029_v41 = vsub.s32 32, %v3307_v48  ;;  %v2203_v29 = vsel %vm2201_vm10, %v2098_v44, %v3830_v63  ;;  %v2548_v22 = vor.u32 %v2547_v11, %v2546_v34 }
 0x190   :  { %v2552_v32 = vor.u32 4788187, %v2551_v40  ;;  %v6803_v36 = vand.u32 2147483647, %v5891_v12  ;;  %vm2091_vm14 = vweird.f32 %v6856_v59  ;;  %v2096_v37 = vsel %vm2094_vm5, %v5994_v16, %v2095_v3 }
 0x191   :  { %v2314_v35 = vsel %vm5932_vm8, %v6869_v0, %v2311_v13  ;;  %vm3712_vm15 = vcmp.lt.s32.totalorder %v3711_v25, 0  ;;  %v6041_v19 = vsub.s32 %v3047_v6, %v3050_v5  ;;  %v3310_v18 = vshll.u32 %v6816_v58, %v3307_v48  ;;  %v6878_v13 = vld [vmem:[#allocation5_spill] sm:$0xff] }
 0x192   :  { %v3313_v31 = vshll.u32 %v6826_v43, %v3307_v48  ;;  %v3316_v2 = vshll.u32 %v6827_v53, %v3307_v48  ;;  %v3319_v27 = vshll.u32 %v6823_v17, %v3307_v48  ;;  %v3311_v44 = vshrl.u32 %v6826_v43, %v6029_v41 }
 0x193   :  { %v3314_v61 = vshrl.u32 %v6827_v53, %v6029_v41  ;;  %v3317_v38 = vshrl.u32 %v6823_v17, %v6029_v41  ;;  %v3320_v6 = vshrl.u32 %v6820_v28, %v6029_v41  ;;  %v2553_v34 = vand.u32 2147483647, %v2552_v32 }
 0x194   :  { %v2555_v63 = vcvt.s32.f32 %v2548_v22  ;;  %v3300_v11 = vand.u32 8388607, %v6803_v36  ;;  %v6057_v40 = vshrl.u32 %v3305_v1, 5  ;;  %v2200_v43 = vsel %vm2198_vm9, %v5994_v16, %v2095_v3 }
 0x195   :  { %3831 = vcosq.f32 %v2314_v35  ;;  %vm2475_vm0 = vcmp.lt.s32.totalorder %v6878_v13, 0  ;;  %v3053_v53 = vsub.s32 0, %v6041_v19  ;;  %v3322_v17 = vshll.u32 %v6820_v28, %v3307_v48 }
 0x196   :  { %3833 = vsinq.f32 %v2314_v35  ;;  %v6066_v5 = vsel %vm3712_vm15, 0, %v3711_v25  ;;  %v3321_v22 = vor.u32 %v3320_v6, %v3319_v27  ;;  %v3323_v1 = vshrl.u32 %v6821_v42, %v6029_v41 }
 0x197   :  { %v2100_v32 = vsel %vm2093_vm12, %v2096_v37, %v2099_v39  ;;  %v6072_v36 = vor.u32 %v3311_v44, %v3310_v18  ;;  %v6074_v16 = vor.u32 %v3314_v61, %v3313_v31  ;;  %v3318_v3 = vor.u32 %v3317_v38, %v3316_v2 }
 0x198   :  { %v2556_v21 = vmul.f32 %v2555_v63, %v2553_v34  ;;  %v3301_v60 = vor.u32 8388608, %v3300_v11  ;;  %v3324_v49 = vor.u32 %v3323_v1, %v3322_v17  ;;  %vm3325_vm1 = vcmp.lt.s32.totalorder %v6057_v40, 1 }
 0x199   :  { %v6879_v28 = vand.u32 2147483647, %v6878_v13  ;;  %v2806_v42 = vsub.s32 4294967266, %v6066_v5  ;;  %v3718_v9 = vmin.u32 %v3053_v53, %v6041_v19  ;;  %vm3327_vm6 = vcmp.lt.s32.totalorder %v6057_v40, 3 }
 0x19a   :  { %vm3328_vm8 = vcmp.lt.s32.totalorder %v6057_v40, 4  ;;  %v2101_v25 = vsel %vm2091_vm14, nan, %v2100_v32  ;;  %v2204_v39 = vsel %vm2197_vm13, %v2200_v43, %v2203_v29  ;;  %v2559_v37 = vsub.s32 4, %v5731_v47 }
 0x19b   :  { %vm6079_vm2 = vcmp.le.f32.partialorder %v6879_v28, 0.7853982  ;;  %v3334_v35 = vsel %vm3328_vm8, %v3321_v22, 920167782  ;;  %vm3326_vm3 = vcmp.lt.s32.totalorder %v6057_v40, 2  ;;  %v3333_v18 = vsel %vm3325_vm1, %v6072_v36, %v6074_v16 }
 0x19c   :  { %v3335_v31 = vsel %vm3327_vm6, %v3318_v3, %v3334_v35  ;;  %v3338_v2 = vsel %vm3328_vm8, %v3324_v49, 1326507024  ;;  %v2557_v52 = vxor.u32 2147483648, %v2556_v21  ;;  %v2786_v29 = vadd.s32 %v5727_v62, %v5735_v33 }
 0x19d   :  { %v2802_v27 = vsub.s32 32, %v6066_v5  ;;  %v3337_v44 = vsel %vm3325_vm1, %v6074_v16, %v3318_v3  ;;  %v2807_v61 = vadd.s32 127, %v2806_v42  ;;  %v3055_v38 = vclz %v3718_v9 }
 0x19e   :  { %v3339_v6 = vsel %vm3327_vm6, %v3321_v22, %v3338_v2  ;;  %v6111_v34 = vshll.u32 %v3301_v60, 8  ;;  %vm2321_vm4 = vcmp.eq.s32.totalorder %v6021_v30, 0  ;;  %vm2324_vm5 = vcmp.eq.s32.totalorder %v6021_v30, 2 }
 0x19f   :  { %vm2425_vm7 = vcmp.eq.s32.totalorder %v6027_v45, 0  ;;  %v3336_v62 = vsel %vm3326_vm3, %v3333_v18, %v3335_v31  ;;  %v3832_v33 = vpop.eup %3831  ;;  %v2205_v49 = vsel %vm2091_vm14, nan, %v2204_v39  ;;  %v6120_v63 = vmul.f32 0.0, %v2101_v25 }
 0x1a0   :  { %vm2424_vm9 = vcmp.lt.s32.totalorder %v6027_v45, 2  ;;  %vm2428_vm10 = vcmp.eq.s32.totalorder %v6027_v45, 2  ;;  %v3340_v60 = vsel %vm3326_vm3, %v3337_v44, %v3339_v6  ;;  %v3834_v11 = vpop.eup %3833  ;;  %vm2320_vm11 = vcmp.lt.s32.totalorder %v6021_v30, 2 }
 0x1a1   :  { %v2558_v43 = vsel %vm2475_vm0, %v2557_v52, %v2556_v21  ;;  %v2560_v59 = vsel %vm2475_vm0, %v2559_v37, %v5731_v47  ;;  %v2803_v53 = vshll.u32 %v5928_v4, %v6066_v5  ;;  %v2804_v17 = vshrl.u32 %v2786_v29, %v2802_v27 }
 0x1a2   :  { %v2808_v22 = vshll.u32 %v2807_v61, 23  ;;  %v3719_v1 = vadd.s32 4294967294, %v3055_v38  ;;  %v6135_v32 = vmul.u32.u64.low %v6111_v34, %v3336_v62  ;;  %v6136_v28 = vmul.u32.u64.high %v6111_v34, %v3336_v62, %v6135_v32 }
 0x1a3   :  { %v2207_v42 = vmul.f32 -1.0, %v2205_v49  ;;  %vm2318_vm12 = vweird.f32 %v6869_v0  ;;  %v3309_v21 = vshrl.u32 %v6816_v58, %v6029_v41  ;;  %v2211_v4 = vmul.f32 %v2101_v25, %v6013_v7 }
 0x1a4   :  { %v6143_v9 = vmul.u32.u64.low %v6111_v34, %v3340_v60  ;;  %v6144_v47 = vmul.u32.u64.high %v6111_v34, %v3340_v60, %v6143_v9  ;;  %v2322_v5 = vxor.u32 2147483648, %v3834_v11  ;;  %v2325_v39 = vxor.u32 2147483648, %v3832_v33 }
 0x1a5   :  { %v3330_v37 = vsel %vm3328_vm8, %v3318_v3, 2102212464  ;;  %v2215_v35 = vmul.f32 %v2101_v25, %v6015_v10  ;;  %v2217_v18 = vmul.f32 0.0, %v2205_v49  ;;  %v2561_v31 = vsel %vm6079_vm2, %v6878_v13, %v2558_v43 }
 0x1a6   :  { %v2562_v58 = vsel %vm6079_vm2, 0, %v2560_v59  ;;  %v2220_v41 = vmul.f32 %v2205_v49, %v6015_v10  ;;  %v2805_v2 = vor.u32 %v2804_v17, %v2803_v53  ;;  %v2809_v52 = vor.u32 4788187, %v2808_v22 }
 0x1a7   :  { %vm3720_vm13 = vcmp.lt.s32.totalorder %v3719_v1, 0  ;;  %v2208_v29 = vmul.f32 0.0, %v2207_v42  ;;  %v2222_v27 = vmul.f32 %v2205_v49, %v6013_v7  ;;  %v3329_v3 = vsel %vm3325_vm1, %v3309_v21, %v6072_v36 }
 0x1a8   :  { %v3331_v25 = vsel %vm3327_vm6, %v6074_v16, %v3330_v37  ;;  %v2427_v48 = vsel %vm2425_vm7, %v3832_v33, %v2322_v5  ;;  %v2430_v44 = vsel %vm2428_vm10, %v2325_v39, %v3834_v11  ;;  %3835 = vcosq.f32 %v2561_v31 }
 0x1a9   :  { %v2669_v61 = vadd.s32 3, %v2562_v58  ;;  %v2323_v38 = vsel %vm2321_vm4, %v3832_v33, %v2322_v5  ;;  %v2326_v6 = vsel %vm2324_vm5, %v2325_v39, %v3834_v11  ;;  %3837 = vsinq.f32 %v2561_v31 }
 0x1aa   :  { %v6171_v36 = vsel %vm3720_vm13, 0, %v3719_v1  ;;  %v2810_v62 = vand.u32 2147483647, %v2809_v52  ;;  %v2812_v49 = vcvt.s32.f32 %v2805_v2  ;;  %v3332_v16 = vsel %vm3326_vm3, %v3329_v3, %v3331_v25 }
 0x1ab   :  { %v3351_v60 = vadd.s32 1, %v6136_v28  ;;  %v2212_v43 = vmul.f32 %v2207_v42, %v6015_v10  ;;  %v2214_v59 = vmul.f32 %v2207_v42, %v6013_v7  ;;  %v2431_v33 = vsel %vm2424_vm9, %v2427_v48, %v2430_v44 }
 0x1ac   :  { %vm2732_vm14 = vcmp.lt.s32.totalorder %v5409_v26, 0  ;;  %vm3350_vm15 = vc.u32 %v6144_v47, %v6135_v32  ;;  %v2218_v11 = vsub.f32 %v6120_v63, %v2217_v18  ;;  %v6185_v53 = vadd.f32 %v2217_v18, %v6120_v63 }
 0x1ad   :  { %v2327_v40 = vsel %vm2320_vm11, %v2323_v38, %v2326_v6  ;;  %v3063_v10 = vsub.s32 4294967266, %v6171_v36  ;;  %v6190_v17 = vsub.f32 %v2211_v4, %v2220_v41  ;;  %v6192_v7 = vadd.f32 %v2222_v27, %v2215_v35 }
 0x1ae   :  { %v6194_v45 = vand.u32 3, %v2562_v58  ;;  %v3348_v22 = vmul.u32 %v6111_v34, %v3332_v16  ;;  %v6199_v1 = vsel %vm2318_vm12, nan, %v2431_v33  ;;  %v6201_v42 = vand.u32 3, %v2669_v61 }
 0x1af   :  { %v6882_v21 = vand.u32 2147483647, %v5409_v26  ;;  %v2813_v9 = vmul.f32 %v2812_v49, %v2810_v62  ;;  %v3352_v5 = vsel %vm3350_vm15, %v3351_v60, %v6136_v28  ;;  %v2209_v39 = vsub.f32 %v6120_v63, %v2208_v29 }
 0x1b0   :  { %v2210_v37 = vadd.f32 %v2208_v29, %v6120_v63  ;;  %v6212_v34 = vsub.f32 %v2211_v4, %v2212_v43  ;;  %v6216_v18 = vsel %vm2318_vm12, nan, %v2327_v40  ;;  %v6218_v31 = vadd.f32 %v2215_v35, %v2214_v59 }
 0x1b1   :  { %vm6205_vm0 = vcmp.le.f32.partialorder %v6882_v21, 0.7853982  ;;  %v3043_v58 = vadd.s32 %v5899_v56, %v5912_v57  ;;  %v3059_v41 = vsub.s32 32, %v6171_v36  ;;  %v3064_v2 = vadd.s32 127, %v3063_v10 }
 0x1b2   :  { %v2433_v28 = vmul.f32 0.0, %v6199_v1  ;;  %vm2568_vm1 = vcmp.eq.s32.totalorder %v6194_v45, 0  ;;  %vm2571_vm2 = vcmp.eq.s32.totalorder %v6194_v45, 2  ;;  %v6226_v63 = vadd.s32 %v3352_v5, %v3348_v22  ;;  %v3836_v4 = vpop.eup %3835 }
 0x1b3   :  { %v2435_v0 = vmul.f32 0.0, %v6216_v18  ;;  %vm2672_vm6 = vcmp.eq.s32.totalorder %v6201_v42, 0  ;;  %vm2675_vm8 = vcmp.eq.s32.totalorder %v6201_v42, 2  ;;  %v2814_v35 = vxor.u32 2147483648, %v2813_v9  ;;  %v3838_v56 = vpop.eup %3837 }
 0x1b4   :  { %v2439_v57 = vmul.f32 %v6216_v18, %v6011_v54  ;;  %v2440_v52 = vmul.f32 %v6199_v1, %v6011_v54  ;;  %v2442_v29 = vmul.f32 %v6216_v18, %v6017_v15  ;;  %v2443_v27 = vmul.f32 %v6199_v1, %v6017_v15 }
 0x1b5   :  { %vm2567_vm3 = vcmp.lt.s32.totalorder %v6194_v45, 2  ;;  %vm2671_vm4 = vcmp.lt.s32.totalorder %v6201_v42, 2  ;;  %v2816_v3 = vsub.s32 4, %v5857_v24  ;;  %v3060_v25 = vshll.u32 %v6041_v19, %v6171_v36 }
 0x1b6   :  { %v3061_v48 = vshrl.u32 %v3043_v58, %v3059_v41  ;;  %v3065_v44 = vshll.u32 %v3064_v2, 23  ;;  %v6245_v61 = vsub.f32 %v6216_v18, %v2433_v28  ;;  %v2447_v54 = vmul.f32 %v6216_v18, %v2209_v39 }
 0x1b7   :  { %v2448_v38 = vmul.f32 %v6199_v1, %v2218_v11  ;;  %v3354_v15 = vadd.s32 536870912, %v6226_v63  ;;  %v6250_v6 = vsub.f32 %v2435_v0, %v2433_v28  ;;  %v6253_v62 = vadd.f32 %v2435_v0, %v6199_v1 }
 0x1b8   :  { %v6255_v49 = vadd.f32 %v2435_v0, %v2433_v28  ;;  %vm2565_vm5 = vweird.f32 %v6878_v13  ;;  %v2815_v19 = vsel %vm2732_vm14, %v2814_v35, %v2813_v9  ;;  %v6260_v36 = vsub.f32 %v2439_v57, %v2440_v52 }
 0x1b9   :  { %v6262_v16 = vsub.f32 %v2442_v29, %v2443_v27  ;;  %v2569_v60 = vxor.u32 2147483648, %v3838_v56  ;;  %v2572_v43 = vxor.u32 2147483648, %v3836_v4  ;;  %v2450_v59 = vmul.f32 %v6216_v18, %v2210_v37 }
 0x1ba   :  { %v2817_v33 = vsel %vm2732_vm14, %v2816_v3, %v5857_v24  ;;  %v3062_v40 = vor.u32 %v3061_v48, %v3060_v25  ;;  %v3066_v10 = vor.u32 4788187, %v3065_v44  ;;  %v2451_v22 = vmul.f32 %v6199_v1, %v6185_v53 }
 0x1bb   :  { %v2453_v21 = vmul.f32 %v6199_v1, %v2209_v39  ;;  %v2818_v9 = vsel %vm6205_vm0, %v5409_v26, %v2815_v19  ;;  %v6274_v5 = vshrl.u32 %v3354_v15, 30  ;;  %v2454_v58 = vmul.f32 %v6216_v18, %v2218_v11 }
 0x1bc   :  { %v2456_v41 = vmul.f32 %v6199_v1, %v2210_v37  ;;  %v2457_v24 = vmul.f32 %v6216_v18, %v6185_v53  ;;  %v2459_v2 = vmul.f32 %v6216_v18, %v6212_v34  ;;  %v2570_v28 = vsel %vm2568_vm1, %v3836_v4, %v2569_v60 }
 0x1bd   :  { %v2573_v39 = vsel %vm2571_vm2, %v2572_v43, %v3838_v56  ;;  %v2677_v0 = vsel %vm2675_vm8, %v2572_v43, %v3838_v56  ;;  %v2819_v11 = vsel %vm6205_vm0, 0, %v2817_v33  ;;  %v2674_v37 = vsel %vm2672_vm6, %v3836_v4, %v2569_v60 }
 0x1be   :  { %3839 = vcosq.f32 %v2818_v9  ;;  %v3067_v53 = vand.u32 2147483647, %v3066_v10  ;;  %v3069_v35 = vcvt.s32.f32 %v3062_v40  ;;  %v2460_v3 = vmul.f32 %v6199_v1, %v6190_v17 }
 0x1bf   :  { %v2462_v25 = vmul.f32 %v6216_v18, %v6218_v31  ;;  %3841 = vsinq.f32 %v2818_v9  ;;  %vm2989_vm7 = vcmp.lt.s32.totalorder %v5489_v50, 0  ;;  %v3356_v56 = vshll.u32 %v6274_v5, 30 }
 0x1c0   :  { %v2463_v30 = vmul.f32 %v6199_v1, %v6192_v7  ;;  %v2465_v4 = vmul.f32 %v6199_v1, %v6212_v34  ;;  %v2466_v48 = vmul.f32 %v6216_v18, %v6190_v17  ;;  %v2574_v44 = vsel %vm2567_vm3, %v2570_v28, %v2573_v39 }
 0x1c1   :  { %v2468_v15 = vmul.f32 %v6199_v1, %v6218_v31  ;;  %v2469_v19 = vmul.f32 %v6216_v18, %v6192_v7  ;;  %v2678_v60 = vsel %vm2671_vm4, %v2674_v37, %v2677_v0  ;;  %v2926_v43 = vadd.s32 3, %v2819_v11 }
 0x1c2   :  { %v6312_v33 = vadd.f32 %v2440_v52, %v2439_v57  ;;  %v6314_v40 = vadd.f32 %v2443_v27, %v2442_v29  ;;  %v6316_v34 = vand.u32 3, %v2819_v11  ;;  %v6885_v17 = vand.u32 2147483647, %v5489_v50 }
 0x1c3   :  { %v3070_v1 = vmul.f32 %v3069_v35, %v3067_v53  ;;  %v2449_v31 = vsub.f32 %v2447_v54, %v2448_v38  ;;  %v2452_v10 = vsub.f32 %v2450_v59, %v2451_v22  ;;  %v6326_v7 = vsel %vm2565_vm5, nan, %v2574_v44 }
 0x1c4   :  { %vm6320_vm9 = vcmp.le.f32.partialorder %v6885_v17, 0.7853982  ;;  %v6329_v42 = vsub.s32 %v6226_v63, %v3356_v56  ;;  %v2455_v18 = vadd.f32 %v2454_v58, %v2453_v21  ;;  %v2458_v57 = vadd.f32 %v2457_v24, %v2456_v41 }
 0x1c5   :  { %v2461_v52 = vsub.f32 %v2459_v2, %v2460_v3  ;;  %v6333_v29 = vsel %vm2565_vm5, nan, %v2678_v60  ;;  %v2464_v27 = vsub.f32 %v2462_v25, %v2463_v30  ;;  %v6335_v9 = vadd.f32 %v2466_v48, %v2465_v4 }
 0x1c6   :  { %v6337_v28 = vadd.f32 %v2469_v19, %v2468_v15  ;;  %v6339_v54 = vand.u32 3, %v2926_v43  ;;  %v2680_v38 = vmul.f32 %v6326_v7, %v6245_v61  ;;  %vm2825_vm10 = vcmp.eq.s32.totalorder %v6316_v34, 0 }
 0x1c7   :  { %vm2828_vm11 = vcmp.eq.s32.totalorder %v6316_v34, 2  ;;  %v3071_v63 = vxor.u32 2147483648, %v3070_v1  ;;  %v2681_v59 = vmul.f32 %v6333_v29, %v2449_v31  ;;  %v2683_v13 = vmul.f32 %v6326_v7, %v6250_v6 }
 0x1c8   :  { %v2684_v22 = vmul.f32 %v6333_v29, %v2452_v10  ;;  %v3359_v21 = vsub.s32 0, %v6329_v42  ;;  %v3840_v58 = vpop.eup %3839  ;;  %v2686_v41 = vmul.f32 %v6333_v29, %v6245_v61  ;;  %v2687_v24 = vmul.f32 %v6326_v7, %v2449_v31 }
 0x1c9   :  { %v2689_v2 = vmul.f32 %v6333_v29, %v6250_v6  ;;  %v2690_v39 = vmul.f32 %v6326_v7, %v2452_v10  ;;  %vm2824_vm12 = vcmp.lt.s32.totalorder %v6316_v34, 2  ;;  %v3842_v0 = vpop.eup %3841  ;;  %v2692_v11 = vmul.f32 %v6326_v7, %v6260_v36 }
 0x1ca   :  { %v2693_v37 = vmul.f32 %v6333_v29, %v2461_v52  ;;  %vm2928_vm13 = vcmp.lt.s32.totalorder %v6339_v54, 2  ;;  %vm2929_vm14 = vcmp.eq.s32.totalorder %v6339_v54, 0  ;;  %v2695_v61 = vmul.f32 %v6326_v7, %v6262_v16 }
 0x1cb   :  { %v2696_v53 = vmul.f32 %v6333_v29, %v2464_v27  ;;  %v3072_v6 = vsel %vm2989_vm7, %v3071_v63, %v3070_v1  ;;  %v3073_v35 = vsub.s32 4, %v6009_v8  ;;  %v6368_v3 = vsub.f32 %v2680_v38, %v2681_v59 }
 0x1cc   :  { %v6370_v25 = vsub.f32 %v2683_v13, %v2684_v22  ;;  %vm2822_vm15 = vweird.f32 %v5409_v26  ;;  %vm2932_vm0 = vcmp.eq.s32.totalorder %v6339_v54, 2  ;;  %v3726_v56 = vmin.u32 %v3359_v21, %v6329_v42 }
 0x1cd   :  { %v6375_v30 = vadd.f32 %v2687_v24, %v2686_v41  ;;  %v6377_v4 = vadd.f32 %v2690_v39, %v2689_v2  ;;  %v2826_v48 = vxor.u32 2147483648, %v3842_v0  ;;  %v2829_v44 = vxor.u32 2147483648, %v3840_v58 }
 0x1ce   :  { %v2694_v15 = vsub.f32 %v2692_v11, %v2693_v37  ;;  %v2698_v19 = vmul.f32 %v6333_v29, %v6260_v36  ;;  %v2699_v60 = vmul.f32 %v6326_v7, %v2461_v52  ;;  %v3075_v43 = vsel %vm6320_vm9, %v5489_v50, %v3072_v6 }
 0x1cf   :  { %v2697_v17 = vsub.f32 %v2695_v61, %v2696_v53  ;;  %v2701_v1 = vmul.f32 %v6333_v29, %v6262_v16  ;;  %v2702_v31 = vmul.f32 %v6326_v7, %v2464_v27  ;;  %v3074_v10 = vsel %vm2989_vm7, %v3073_v35, %v6009_v8 }
 0x1d0   :  { %v2704_v38 = vmul.f32 %v6326_v7, %v6253_v62  ;;  %v2705_v36 = vmul.f32 %v6333_v29, %v2455_v18  ;;  %v2707_v52 = vmul.f32 %v6326_v7, %v6255_v49  ;;  %v3361_v63 = vclz %v3726_v56 }
 0x1d1   :  { %v2708_v59 = vmul.f32 %v6333_v29, %v2458_v57  ;;  %v2827_v16 = vsel %vm2825_vm10, %v3840_v58, %v2826_v48  ;;  %v2830_v27 = vsel %vm2828_vm11, %v2829_v44, %v3842_v0  ;;  %3843 = vcosq.f32 %v3075_v43 }
 0x1d2   :  { %v2931_v8 = vsel %vm2929_vm14, %v3840_v58, %v2826_v48  ;;  %v2934_v13 = vsel %vm2932_vm0, %v2829_v44, %v3842_v0  ;;  %v3076_v22 = vsel %vm6320_vm9, 0, %v3074_v10  ;;  %3845 = vsinq.f32 %v3075_v43 }
 0x1d3   :  { %v2710_v21 = vmul.f32 %v6333_v29, %v6253_v62  ;;  %v2711_v41 = vmul.f32 %v6326_v7, %v2455_v18  ;;  %v2713_v24 = vmul.f32 %v6333_v29, %v6255_v49  ;;  %v2714_v2 = vmul.f32 %v6326_v7, %v2458_v57 }
 0x1d4   :  { %v2716_v58 = vmul.f32 %v6326_v7, %v6312_v33  ;;  %v2717_v39 = vmul.f32 %v6333_v29, %v6335_v9  ;;  %v2831_v45 = vsel %vm2824_vm12, %v2827_v16, %v2830_v27  ;;  %v3727_v0 = vadd.s32 4294967294, %v3361_v63 }
 0x1d5   :  { %v2719_v62 = vmul.f32 %v6326_v7, %v6314_v40  ;;  %v2720_v18 = vmul.f32 %v6333_v29, %v6337_v28  ;;  %v2935_v49 = vsel %vm2928_vm13, %v2931_v8, %v2934_v13  ;;  %v3183_v57 = vadd.s32 3, %v3076_v22 }
 0x1d6   :  { %v2722_v11 = vmul.f32 %v6333_v29, %v6312_v33  ;;  %v2723_v37 = vmul.f32 %v6326_v7, %v6335_v9  ;;  %v2725_v34 = vmul.f32 %v6333_v29, %v6314_v40  ;;  %v2726_v61 = vmul.f32 %v6326_v7, %v6337_v28 }
 0x1d7   :  { %v2700_v53 = vadd.f32 %v2699_v60, %v2698_v19  ;;  %v2703_v6 = vadd.f32 %v2702_v31, %v2701_v1  ;;  %v6435_v35 = vsel %vm2822_vm15, nan, %v2831_v45  ;;  %v6437_v54 = vand.u32 3, %v3076_v22 }
 0x1d8   :  { %v2706_v56 = vsub.f32 %v2704_v38, %v2705_v36  ;;  %v6439_v48 = vsub.f32 %v2707_v52, %v2708_v59  ;;  %v6443_v33 = vsel %vm2822_vm15, nan, %v2935_v49  ;;  %vm3728_vm1 = vcmp.lt.s32.totalorder %v3727_v0, 0 }
 0x1d9   :  { %v6445_v40 = vadd.f32 %v2711_v41, %v2710_v21  ;;  %v6447_v29 = vadd.f32 %v2714_v2, %v2713_v24  ;;  %v2718_v7 = vsub.f32 %v2716_v58, %v2717_v39  ;;  %v3184_v9 = vand.u32 3, %v3183_v57 }
 0x1da   :  { %v2721_v28 = vsub.f32 %v2719_v62, %v2720_v18  ;;  %v6449_v44 = vadd.f32 %v2723_v37, %v2722_v11  ;;  %v6451_v19 = vadd.f32 %v2726_v61, %v2725_v34  ;;  %v2937_v60 = vmul.f32 %v6435_v35, %v6368_v3 }
 0x1db   :  { %v3844_v43 = vpop.eup %3843  ;;  %v2938_v26 = vmul.f32 %v6443_v33, %v2694_v15  ;;  %v2940_v1 = vmul.f32 %v6435_v35, %v6370_v25  ;;  %v2941_v31 = vmul.f32 %v6443_v33, %v2697_v17  ;;  %vm3082_vm2 = vcmp.eq.s32.totalorder %v6437_v54, 0 }
 0x1dc   :  { %v3364_v10 = vsel %vm3728_vm1, 0, %v3727_v0  ;;  %v3846_v38 = vpop.eup %3845  ;;  %v2943_v36 = vmul.f32 %v6443_v33, %v6368_v3  ;;  %v2944_v52 = vmul.f32 %v6435_v35, %v2694_v15  ;;  %vm3295_vm6 = vcmp.lt.s32.totalorder %v5891_v12, 0 }
 0x1dd   :  { %v3349_v63 = vadd.s32 %v6135_v32, %v6144_v47  ;;  %v3365_v59 = vsub.s32 32, %v3364_v10  ;;  %v2946_v16 = vmul.f32 %v6443_v33, %v6370_v25  ;;  %v2947_v27 = vmul.f32 %v6435_v35, %v2697_v17 }
 0x1de   :  { %vm3085_vm8 = vcmp.eq.s32.totalorder %v6437_v54, 2  ;;  %vm3185_vm3 = vcmp.lt.s32.totalorder %v3184_v9, 2  ;;  %v2949_v8 = vmul.f32 %v6435_v35, %v6375_v30  ;;  %v2950_v3 = vmul.f32 %v6443_v33, %v2700_v53 }
 0x1df   :  { %vm3079_vm4 = vweird.f32 %v5489_v50  ;;  %vm3081_vm5 = vcmp.lt.s32.totalorder %v6437_v54, 2  ;;  %vm3186_vm7 = vcmp.eq.s32.totalorder %v3184_v9, 0  ;;  %vm3189_vm9 = vcmp.eq.s32.totalorder %v3184_v9, 2 }
 0x1e0   :  { %v6475_v32 = vsub.f32 %v2937_v60, %v2938_v26  ;;  %v6477_v47 = vsub.f32 %v2940_v1, %v2941_v31  ;;  %v3083_v25 = vxor.u32 2147483648, %v3846_v38  ;;  %v3086_v15 = vxor.u32 2147483648, %v3844_v43 }
 0x1e1   :  { %v6888_v17 = vand.u32 2147483647, %v5891_v12  ;;  %v6485_v22 = vadd.f32 %v2944_v52, %v2943_v36  ;;  %v3366_v21 = vshll.u32 %v6329_v42, %v3364_v10  ;;  %v3367_v41 = vshrl.u32 %v3349_v63, %v3365_v59 }
 0x1e2   :  { %v3369_v24 = vsub.s32 4294967266, %v3364_v10  ;;  %v6488_v2 = vadd.f32 %v2947_v27, %v2946_v16  ;;  %v2952_v58 = vmul.f32 %v6435_v35, %v6377_v4  ;;  %v2953_v39 = vmul.f32 %v6443_v33, %v2703_v6 }
 0x1e3   :  { %vm6481_vm10 = vcmp.le.f32.partialorder %v6888_v17, 0.7853982  ;;  %v3379_v45 = vsub.s32 4, %v6274_v5  ;;  %v6494_v0 = vsub.f32 %v2949_v8, %v2950_v3  ;;  %v2955_v62 = vmul.f32 %v6443_v33, %v6375_v30 }
 0x1e4   :  { %v2956_v18 = vmul.f32 %v6435_v35, %v2700_v53  ;;  %v2958_v42 = vmul.f32 %v6443_v33, %v6377_v4  ;;  %v2959_v49 = vmul.f32 %v6435_v35, %v2703_v6  ;;  %v2961_v57 = vmul.f32 %v6435_v35, %v2706_v56 }
 0x1e5   :  { %v3188_v11 = vsel %vm3186_vm7, %v3844_v43, %v3083_v25  ;;  %v3191_v37 = vsel %vm3189_vm9, %v3086_v15, %v3846_v38  ;;  %v2962_v34 = vmul.f32 %v6443_v33, %v2718_v7  ;;  %v2964_v61 = vmul.f32 %v6435_v35, %v6439_v48 }
 0x1e6   :  { %v3368_v60 = vor.u32 %v3367_v41, %v3366_v21  ;;  %v3370_v30 = vadd.s32 127, %v3369_v24  ;;  %v2965_v53 = vmul.f32 %v6443_v33, %v2721_v28  ;;  %v2967_v26 = vmul.f32 %v6443_v33, %v2706_v56 }
 0x1e7   :  { %v2968_v4 = vmul.f32 %v6435_v35, %v2718_v7  ;;  %v3380_v6 = vsel %vm3295_vm6, %v3379_v45, %v6274_v5  ;;  %v3084_v1 = vsel %vm3082_vm2, %v3844_v43, %v3083_v25  ;;  %v3087_v31 = vsel %vm3085_vm8, %v3086_v15, %v3846_v38 }
 0x1e8   :  { %v3192_v10 = vsel %vm3185_vm3, %v3188_v11, %v3191_v37  ;;  %v3371_v36 = vshll.u32 %v3370_v30, 23  ;;  %v2970_v52 = vmul.f32 %v6443_v33, %v6439_v48  ;;  %v2971_v56 = vmul.f32 %v6435_v35, %v2721_v28 }
 0x1e9   :  { %v2973_v7 = vmul.f32 %v6435_v35, %v6445_v40  ;;  %v2974_v5 = vmul.f32 %v6443_v33, %v6449_v44  ;;  %v2976_v43 = vmul.f32 %v6435_v35, %v6447_v29  ;;  %v3375_v59 = vcvt.s32.f32 %v3368_v60 }
 0x1ea   :  { %v3372_v63 = vor.u32 4788187, %v3371_v36  ;;  %v3382_v9 = vsel %vm6481_vm10, 0, %v3380_v6  ;;  %v2977_v38 = vmul.f32 %v6443_v33, %v6451_v19  ;;  %v2979_v48 = vmul.f32 %v6443_v33, %v6445_v40 }
 0x1eb   :  { %v3088_v28 = vsel %vm3081_vm5, %v3084_v1, %v3087_v31  ;;  %v6538_v16 = vsel %vm3079_vm4, nan, %v3192_v10  ;;  %v2980_v27 = vmul.f32 %v6435_v35, %v6449_v44  ;;  %v2982_v8 = vmul.f32 %v6443_v33, %v6447_v29 }
 0x1ec   :  { %v2983_v3 = vmul.f32 %v6435_v35, %v6451_v19  ;;  %v3373_v25 = vand.u32 2147483647, %v3372_v63  ;;  %v2954_v15 = vsub.f32 %v2952_v58, %v2953_v39  ;;  %v2957_v17 = vadd.f32 %v2956_v18, %v2955_v62 }
 0x1ed   :  { %v2960_v40 = vadd.f32 %v2959_v49, %v2958_v42  ;;  %v3489_v21 = vadd.s32 3, %v3382_v9  ;;  %v2963_v54 = vsub.f32 %v2961_v57, %v2962_v34  ;;  %v6548_v41 = vsel %vm3079_vm4, nan, %v3088_v28 }
 0x1ee   :  { %v6551_v24 = vmul.f32 -1.0, %v6538_v16  ;;  %v3376_v44 = vmul.f32 %v3375_v59, %v3373_v25  ;;  %v2966_v45 = vsub.f32 %v2964_v61, %v2965_v53  ;;  %v2969_v11 = vadd.f32 %v2968_v4, %v2967_v26 }
 0x1ef   :  { %v2972_v33 = vadd.f32 %v2971_v56, %v2970_v52  ;;  %v2975_v29 = vsub.f32 %v2973_v7, %v2974_v5  ;;  %v2978_v37 = vsub.f32 %v2976_v43, %v2977_v38  ;;  %v2981_v35 = vadd.f32 %v2980_v27, %v2979_v48 }
 0x1f0   :  { %v2984_v19 = vadd.f32 %v2983_v3, %v2982_v8  ;;  %v3377_v58 = vxor.u32 2147483648, %v3376_v44  ;;  %v3194_v39 = vmul.f32 %v6548_v41, %v6475_v32  ;;  %v3199_v50 = vmul.f32 %v6548_v41, %v6477_v47 }
 0x1f1   :  { %v6557_v62 = vand.u32 3, %v3382_v9  ;;  %v6559_v18 = vand.u32 3, %v3489_v21  ;;  %v3196_v42 = vmul.f32 %v6551_v24, %v6477_v47  ;;  %v3198_v49 = vmul.f32 %v6551_v24, %v6475_v32 }
 0x1f2   :  { %v3201_v57 = vmul.f32 %v6548_v41, %v6485_v22  ;;  %v3378_v34 = vsel %vm3295_vm6, %v3377_v58, %v3376_v44  ;;  %v3205_v61 = vmul.f32 %v6548_v41, %v6488_v2  ;;  %v3207_v60 = vmul.f32 %v6548_v41, %v6494_v0 }
 0x1f3   :  { %v3211_v30 = vmul.f32 %v6548_v41, %v2954_v15  ;;  %v3381_v47 = vsel %vm6481_vm10, %v5891_v12, %v3378_v34  ;;  %v3202_v32 = vmul.f32 %v6551_v24, %v6488_v2  ;;  %v3204_v53 = vmul.f32 %v6551_v24, %v6485_v22 }
 0x1f4   :  { %v3213_v26 = vmul.f32 %v6548_v41, %v2957_v17  ;;  %3847 = vcosq.f32 %v3381_v47  ;;  %v3208_v4 = vmul.f32 %v6551_v24, %v2954_v15  ;;  %v3210_v6 = vmul.f32 %v6551_v24, %v6494_v0 }
 0x1f5   :  { %v3214_v1 = vmul.f32 %v6551_v24, %v2960_v40  ;;  %3849 = vsinq.f32 %v3381_v47  ;;  %v3197_v31 = vsub.f32 %v3194_v39, %v3196_v42  ;;  %v3200_v13 = vadd.f32 %v3199_v50, %v3198_v49 }
 0x1f6   :  { %v3216_v10 = vmul.f32 %v6551_v24, %v2957_v17  ;;  %v3217_v2 = vmul.f32 %v6548_v41, %v2960_v40  ;;  %vm3391_vm11 = vcmp.eq.s32.totalorder %v6557_v62, 2  ;;  %vm3495_vm12 = vcmp.eq.s32.totalorder %v6559_v18, 2 }
 0x1f7   :  { %v3219_v22 = vmul.f32 %v6548_v41, %v2963_v54  ;;  %v3220_v36 = vmul.f32 %v6538_v16, %v2966_v45  ;;  %v3222_v52 = vmul.f32 %v6538_v16, %v2963_v54  ;;  %v3223_v0 = vmul.f32 %v6548_v41, %v2966_v45 }
 0x1f8   :  { %vm3388_vm13 = vcmp.eq.s32.totalorder %v6557_v62, 0  ;;  %vm3492_vm14 = vcmp.eq.s32.totalorder %v6559_v18, 0  ;;  %v3225_v56 = vmul.f32 %v6548_v41, %v2969_v11  ;;  %v3226_v7 = vmul.f32 %v6538_v16, %v2972_v33 }
 0x1f9   :  { %v3228_v5 = vmul.f32 %v6538_v16, %v2969_v11  ;;  %v3229_v43 = vmul.f32 %v6548_v41, %v2972_v33  ;;  %vm3387_vm15 = vcmp.lt.s32.totalorder %v6557_v62, 2  ;;  %vm3491_vm0 = vcmp.lt.s32.totalorder %v6559_v18, 2 }
 0x1fa   :  { %v3231_v63 = vmul.f32 %v6548_v41, %v2975_v29  ;;  %v3232_v59 = vmul.f32 %v6538_v16, %v2978_v37  ;;  %v3234_v9 = vmul.f32 %v6538_v16, %v2975_v29  ;;  %v3235_v38 = vmul.f32 %v6548_v41, %v2978_v37 }
 0x1fb   :  { %vm3385_vm1 = vweird.f32 %v5891_v12  ;;  %v3203_v48 = vsub.f32 %v3201_v57, %v3202_v32  ;;  %v3206_v28 = vadd.f32 %v3205_v61, %v3204_v53  ;;  %v3237_v27 = vmul.f32 %v6548_v41, %v2981_v35 }
 0x1fc   :  { %v3238_v8 = vmul.f32 %v6538_v16, %v2984_v19  ;;  %v3209_v3 = vsub.f32 %v3207_v60, %v3208_v4  ;;  %v3212_v25 = vadd.f32 %v3211_v30, %v3210_v6  ;;  %v3240_v15 = vmul.f32 %v6538_v16, %v2981_v35 }
 0x1fd   :  { %v3241_v17 = vmul.f32 %v6548_v41, %v2984_v19  ;;  %v3215_v40 = vsub.f32 %v3213_v26, %v3214_v1  ;;  %v3218_v21 = vadd.f32 %v3217_v2, %v3216_v10  ;;  %v3221_v54 = vsub.f32 %v3219_v22, %v3220_v36 }
 0x1fe   :  { %v3224_v44 = vadd.f32 %v3223_v0, %v3222_v52  ;;  %v3227_v45 = vsub.f32 %v3225_v56, %v3226_v7  ;;  %v3230_v11 = vadd.f32 %v3229_v43, %v3228_v5  ;;  %v6611_v33 = vsub.f32 %v3231_v63, %v3232_v59  ;;  %v3848_v37 = vpop.eup %3847 }
 0x1ff   :  { %v6613_v29 = vadd.f32 %v3235_v38, %v3234_v9  ;;  %v6615_v58 = vsub.f32 %v3237_v27, %v3238_v8  ;;  %v3243_v39 = vmul.f32 %v3197_v31, %v6548_v41  ;;  %v3244_v50 = vmul.f32 %v3200_v13, %v6551_v24  ;;  %v3850_v19 = vpop.eup %3849 }
 0x200   :  { %v3246_v35 = vmul.f32 %v3197_v31, %v6551_v24  ;;  %v6620_v42 = vadd.f32 %v3241_v17, %v3240_v15  ;;  %v3247_v49 = vmul.f32 %v3200_v13, %v6548_v41  ;;  %v3249_v57 = vmul.f32 %v3203_v48, %v6548_v41 }
 0x201   :  { %v3392_v34 = vxor.u32 2147483648, %v3848_v37  ;;  %v3250_v61 = vmul.f32 %v3206_v28, %v6551_v24  ;;  %v3252_v60 = vmul.f32 %v3203_v48, %v6551_v24  ;;  %v3253_v30 = vmul.f32 %v3206_v28, %v6548_v41 }
 0x202   :  { %v3389_v47 = vxor.u32 2147483648, %v3850_v19  ;;  %v3255_v32 = vmul.f32 %v3209_v3, %v6548_v41  ;;  %v3256_v53 = vmul.f32 %v3212_v25, %v6538_v16  ;;  %v3258_v6 = vmul.f32 %v3209_v3, %v6538_v16 }
 0x203   :  { %v3393_v26 = vsel %vm3391_vm11, %v3392_v34, %v3850_v19  ;;  %v3497_v4 = vsel %vm3495_vm12, %v3392_v34, %v3850_v19  ;;  %v3259_v1 = vmul.f32 %v3212_v25, %v6548_v41  ;;  %v3261_v10 = vmul.f32 %v3215_v40, %v6548_v41 }
 0x204   :  { %v3390_v31 = vsel %vm3388_vm13, %v3848_v37, %v3389_v47  ;;  %v3494_v13 = vsel %vm3492_vm14, %v3848_v37, %v3389_v47  ;;  %v3262_v2 = vmul.f32 %v3218_v21, %v6538_v16  ;;  %v3245_v52 = vsub.f32 %v3243_v39, %v3244_v50 }
 0x205   :  { %v3394_v22 = vsel %vm3387_vm15, %v3390_v31, %v3393_v26  ;;  %v3498_v36 = vsel %vm3491_vm0, %v3494_v13, %v3497_v4  ;;  %v3248_v0 = vadd.f32 %v3247_v49, %v3246_v35  ;;  %v3251_v56 = vsub.f32 %v3249_v57, %v3250_v61 }
 0x206   :  { %v6647_v7 = vsel %vm3385_vm1, nan, %v3498_v36  ;;  %v3264_v5 = vmul.f32 %v3215_v40, %v6538_v16  ;;  %v3265_v43 = vmul.f32 %v3218_v21, %v6548_v41  ;;  %v6653_v63 = vsel %vm3385_vm1, nan, %v3394_v22 }
 0x207   :  { %v6656_v62 = vmul.f32 -1.0, %v6647_v7  ;;  %v3254_v18 = vadd.f32 %v3253_v30, %v3252_v60  ;;  %v3257_v59 = vsub.f32 %v3255_v32, %v3256_v53  ;;  %v3267_v9 = vmul.f32 %v3221_v54, %v6548_v41 }
 0x208   :  { %v3268_v38 = vmul.f32 %v3224_v44, %v6551_v24  ;;  %v3260_v48 = vadd.f32 %v3259_v1, %v3258_v6  ;;  %v3263_v28 = vsub.f32 %v3261_v10, %v3262_v2  ;;  %v3270_v27 = vmul.f32 %v3221_v54, %v6551_v24 }
 0x209   :  { %v3271_v8 = vmul.f32 %v3224_v44, %v6548_v41  ;;  %v3273_v3 = vmul.f32 %v3227_v45, %v6548_v41  ;;  %v3274_v12 = vmul.f32 %v3230_v11, %v6551_v24  ;;  %v3500_v25 = vmul.f32 %v6653_v63, %v3245_v52 }
 0x20a   :  { %v3502_v15 = vmul.f32 %v6656_v62, %v3248_v0  ;;  %v3266_v17 = vadd.f32 %v3265_v43, %v3264_v5  ;;  %v3276_v40 = vmul.f32 %v3227_v45, %v6551_v24  ;;  %v3504_v21 = vmul.f32 %v6656_v62, %v3245_v52 }
 0x20b   :  { %v3505_v37 = vmul.f32 %v6653_v63, %v3248_v0  ;;  %v3269_v39 = vsub.f32 %v3267_v9, %v3268_v38  ;;  %v3277_v54 = vmul.f32 %v3230_v11, %v6548_v41  ;;  %v3507_v44 = vmul.f32 %v6653_v63, %v3251_v56 }
 0x20c   :  { %v3508_v50 = vmul.f32 %v6647_v7, %v3254_v18  ;;  %v3272_v35 = vadd.f32 %v3271_v8, %v3270_v27  ;;  %v3279_v19 = vmul.f32 %v6611_v33, %v6548_v41  ;;  %v3510_v49 = vmul.f32 %v6647_v7, %v3251_v56 }
 0x20d   :  { %v3511_v57 = vmul.f32 %v6653_v63, %v3254_v18  ;;  %v3275_v24 = vsub.f32 %v3273_v3, %v3274_v12  ;;  %v3503_v45 = vsub.f32 %v3500_v25, %v3502_v15  ;;  %v3513_v34 = vmul.f32 %v6653_v63, %v3257_v59 }
 0x20e   :  { %v3514_v61 = vmul.f32 %v6656_v62, %v3260_v48  ;;  %v3280_v11 = vmul.f32 %v6613_v29, %v6538_v16  ;;  %v3506_v60 = vadd.f32 %v3505_v37, %v3504_v21  ;;  %v3516_v30 = vmul.f32 %v6656_v62, %v3257_v59  ;;  %v6894_v59 = vld [vmem:[#allocation17_spill] sm:$0xff]  ;;  %v6895_v21 = vld [vmem:[#allocation20_spill] sm:$0xff]  ;;  %v6896_v37 = vld [vmem:[#allocation2_spill] sm:$0xff] }
 0x20f   :  { %v3517_v47 = vmul.f32 %v6653_v63, %v3260_v48  ;;  %v3278_v32 = vadd.f32 %v3277_v54, %v3276_v40  ;;  %v3282_v53 = vmul.f32 %v6611_v33, %v6538_v16  ;;  %v3283_v26 = vmul.f32 %v6613_v29, %v6548_v41  ;;  %v6891_v33 = vld [vmem:[#allocation18_spill] sm:$0xff]  ;;  %v6892_v29 = vld [vmem:[#allocation19_spill] sm:$0xff] }
 0x210   :  { %v3509_v4 = vsub.f32 %v3507_v44, %v3508_v50  ;;  %v3285_v6 = vmul.f32 %v6615_v58, %v6548_v41  ;;  %v3286_v1 = vmul.f32 %v6620_v42, %v6538_v16  ;;  %v3288_v31 = vmul.f32 %v6615_v58, %v6538_v16  ;;  %v6893_v16 = vld [vmem:[#allocation16_spill] sm:$0xff] }
 0x211   :  { %v3512_v13 = vadd.f32 %v3511_v57, %v3510_v49  ;;  %v3515_v10 = vsub.f32 %v3513_v34, %v3514_v61  ;;  %v3519_v2 = vmul.f32 %v6653_v63, %v3263_v28  ;;  %v3520_v22 = vmul.f32 %v6647_v7, %v3266_v17 }
 0x212   :  { %v3549_v36 = vmul.f32 %v3503_v45, %v6891_v33  ;;  %v3518_v52 = vadd.f32 %v3517_v47, %v3516_v30  ;;  %v3551_v0 = vmul.f32 %v3506_v60, %v6892_v29  ;;  %v3553_v56 = vmul.f32 %v3503_v45, %v6892_v29 }
 0x213   :  { %v3555_v5 = vmul.f32 %v3506_v60, %v6891_v33  ;;  %v3522_v43 = vmul.f32 %v6647_v7, %v3263_v28  ;;  %v3523_v18 = vmul.f32 %v6653_v63, %v3266_v17  ;;  %v3557_v58 = vmul.f32 %v3509_v4, %v6893_v16 }
 0x214   :  { %v3561_v9 = vmul.f32 %v3509_v4, %v6894_v59  ;;  %v3552_v38 = vadd.f32 %v3551_v0, %v3549_v36  ;;  %v3559_v27 = vmul.f32 %v3512_v13, %v6894_v59  ;;  %v3563_v8 = vmul.f32 %v3512_v13, %v6893_v16  ;;  %v6897_v4 = vld [vmem:[#allocation21_spill] sm:$0xff]  ;;  %v6898_v13 = vld [vmem:[#allocation6_spill] sm:$0xff]  ;;  %v6900_v16 = vld [vmem:[#allocation3_spill] sm:$0xff] }
 0x215   :  { %v3556_v48 = vsub.f32 %v3553_v56, %v3555_v5  ;;  %v3281_v3 = vsub.f32 %v3279_v19, %v3280_v11  ;;  %v3521_v12 = vsub.f32 %v3519_v2, %v3520_v22  ;;  %v3525_v25 = vmul.f32 %v6653_v63, %v3269_v39 }
 0x216   :  { %v3526_v15 = vmul.f32 %v6656_v62, %v3272_v35  ;;  %v3558_v40 = vadd.f32 %v3557_v58, %v3552_v38  ;;  %v3565_v17 = vmul.f32 %v3515_v10, %v6895_v21  ;;  %v3569_v54 = vmul.f32 %v3515_v10, %v6896_v37 }
 0x217   :  { %v3562_v28 = vadd.f32 %v3561_v9, %v3556_v48  ;;  %v3284_v44 = vadd.f32 %v3283_v26, %v3282_v53  ;;  %v3524_v50 = vadd.f32 %v3523_v18, %v3522_v43  ;;  %v3528_v49 = vmul.f32 %v6656_v62, %v3269_v39 }
 0x218   :  { %v3529_v57 = vmul.f32 %v6653_v63, %v3272_v35  ;;  %v3560_v45 = vadd.f32 %v3559_v27, %v3558_v40  ;;  %v3567_v19 = vmul.f32 %v3518_v52, %v6896_v37  ;;  %v3571_v61 = vmul.f32 %v3518_v52, %v6895_v21  ;;  %v6901_v40 = vld [vmem:[#allocation8_spill] sm:$0xff] }
 0x219   :  { %v3564_v34 = vsub.f32 %v3562_v28, %v3563_v8  ;;  %v3289_v11 = vmul.f32 %v6620_v42, %v6548_v41  ;;  %v3527_v60 = vsub.f32 %v3525_v25, %v3526_v15  ;;  %v3531_v30 = vmul.f32 %v6653_v63, %v3275_v24 }
 0x21a   :  { %v3532_v47 = vmul.f32 %v6647_v7, %v3278_v32  ;;  %v3566_v53 = vadd.f32 %v3565_v17, %v3560_v45  ;;  %v3573_v39 = vmul.f32 %v3521_v12, %v6897_v4  ;;  %v3577_v35 = vmul.f32 %v3521_v12, %v6898_v13 }
 0x21b   :  { %v3570_v26 = vadd.f32 %v3569_v54, %v3564_v34  ;;  %v3287_v10 = vsub.f32 %v3285_v6, %v3286_v1  ;;  %v3530_v2 = vadd.f32 %v3529_v57, %v3528_v49  ;;  %v3534_v22 = vmul.f32 %v6647_v7, %v3275_v24  ;;  %v6899_v6 = vld [vmem:[#allocation7_spill] sm:$0xff] }
 0x21c   :  { %v3535_v33 = vmul.f32 %v6653_v63, %v3278_v32  ;;  %v3568_v36 = vadd.f32 %v3567_v19, %v3566_v53  ;;  %v3575_v41 = vmul.f32 %v3524_v50, %v6898_v13  ;;  %v3579_v42 = vmul.f32 %v3524_v50, %v6897_v4  ;;  %v6903_v49 = vld [vmem:[#allocation15_spill] sm:$0xff] }
 0x21d   :  { %v3572_v52 = vsub.f32 %v3570_v26, %v3571_v61  ;;  %v3290_v29 = vadd.f32 %v3289_v11, %v3288_v31  ;;  %v3533_v0 = vsub.f32 %v3531_v30, %v3532_v47  ;;  %v3537_v56 = vmul.f32 %v6653_v63, %v3281_v3  ;;  %v6904_v61 = vld [vmem:[#allocation11_spill] sm:$0xff] }
 0x21e   :  { %v3538_v5 = vmul.f32 %v6656_v62, %v3284_v44  ;;  %v3574_v43 = vadd.f32 %v3573_v39, %v3568_v36  ;;  %v3581_v1 = vmul.f32 %v3527_v60, %v6899_v6  ;;  %v3585_v24 = vmul.f32 %v3527_v60, %v6900_v16 }
 0x21f   :  { %v3578_v18 = vadd.f32 %v3577_v35, %v3572_v52  ;;  %v1773_v32 = vadd.f32 %v5916_v51, %v5905_v55  ;;  %v3536_v58 = vadd.f32 %v3535_v33, %v3534_v22  ;;  %v3540_v59 = vmul.f32 %v6656_v62, %v3281_v3 }
 0x220   :  { %v3541_v9 = vmul.f32 %v6653_v63, %v3284_v44  ;;  %v3576_v31 = vadd.f32 %v3575_v41, %v3574_v43  ;;  %v3583_v48 = vmul.f32 %v3530_v2, %v6900_v16  ;;  %v3587_v27 = vmul.f32 %v3530_v2, %v6899_v6  ;;  %v6902_v44 = vld [vmem:[#allocation9_spill] sm:$0xff] }
 0x221   :  { %v3580_v38 = vsub.f32 %v3578_v18, %v3579_v42  ;;  %v1778_v8 = vmul.f32 %v5580_v23, %v6875_v14  ;;  %v3539_v12 = vsub.f32 %v3537_v56, %v3538_v5  ;;  %v3543_v25 = vmul.f32 %v6653_v63, %v3287_v10 }
 0x222   :  { %v3544_v15 = vmul.f32 %v6647_v7, %v3290_v29  ;;  %v3582_v55 = vadd.f32 %v3581_v1, %v3576_v31  ;;  %v3589_v62 = vmul.f32 %v3533_v0, %v6901_v40  ;;  %v3593_v3 = vmul.f32 %v3533_v0, %v5943_v46 }
 0x223   :  { %v3586_v51 = vadd.f32 %v3585_v24, %v3580_v38  ;;  %v3542_v28 = vadd.f32 %v3541_v9, %v3540_v59  ;;  %v3546_v21 = vmul.f32 %v6647_v7, %v3287_v10  ;;  %v3547_v17 = vmul.f32 %v6653_v63, %v3290_v29 }
 0x224   :  { %v3584_v37 = vadd.f32 %v3583_v48, %v3582_v55  ;;  %v3591_v23 = vmul.f32 %v3536_v58, %v5943_v46  ;;  %v3595_v14 = vmul.f32 %v3536_v58, %v6901_v40  ;;  %v1776_v50 = vsub.f32 %v6902_v44, %v5951_v20 }
 0x225   :  { %v3588_v54 = vsub.f32 %v3586_v51, %v3587_v27  ;;  %v1779_v57 = vadd.f32 %v1778_v8, %v6903_v49  ;;  %v3545_v45 = vsub.f32 %v3543_v25, %v3544_v15  ;;  %v3597_v11 = vmul.f32 %v3539_v12, %v6904_v61 }
 0x226   :  { %v3590_v34 = vadd.f32 %v3589_v62, %v3584_v37  ;;  %v3601_v60 = vmul.f32 %v3539_v12, %v1773_v32  ;;  %v3548_v7 = vadd.f32 %v3547_v17, %v3546_v21  ;;  %v3599_v47 = vmul.f32 %v3542_v28, %v1773_v32 }
 0x227   :  { %v3594_v19 = vadd.f32 %v3593_v3, %v3588_v54  ;;  %v3603_v53 = vmul.f32 %v3542_v28, %v6904_v61  ;;  %v3605_v4 = vmul.f32 %v3545_v45, %v1776_v50  ;;  %v3609_v39 = vmul.f32 %v3545_v45, %v1779_v57 }
 0x228   :  { %v3592_v30 = vadd.f32 %v3591_v23, %v3590_v34  ;;  %v3607_v35 = vmul.f32 %v3548_v7, %v1779_v57  ;;  %v3611_v10 = vmul.f32 %v3548_v7, %v1776_v50 }
 0x229   :  { %v3596_v63 = vsub.f32 %v3594_v19, %v3595_v14 }
 0x22a   :  { %v3598_v46 = vadd.f32 %v3597_v11, %v3592_v30 }
 0x22b   :  { %v3602_v26 = vadd.f32 %v3601_v60, %v3596_v63 }
 0x22c   :  { %v3600_v13 = vadd.f32 %v3599_v47, %v3598_v46 }
 0x22d   :  { %v3604_v20 = vsub.f32 %v3602_v26, %v3603_v53 }
 0x22e   :  { %v3606_v2 = vadd.f32 %v3605_v4, %v3600_v13 }
 0x22f   :  { %v3610_v22 = vadd.f32 %v3609_v39, %v3604_v20 }
 0x230   :  { %v3608_v33 = vadd.f32 %v3607_v35, %v3606_v2 }
 0x231   :  { %v3612_v36 = vsub.f32 %v3610_v22, %v3611_v10 }
 0x232   :  { %v3613_v52 = vmul.f32 %v3608_v33, %v3608_v33 }
 0x233   :  { %v3614_v41 = vmul.f32 %v3612_v36, %v3612_v36 }
 0x235   :  { %v3615_v42 = vadd.f32 %v3614_v41, %v3613_v52 }
 0x237   :  { %3616 = vst [vmem:[%s6752_s2] sm:$0x1] %v3615_v42 }

</bundles_post_ra>
